<compile_context>
chip_gen: v7x
topology: tpu7x:2x2x1
jax: 0.10.0
libtpu: 0.0.40
codegen_flags: <defaults>
</compile_context>

<pallas_src>
import math

import jax
import jax.numpy as jnp
from jax import lax
from jax.experimental import pallas as pl
from jax.experimental.pallas import tpu as pltpu


def _round_up(x, m):
    return ((x + m - 1) // m) * m


def _make_kernel(kcols, mxu_dtype):
    """Build the fused complex-bilinear kernel for a fixed in1-columns-per-step."""

    def kernel(x1r_ref, x1i_ref, x2r_ref, x2i_ref,
               wr_ref, wi_ref, br_ref, bi_ref, or_ref, oi_ref):
        k = pl.program_id(2)

        @pl.when(k == 0)
        def _():
            # Output block is resident across the K loop (k-invariant index map);
            # seed it with the broadcast bias (no scratch accumulator / epilogue).
            or_ref[...] = jnp.broadcast_to(br_ref[...], or_ref.shape)
            oi_ref[...] = jnp.broadcast_to(bi_ref[...], oi_ref.shape)

        x2r = x2r_ref[...]                     # (tm, in2_pad) f32, resident
        x2i = x2i_ref[...]
        a_r = x1r_ref[0]                       # (tm, kcols) f32 (conjugate folded)
        a_i = x1i_ref[0]

        dims = (((1,), (1,)), ((), ()))        # contract lane axis of both operands
        for p in range(kcols):                 # static, unrolled
            c_r = a_r[:, p:p + 1]              # (tm, 1) column of u1'
            c_i = a_i[:, p:p + 1]

            # Fused complex outer-product row: z_p = u1'[:, p] * u2 (VPU work,
            # ~1/tn of the MXU work -> free under MXU slack).
            zr = c_r * x2r - c_i * x2i
            zi = c_r * x2i + c_i * x2r
            zs = (zr + zi).astype(mxu_dtype)
            zr = zr.astype(mxu_dtype)
            zi = zi.astype(mxu_dtype)

            wr = wr_ref[p]                     # (tn, in2_pad) mxu_dtype
            wi = wi_ref[p]
            ws = wr + wi

            # Gauss 3-multiplication complex product, f32 accumulation.
            rr = lax.dot_general(zr, wr, dims, preferred_element_type=jnp.float32)
            ii = lax.dot_general(zi, wi, dims, preferred_element_type=jnp.float32)
            mm = lax.dot_general(zs, ws, dims, preferred_element_type=jnp.float32)

            or_ref[...] += rr - ii
            oi_ref[...] += mm - rr - ii

    return kernel


def cplx_bilinear_forward(x1_real, x1_imag, x2_real, x2_imag,
                          w_real, w_imag, b_real=None, b_imag=None, *,
                          conjugate=True, mxu_dtype=jnp.bfloat16,
                          interpret=False):
    """Forward of CplxBilinear, returns (out_real, out_imag).

    x1_*: (..., in1), x2_*: (..., in2), w_*: (out, in1, in2), b_*: (out,).
    """
    orig_dtype = x1_real.dtype
    out_features, in1, in2 = w_real.shape
    lead_shape = x1_real.shape[:-1]
    B = int(math.prod(lead_shape)) if lead_shape else 1
    f32 = jnp.float32

    # ---------------- tiling plan ----------------
    r8 = _round_up(max(B, 1), 8)
    tm = r8 if r8 <= 256 else 256                 # batch tile (sublane dim)
    B_pad = _round_up(B, tm)

    in2_pad = _round_up(in2, 128)                 # contraction lane dim
    O_pad = _round_up(out_features, 128)          # lane-dense output
    tn = min(512, O_pad)
    # v7x: 2 TensorCores share the parallel axes; if batch gives a single
    # i-block, split the output axis so both cores have work.
    if (B_pad // tm) == 1 and (O_pad // tn) < 2 and (O_pad // 2) % 128 == 0:
        tn = min(tn, O_pad // 2)

    # K grid step covers `kcols` in1 columns -> tk_eff = kcols * in2_pad ~ 1024.
    kcols = max(1, min(in1, 1024 // in2_pad))
    in1_pad = _round_up(in1, kcols)
    nk = in1_pad // kcols

    # ---------------- activations ----------------
    x1r = x1_real.reshape(B, in1).astype(f32)
    x1i = x1_imag.reshape(B, in1).astype(f32)
    x2r = x2_real.reshape(B, in2).astype(f32)
    x2i = x2_imag.reshape(B, in2).astype(f32)
    if conjugate:
        x1i = -x1i                                # fold conj(u1) into the imag plane

    # x1: pre-block along in1 -> (nk, B_pad, kcols) so the kernel only does
    # static slicing (third axis == full block -> no (8,128) lane constraint).
    x1r = jnp.pad(x1r, ((0, B_pad - B), (0, in1_pad - in1)))
    x1i = jnp.pad(x1i, ((0, B_pad - B), (0, in1_pad - in1)))
    x1r = x1r.reshape(B_pad, nk, kcols).transpose(1, 0, 2)
    x1i = x1i.reshape(B_pad, nk, kcols).transpose(1, 0, 2)

    x2r = jnp.pad(x2r, ((0, B_pad - B), (0, in2_pad - in2)))
    x2i = jnp.pad(x2i, ((0, B_pad - B), (0, in2_pad - in2)))

    # ---------------- weights / bias ----------------
    # (out, in1, in2) -> (in1_pad, O_pad, in2_pad), cast for the MXU.
    # TODO(synk): hoist this one-time packing (transpose/pad/cast) to
    # parameter-init time so it is not re-executed on every forward under jit.
    def pack_w(w):
        w = jnp.transpose(w.astype(f32), (1, 0, 2))
        w = jnp.pad(w, ((0, in1_pad - in1),
                        (0, O_pad - out_features),
                        (0, in2_pad - in2)))
        return w.astype(mxu_dtype)

    wr = pack_w(w_real)
    wi = pack_w(w_imag)

    if b_real is None:
        br = jnp.zeros((1, O_pad), f32)
        bi = jnp.zeros((1, O_pad), f32)
    else:
        br = jnp.pad(b_real.reshape(1, out_features).astype(f32),
                     ((0, 0), (0, O_pad - out_features)))
        bi = jnp.pad(b_imag.reshape(1, out_features).astype(f32),
                     ((0, 0), (0, O_pad - out_features)))

    # ---------------- pallas call ----------------
    grid = (B_pad // tm, O_pad // tn, nk)
    kernel = _make_kernel(kcols, mxu_dtype)

    out_r, out_i = pl.pallas_call(
        kernel,
        out_shape=(jax.ShapeDtypeStruct((B_pad, O_pad), f32),
                   jax.ShapeDtypeStruct((B_pad, O_pad), f32)),
        grid_spec=pltpu.PrefetchScalarGridSpec(
            num_scalar_prefetch=0,
            grid=grid,
            in_specs=[
                pl.BlockSpec((1, tm, kcols), lambda i, j, k: (k, i, 0)),       # x1 real
                pl.BlockSpec((1, tm, kcols), lambda i, j, k: (k, i, 0)),       # x1 imag
                pl.BlockSpec((tm, in2_pad), lambda i, j, k: (i, 0)),           # x2 real
                pl.BlockSpec((tm, in2_pad), lambda i, j, k: (i, 0)),           # x2 imag
                pl.BlockSpec((kcols, tn, in2_pad), lambda i, j, k: (k, j, 0)),  # W real
                pl.BlockSpec((kcols, tn, in2_pad), lambda i, j, k: (k, j, 0)),  # W imag
                pl.BlockSpec((1, tn), lambda i, j, k: (0, j)),                 # bias real
                pl.BlockSpec((1, tn), lambda i, j, k: (0, j)),                 # bias imag
            ],
            out_specs=(
                pl.BlockSpec((tm, tn), lambda i, j, k: (i, j)),
                pl.BlockSpec((tm, tn), lambda i, j, k: (i, j)),
            ),
        ),
        compiler_params=pltpu.CompilerParams(
            dimension_semantics=("parallel", "parallel", "arbitrary"),
            vmem_limit_bytes=32 * 1024 * 1024),
        interpret=interpret,
    )(x1r, x1i, x2r, x2i, wr, wi, br, bi)

    out_r = out_r[:B, :out_features].reshape(*lead_shape, out_features)
    out_i = out_i[:B, :out_features].reshape(*lead_shape, out_features)
    return out_r.astype(orig_dtype), out_i.astype(orig_dtype)


def _reference(x1r, x1i, x2r, x2i, wr, wi, br, bi, conjugate=True):
    """Pure-JAX reference in f32 HIGHEST precision."""
    hp = lax.Precision.HIGHEST
    ai = -x1i if conjugate else x1i
    zr = x1r[:, :, None] * x2r[:, None, :] - ai[:, :, None] * x2i[:, None, :]
    zi = x1r[:, :, None] * x2i[:, None, :] + ai[:, :, None] * x2r[:, None, :]
    yr = (jnp.einsum('bpq,opq->bo', zr, wr, precision=hp)
          - jnp.einsum('bpq,opq->bo', zi, wi, precision=hp))
    yi = (jnp.einsum('bpq,opq->bo', zr, wi, precision=hp)
          + jnp.einsum('bpq,opq->bo', zi, wr, precision=hp))
    return yr + br[None, :], yi + bi[None, :]


if __name__ == "__main__":
    batch, in1, in2, out_features = 4, 16, 16, 16

    key = jax.random.PRNGKey(0)
    k1r, k1i, k2r, k2i, kwr, kwi, kbr, kbi = jax.random.split(key, 8)

    x1_real = jax.random.normal(k1r, (batch, in1), dtype=jnp.float32)
    x1_imag = jax.random.normal(k1i, (batch, in1), dtype=jnp.float32)
    x2_real = jax.random.normal(k2r, (batch, in2), dtype=jnp.float32)
    x2_imag = jax.random.normal(k2i, (batch, in2), dtype=jnp.float32)

    # Kaiming-uniform-like bound, as in the module's reset_parameters.
    bound = 1.0 / math.sqrt(in1 * in2)
    w_real = jax.random.uniform(kwr, (out_features, in1, in2),
                                minval=-bound, maxval=bound, dtype=jnp.float32)
    w_imag = jax.random.uniform(kwi, (out_features, in1, in2),
                                minval=-bound, maxval=bound, dtype=jnp.float32)
    b_real = jax.random.uniform(kbr, (out_features,),
                                minval=-bound, maxval=bound, dtype=jnp.float32)
    b_imag = jax.random.uniform(kbi, (out_features,),
                                minval=-bound, maxval=bound, dtype=jnp.float32)

    out_r, out_i = cplx_bilinear_forward(
        x1_real, x1_imag, x2_real, x2_imag,
        w_real, w_imag, b_real, b_imag, conjugate=True)
    out_r, out_i = jax.block_until_ready((out_r, out_i))

    ref_r, ref_i = _reference(x1_real, x1_imag, x2_real, x2_imag,
                              w_real, w_imag, b_real, b_imag, conjugate=True)

    assert out_r.shape == (batch, out_features)
    assert out_i.shape == (batch, out_features)
    # bf16 MXU operands + Gauss 3-mult product -> reduced-precision tolerance
    # (f32 accumulation keeps the error well inside these bounds).
    assert jnp.allclose(out_r, ref_r, atol=3e-2, rtol=3e-2)
    assert jnp.allclose(out_i, ref_i, atol=3e-2, rtol=3e-2)

    print("KERNEL_OK")
</pallas_src>

<mosaic_0001>
module attributes {stable_mosaic.version = 11 : i64} {
  func.func @kernel(%arg0: i32, %arg1: i32, %arg2: i32, %arg3: memref<1x8x8xf32, #tpu.memory_space<vmem>>, %arg4: memref<1x8x8xf32, #tpu.memory_space<vmem>>, %arg5: memref<8x128xf32, #tpu.memory_space<vmem>>, %arg6: memref<8x128xf32, #tpu.memory_space<vmem>>, %arg7: memref<8x128x128xbf16, #tpu.memory_space<vmem>>, %arg8: memref<8x128x128xbf16, #tpu.memory_space<vmem>>, %arg9: memref<1x128xf32, #tpu.memory_space<vmem>>, %arg10: memref<1x128xf32, #tpu.memory_space<vmem>>, %arg11: memref<8x128xf32, #tpu.memory_space<vmem>>, %arg12: memref<8x128xf32, #tpu.memory_space<vmem>>) attributes {dimension_semantics = [#tpu.dimension_semantics<parallel>, #tpu.dimension_semantics<parallel>, #tpu.dimension_semantics<arbitrary>], iteration_bounds = array<i64: 1, 1, 2>, scalar_prefetch = 0 : i64, scratch_operands = 0 : i64, tpu.core_type = #tpu.core_type<tc>, window_params = [{transform_indices = @transform_0, window_bounds = array<i64: 1, 8, 8>}, {transform_indices = @transform_1, window_bounds = array<i64: 1, 8, 8>}, {transform_indices = @transform_2, window_bounds = array<i64: 8, 128>}, {transform_indices = @transform_3, window_bounds = array<i64: 8, 128>}, {transform_indices = @transform_4, window_bounds = array<i64: 8, 128, 128>}, {transform_indices = @transform_5, window_bounds = array<i64: 8, 128, 128>}, {transform_indices = @transform_6, window_bounds = array<i64: 1, 128>}, {transform_indices = @transform_7, window_bounds = array<i64: 1, 128>}, {transform_indices = @transform_8, window_bounds = array<i64: 8, 128>}, {transform_indices = @transform_9, window_bounds = array<i64: 8, 128>}]} {
    %c0_i32 = arith.constant 0 : i32
    %0 = arith.cmpi eq, %arg2, %c0_i32 : i32
    %1 = arith.extui %0 : i1 to i32
    %c0_i32_0 = arith.constant 0 : i32
    %2 = arith.cmpi ne, %1, %c0_i32_0 : i32
    scf.if %2 {
      %c0_138 = arith.constant 0 : index
      %c0_139 = arith.constant 0 : index
      %273 = vector.load %arg9[%c0_138, %c0_139] : memref<1x128xf32, #tpu.memory_space<vmem>>, vector<1x128xf32>
      %274 = vector.shape_cast %273 : vector<1x128xf32> to vector<1x128xf32>
      %275 = vector.broadcast %274 : vector<1x128xf32> to vector<8x128xf32>
      %c0_140 = arith.constant 0 : index
      %c0_141 = arith.constant 0 : index
      %276 = vector.load %arg11[%c0_140, %c0_141] : memref<8x128xf32, #tpu.memory_space<vmem>>, vector<8x128xf32>
      tpu.vector_store %arg11[%c0_140, %c0_141], %275 {strides = array<i32>} : memref<8x128xf32, #tpu.memory_space<vmem>>, vector<8x128xf32>,
      %c0_142 = arith.constant 0 : index
      %c0_143 = arith.constant 0 : index
      %277 = vector.load %arg10[%c0_142, %c0_143] : memref<1x128xf32, #tpu.memory_space<vmem>>, vector<1x128xf32>
      %278 = vector.shape_cast %277 : vector<1x128xf32> to vector<1x128xf32>
      %279 = vector.broadcast %278 : vector<1x128xf32> to vector<8x128xf32>
      %c0_144 = arith.constant 0 : index
      %c0_145 = arith.constant 0 : index
      %280 = vector.load %arg12[%c0_144, %c0_145] : memref<8x128xf32, #tpu.memory_space<vmem>>, vector<8x128xf32>
      tpu.vector_store %arg12[%c0_144, %c0_145], %279 {strides = array<i32>} : memref<8x128xf32, #tpu.memory_space<vmem>>, vector<8x128xf32>,
    } else {
    }
    %c0 = arith.constant 0 : index
    %c0_1 = arith.constant 0 : index
    %3 = vector.load %arg5[%c0, %c0_1] : memref<8x128xf32, #tpu.memory_space<vmem>>, vector<8x128xf32>
    %c0_2 = arith.constant 0 : index
    %c0_3 = arith.constant 0 : index
    %4 = vector.load %arg6[%c0_2, %c0_3] : memref<8x128xf32, #tpu.memory_space<vmem>>, vector<8x128xf32>
    %c0_4 = arith.constant 0 : index
    %c0_5 = arith.constant 0 : index
    %c0_6 = arith.constant 0 : index
    %5 = vector.load %arg3[%c0_4, %c0_5, %c0_6] : memref<1x8x8xf32, #tpu.memory_space<vmem>>, vector<1x8x8xf32>
    %6 = vector.shape_cast %5 : vector<1x8x8xf32> to vector<8x8xf32>
    %c0_7 = arith.constant 0 : index
    %c0_8 = arith.constant 0 : index
    %c0_9 = arith.constant 0 : index
    %7 = vector.load %arg4[%c0_7, %c0_8, %c0_9] : memref<1x8x8xf32, #tpu.memory_space<vmem>>, vector<1x8x8xf32>
    %8 = vector.shape_cast %7 : vector<1x8x8xf32> to vector<8x8xf32>
    %9 = vector.extract_strided_slice %6 {offsets = [0, 0], sizes = [8, 1], strides = [1, 1]} : vector<8x8xf32> to vector<8x1xf32>
    %10 = vector.extract_strided_slice %8 {offsets = [0, 0], sizes = [8, 1], strides = [1, 1]} : vector<8x8xf32> to vector<8x1xf32>
    %11 = vector.broadcast %9 : vector<8x1xf32> to vector<8x128xf32>
    %12 = arith.mulf %11, %3 : vector<8x128xf32>
    %13 = vector.broadcast %10 : vector<8x1xf32> to vector<8x128xf32>
    %14 = arith.mulf %13, %4 : vector<8x128xf32>
    %15 = arith.subf %12, %14 : vector<8x128xf32>
    %16 = vector.broadcast %9 : vector<8x1xf32> to vector<8x128xf32>
    %17 = arith.mulf %16, %4 : vector<8x128xf32>
    %18 = vector.broadcast %10 : vector<8x1xf32> to vector<8x128xf32>
    %19 = arith.mulf %18, %3 : vector<8x128xf32>
    %20 = arith.addf %17, %19 : vector<8x128xf32>
    %21 = arith.addf %15, %20 : vector<8x128xf32>
    %22 = arith.truncf %21 : vector<8x128xf32> to vector<8x128xbf16>
    %23 = arith.truncf %15 : vector<8x128xf32> to vector<8x128xbf16>
    %24 = arith.truncf %20 : vector<8x128xf32> to vector<8x128xbf16>
    %c0_10 = arith.constant 0 : index
    %c0_11 = arith.constant 0 : index
    %c0_12 = arith.constant 0 : index
    %25 = vector.load %arg7[%c0_10, %c0_11, %c0_12] : memref<8x128x128xbf16, #tpu.memory_space<vmem>>, vector<1x128x128xbf16>
    %26 = vector.shape_cast %25 : vector<1x128x128xbf16> to vector<128x128xbf16>
    %c0_13 = arith.constant 0 : index
    %c0_14 = arith.constant 0 : index
    %c0_15 = arith.constant 0 : index
    %27 = vector.load %arg8[%c0_13, %c0_14, %c0_15] : memref<8x128x128xbf16, #tpu.memory_space<vmem>>, vector<1x128x128xbf16>
    %28 = vector.shape_cast %27 : vector<1x128x128xbf16> to vector<128x128xbf16>
    %29 = arith.addf %26, %28 : vector<128x128xbf16>
    %cst = arith.constant dense<0.000000e+00> : vector<8x128xf32>
    %30 = tpu.matmul %23, %26, %cst {dimension_numbers = #tpu.dot_dimension_numbers<[1], [1], [0], [0], [0, 0, 1, 0], [], []>} : vector<8x128xbf16>, vector<128x128xbf16>, vector<8x128xf32> -> vector<8x128xf32>
    %cst_16 = arith.constant dense<0.000000e+00> : vector<8x128xf32>
    %31 = tpu.matmul %24, %28, %cst_16 {dimension_numbers = #tpu.dot_dimension_numbers<[1], [1], [0], [0], [0, 0, 1, 0], [], []>} : vector<8x128xbf16>, vector<128x128xbf16>, vector<8x128xf32> -> vector<8x128xf32>
    %cst_17 = arith.constant dense<0.000000e+00> : vector<8x128xf32>
    %32 = tpu.matmul %22, %29, %cst_17 {dimension_numbers = #tpu.dot_dimension_numbers<[1], [1], [0], [0], [0, 0, 1, 0], [], []>} : vector<8x128xbf16>, vector<128x128xbf16>, vector<8x128xf32> -> vector<8x128xf32>
    %c0_18 = arith.constant 0 : index
    %c0_19 = arith.constant 0 : index
    %33 = vector.load %arg11[%c0_18, %c0_19] : memref<8x128xf32, #tpu.memory_space<vmem>>, vector<8x128xf32>
    %34 = arith.subf %30, %31 : vector<8x128xf32>
    %35 = arith.addf %33, %34 : vector<8x128xf32>
    %c0_20 = arith.constant 0 : index
    %c0_21 = arith.constant 0 : index
    %36 = vector.load %arg11[%c0_20, %c0_21] : memref<8x128xf32, #tpu.memory_space<vmem>>, vector<8x128xf32>
    tpu.vector_store %arg11[%c0_20, %c0_21], %35 {strides = array<i32>} : memref<8x128xf32, #tpu.memory_space<vmem>>, vector<8x128xf32>,
    %c0_22 = arith.constant 0 : index
    %c0_23 = arith.constant 0 : index
    %37 = vector.load %arg12[%c0_22, %c0_23] : memref<8x128xf32, #tpu.memory_space<vmem>>, vector<8x128xf32>
    %38 = arith.subf %32, %30 : vector<8x128xf32>
    %39 = arith.subf %38, %31 : vector<8x128xf32>
    %40 = arith.addf %37, %39 : vector<8x128xf32>
    %c0_24 = arith.constant 0 : index
    %c0_25 = arith.constant 0 : index
    %41 = vector.load %arg12[%c0_24, %c0_25] : memref<8x128xf32, #tpu.memory_space<vmem>>, vector<8x128xf32>
    tpu.vector_store %arg12[%c0_24, %c0_25], %40 {strides = array<i32>} : memref<8x128xf32, #tpu.memory_space<vmem>>, vector<8x128xf32>,
    %42 = vector.extract_strided_slice %6 {offsets = [0, 1], sizes = [8, 1], strides = [1, 1]} : vector<8x8xf32> to vector<8x1xf32>
    %43 = vector.extract_strided_slice %8 {offsets = [0, 1], sizes = [8, 1], strides = [1, 1]} : vector<8x8xf32> to vector<8x1xf32>
    %44 = vector.broadcast %42 : vector<8x1xf32> to vector<8x128xf32>
    %45 = arith.mulf %44, %3 : vector<8x128xf32>
    %46 = vector.broadcast %43 : vector<8x1xf32> to vector<8x128xf32>
    %47 = arith.mulf %46, %4 : vector<8x128xf32>
    %48 = arith.subf %45, %47 : vector<8x128xf32>
    %49 = vector.broadcast %42 : vector<8x1xf32> to vector<8x128xf32>
    %50 = arith.mulf %49, %4 : vector<8x128xf32>
    %51 = vector.broadcast %43 : vector<8x1xf32> to vector<8x128xf32>
    %52 = arith.mulf %51, %3 : vector<8x128xf32>
    %53 = arith.addf %50, %52 : vector<8x128xf32>
    %54 = arith.addf %48, %53 : vector<8x128xf32>
    %55 = arith.truncf %54 : vector<8x128xf32> to vector<8x128xbf16>
    %56 = arith.truncf %48 : vector<8x128xf32> to vector<8x128xbf16>
    %57 = arith.truncf %53 : vector<8x128xf32> to vector<8x128xbf16>
    %c1 = arith.constant 1 : index
    %c0_26 = arith.constant 0 : index
    %c0_27 = arith.constant 0 : index
    %58 = vector.load %arg7[%c1, %c0_26, %c0_27] : memref<8x128x128xbf16, #tpu.memory_space<vmem>>, vector<1x128x128xbf16>
    %59 = vector.shape_cast %58 : vector<1x128x128xbf16> to vector<128x128xbf16>
    %c1_28 = arith.constant 1 : index
    %c0_29 = arith.constant 0 : index
    %c0_30 = arith.constant 0 : index
    %60 = vector.load %arg8[%c1_28, %c0_29, %c0_30] : memref<8x128x128xbf16, #tpu.memory_space<vmem>>, vector<1x128x128xbf16>
    %61 = vector.shape_cast %60 : vector<1x128x128xbf16> to vector<128x128xbf16>
    %62 = arith.addf %59, %61 : vector<128x128xbf16>
    %cst_31 = arith.constant dense<0.000000e+00> : vector<8x128xf32>
    %63 = tpu.matmul %56, %59, %cst_31 {dimension_numbers = #tpu.dot_dimension_numbers<[1], [1], [0], [0], [0, 0, 1, 0], [], []>} : vector<8x128xbf16>, vector<128x128xbf16>, vector<8x128xf32> -> vector<8x128xf32>
    %cst_32 = arith.constant dense<0.000000e+00> : vector<8x128xf32>
    %64 = tpu.matmul %57, %61, %cst_32 {dimension_numbers = #tpu.dot_dimension_numbers<[1], [1], [0], [0], [0, 0, 1, 0], [], []>} : vector<8x128xbf16>, vector<128x128xbf16>, vector<8x128xf32> -> vector<8x128xf32>
    %cst_33 = arith.constant dense<0.000000e+00> : vector<8x128xf32>
    %65 = tpu.matmul %55, %62, %cst_33 {dimension_numbers = #tpu.dot_dimension_numbers<[1], [1], [0], [0], [0, 0, 1, 0], [], []>} : vector<8x128xbf16>, vector<128x128xbf16>, vector<8x128xf32> -> vector<8x128xf32>
    %c0_34 = arith.constant 0 : index
    %c0_35 = arith.constant 0 : index
    %66 = vector.load %arg11[%c0_34, %c0_35] : memref<8x128xf32, #tpu.memory_space<vmem>>, vector<8x128xf32>
    %67 = arith.subf %63, %64 : vector<8x128xf32>
    %68 = arith.addf %66, %67 : vector<8x128xf32>
    %c0_36 = arith.constant 0 : index
    %c0_37 = arith.constant 0 : index
    %69 = vector.load %arg11[%c0_36, %c0_37] : memref<8x128xf32, #tpu.memory_space<vmem>>, vector<8x128xf32>
    tpu.vector_store %arg11[%c0_36, %c0_37], %68 {strides = array<i32>} : memref<8x128xf32, #tpu.memory_space<vmem>>, vector<8x128xf32>,
    %c0_38 = arith.constant 0 : index
    %c0_39 = arith.constant 0 : index
    %70 = vector.load %arg12[%c0_38, %c0_39] : memref<8x128xf32, #tpu.memory_space<vmem>>, vector<8x128xf32>
    %71 = arith.subf %65, %63 : vector<8x128xf32>
    %72 = arith.subf %71, %64 : vector<8x128xf32>
    %73 = arith.addf %70, %72 : vector<8x128xf32>
    %c0_40 = arith.constant 0 : index
    %c0_41 = arith.constant 0 : index
    %74 = vector.load %arg12[%c0_40, %c0_41] : memref<8x128xf32, #tpu.memory_space<vmem>>, vector<8x128xf32>
    tpu.vector_store %arg12[%c0_40, %c0_41], %73 {strides = array<i32>} : memref<8x128xf32, #tpu.memory_space<vmem>>, vector<8x128xf32>,
    %75 = vector.extract_strided_slice %6 {offsets = [0, 2], sizes = [8, 1], strides = [1, 1]} : vector<8x8xf32> to vector<8x1xf32>
    %76 = vector.extract_strided_slice %8 {offsets = [0, 2], sizes = [8, 1], strides = [1, 1]} : vector<8x8xf32> to vector<8x1xf32>
    %77 = vector.broadcast %75 : vector<8x1xf32> to vector<8x128xf32>
    %78 = arith.mulf %77, %3 : vector<8x128xf32>
    %79 = vector.broadcast %76 : vector<8x1xf32> to vector<8x128xf32>
    %80 = arith.mulf %79, %4 : vector<8x128xf32>
    %81 = arith.subf %78, %80 : vector<8x128xf32>
    %82 = vector.broadcast %75 : vector<8x1xf32> to vector<8x128xf32>
    %83 = arith.mulf %82, %4 : vector<8x128xf32>
    %84 = vector.broadcast %76 : vector<8x1xf32> to vector<8x128xf32>
    %85 = arith.mulf %84, %3 : vector<8x128xf32>
    %86 = arith.addf %83, %85 : vector<8x128xf32>
    %87 = arith.addf %81, %86 : vector<8x128xf32>
    %88 = arith.truncf %87 : vector<8x128xf32> to vector<8x128xbf16>
    %89 = arith.truncf %81 : vector<8x128xf32> to vector<8x128xbf16>
    %90 = arith.truncf %86 : vector<8x128xf32> to vector<8x128xbf16>
    %c2 = arith.constant 2 : index
    %c0_42 = arith.constant 0 : index
    %c0_43 = arith.constant 0 : index
    %91 = vector.load %arg7[%c2, %c0_42, %c0_43] : memref<8x128x128xbf16, #tpu.memory_space<vmem>>, vector<1x128x128xbf16>
    %92 = vector.shape_cast %91 : vector<1x128x128xbf16> to vector<128x128xbf16>
    %c2_44 = arith.constant 2 : index
    %c0_45 = arith.constant 0 : index
    %c0_46 = arith.constant 0 : index
    %93 = vector.load %arg8[%c2_44, %c0_45, %c0_46] : memref<8x128x128xbf16, #tpu.memory_space<vmem>>, vector<1x128x128xbf16>
    %94 = vector.shape_cast %93 : vector<1x128x128xbf16> to vector<128x128xbf16>
    %95 = arith.addf %92, %94 : vector<128x128xbf16>
    %cst_47 = arith.constant dense<0.000000e+00> : vector<8x128xf32>
    %96 = tpu.matmul %89, %92, %cst_47 {dimension_numbers = #tpu.dot_dimension_numbers<[1], [1], [0], [0], [0, 0, 1, 0], [], []>} : vector<8x128xbf16>, vector<128x128xbf16>, vector<8x128xf32> -> vector<8x128xf32>
    %cst_48 = arith.constant dense<0.000000e+00> : vector<8x128xf32>
    %97 = tpu.matmul %90, %94, %cst_48 {dimension_numbers = #tpu.dot_dimension_numbers<[1], [1], [0], [0], [0, 0, 1, 0], [], []>} : vector<8x128xbf16>, vector<128x128xbf16>, vector<8x128xf32> -> vector<8x128xf32>
    %cst_49 = arith.constant dense<0.000000e+00> : vector<8x128xf32>
    %98 = tpu.matmul %88, %95, %cst_49 {dimension_numbers = #tpu.dot_dimension_numbers<[1], [1], [0], [0], [0, 0, 1, 0], [], []>} : vector<8x128xbf16>, vector<128x128xbf16>, vector<8x128xf32> -> vector<8x128xf32>
    %c0_50 = arith.constant 0 : index
    %c0_51 = arith.constant 0 : index
    %99 = vector.load %arg11[%c0_50, %c0_51] : memref<8x128xf32, #tpu.memory_space<vmem>>, vector<8x128xf32>
    %100 = arith.subf %96, %97 : vector<8x128xf32>
    %101 = arith.addf %99, %100 : vector<8x128xf32>
    %c0_52 = arith.constant 0 : index
    %c0_53 = arith.constant 0 : index
    %102 = vector.load %arg11[%c0_52, %c0_53] : memref<8x128xf32, #tpu.memory_space<vmem>>, vector<8x128xf32>
    tpu.vector_store %arg11[%c0_52, %c0_53], %101 {strides = array<i32>} : memref<8x128xf32, #tpu.memory_space<vmem>>, vector<8x128xf32>,
    %c0_54 = arith.constant 0 : index
    %c0_55 = arith.constant 0 : index
    %103 = vector.load %arg12[%c0_54, %c0_55] : memref<8x128xf32, #tpu.memory_space<vmem>>, vector<8x128xf32>
    %104 = arith.subf %98, %96 : vector<8x128xf32>
    %105 = arith.subf %104, %97 : vector<8x128xf32>
    %106 = arith.addf %103, %105 : vector<8x128xf32>
    %c0_56 = arith.constant 0 : index
    %c0_57 = arith.constant 0 : index
    %107 = vector.load %arg12[%c0_56, %c0_57] : memref<8x128xf32, #tpu.memory_space<vmem>>, vector<8x128xf32>
    tpu.vector_store %arg12[%c0_56, %c0_57], %106 {strides = array<i32>} : memref<8x128xf32, #tpu.memory_space<vmem>>, vector<8x128xf32>,
    %108 = vector.extract_strided_slice %6 {offsets = [0, 3], sizes = [8, 1], strides = [1, 1]} : vector<8x8xf32> to vector<8x1xf32>
    %109 = vector.extract_strided_slice %8 {offsets = [0, 3], sizes = [8, 1], strides = [1, 1]} : vector<8x8xf32> to vector<8x1xf32>
    %110 = vector.broadcast %108 : vector<8x1xf32> to vector<8x128xf32>
    %111 = arith.mulf %110, %3 : vector<8x128xf32>
    %112 = vector.broadcast %109 : vector<8x1xf32> to vector<8x128xf32>
    %113 = arith.mulf %112, %4 : vector<8x128xf32>
    %114 = arith.subf %111, %113 : vector<8x128xf32>
    %115 = vector.broadcast %108 : vector<8x1xf32> to vector<8x128xf32>
    %116 = arith.mulf %115, %4 : vector<8x128xf32>
    %117 = vector.broadcast %109 : vector<8x1xf32> to vector<8x128xf32>
    %118 = arith.mulf %117, %3 : vector<8x128xf32>
    %119 = arith.addf %116, %118 : vector<8x128xf32>
    %120 = arith.addf %114, %119 : vector<8x128xf32>
    %121 = arith.truncf %120 : vector<8x128xf32> to vector<8x128xbf16>
    %122 = arith.truncf %114 : vector<8x128xf32> to vector<8x128xbf16>
    %123 = arith.truncf %119 : vector<8x128xf32> to vector<8x128xbf16>
    %c3 = arith.constant 3 : index
    %c0_58 = arith.constant 0 : index
    %c0_59 = arith.constant 0 : index
    %124 = vector.load %arg7[%c3, %c0_58, %c0_59] : memref<8x128x128xbf16, #tpu.memory_space<vmem>>, vector<1x128x128xbf16>
    %125 = vector.shape_cast %124 : vector<1x128x128xbf16> to vector<128x128xbf16>
    %c3_60 = arith.constant 3 : index
    %c0_61 = arith.constant 0 : index
    %c0_62 = arith.constant 0 : index
    %126 = vector.load %arg8[%c3_60, %c0_61, %c0_62] : memref<8x128x128xbf16, #tpu.memory_space<vmem>>, vector<1x128x128xbf16>
    %127 = vector.shape_cast %126 : vector<1x128x128xbf16> to vector<128x128xbf16>
    %128 = arith.addf %125, %127 : vector<128x128xbf16>
    %cst_63 = arith.constant dense<0.000000e+00> : vector<8x128xf32>
    %129 = tpu.matmul %122, %125, %cst_63 {dimension_numbers = #tpu.dot_dimension_numbers<[1], [1], [0], [0], [0, 0, 1, 0], [], []>} : vector<8x128xbf16>, vector<128x128xbf16>, vector<8x128xf32> -> vector<8x128xf32>
    %cst_64 = arith.constant dense<0.000000e+00> : vector<8x128xf32>
    %130 = tpu.matmul %123, %127, %cst_64 {dimension_numbers = #tpu.dot_dimension_numbers<[1], [1], [0], [0], [0, 0, 1, 0], [], []>} : vector<8x128xbf16>, vector<128x128xbf16>, vector<8x128xf32> -> vector<8x128xf32>
    %cst_65 = arith.constant dense<0.000000e+00> : vector<8x128xf32>
    %131 = tpu.matmul %121, %128, %cst_65 {dimension_numbers = #tpu.dot_dimension_numbers<[1], [1], [0], [0], [0, 0, 1, 0], [], []>} : vector<8x128xbf16>, vector<128x128xbf16>, vector<8x128xf32> -> vector<8x128xf32>
    %c0_66 = arith.constant 0 : index
    %c0_67 = arith.constant 0 : index
    %132 = vector.load %arg11[%c0_66, %c0_67] : memref<8x128xf32, #tpu.memory_space<vmem>>, vector<8x128xf32>
    %133 = arith.subf %129, %130 : vector<8x128xf32>
    %134 = arith.addf %132, %133 : vector<8x128xf32>
    %c0_68 = arith.constant 0 : index
    %c0_69 = arith.constant 0 : index
    %135 = vector.load %arg11[%c0_68, %c0_69] : memref<8x128xf32, #tpu.memory_space<vmem>>, vector<8x128xf32>
    tpu.vector_store %arg11[%c0_68, %c0_69], %134 {strides = array<i32>} : memref<8x128xf32, #tpu.memory_space<vmem>>, vector<8x128xf32>,
    %c0_70 = arith.constant 0 : index
    %c0_71 = arith.constant 0 : index
    %136 = vector.load %arg12[%c0_70, %c0_71] : memref<8x128xf32, #tpu.memory_space<vmem>>, vector<8x128xf32>
    %137 = arith.subf %131, %129 : vector<8x128xf32>
    %138 = arith.subf %137, %130 : vector<8x128xf32>
    %139 = arith.addf %136, %138 : vector<8x128xf32>
    %c0_72 = arith.constant 0 : index
    %c0_73 = arith.constant 0 : index
    %140 = vector.load %arg12[%c0_72, %c0_73] : memref<8x128xf32, #tpu.memory_space<vmem>>, vector<8x128xf32>
    tpu.vector_store %arg12[%c0_72, %c0_73], %139 {strides = array<i32>} : memref<8x128xf32, #tpu.memory_space<vmem>>, vector<8x128xf32>,
    %141 = vector.extract_strided_slice %6 {offsets = [0, 4], sizes = [8, 1], strides = [1, 1]} : vector<8x8xf32> to vector<8x1xf32>
    %142 = vector.extract_strided_slice %8 {offsets = [0, 4], sizes = [8, 1], strides = [1, 1]} : vector<8x8xf32> to vector<8x1xf32>
    %143 = vector.broadcast %141 : vector<8x1xf32> to vector<8x128xf32>
    %144 = arith.mulf %143, %3 : vector<8x128xf32>
    %145 = vector.broadcast %142 : vector<8x1xf32> to vector<8x128xf32>
    %146 = arith.mulf %145, %4 : vector<8x128xf32>
    %147 = arith.subf %144, %146 : vector<8x128xf32>
    %148 = vector.broadcast %141 : vector<8x1xf32> to vector<8x128xf32>
    %149 = arith.mulf %148, %4 : vector<8x128xf32>
    %150 = vector.broadcast %142 : vector<8x1xf32> to vector<8x128xf32>
    %151 = arith.mulf %150, %3 : vector<8x128xf32>
    %152 = arith.addf %149, %151 : vector<8x128xf32>
    %153 = arith.addf %147, %152 : vector<8x128xf32>
    %154 = arith.truncf %153 : vector<8x128xf32> to vector<8x128xbf16>
    %155 = arith.truncf %147 : vector<8x128xf32> to vector<8x128xbf16>
    %156 = arith.truncf %152 : vector<8x128xf32> to vector<8x128xbf16>
    %c4 = arith.constant 4 : index
    %c0_74 = arith.constant 0 : index
    %c0_75 = arith.constant 0 : index
    %157 = vector.load %arg7[%c4, %c0_74, %c0_75] : memref<8x128x128xbf16, #tpu.memory_space<vmem>>, vector<1x128x128xbf16>
    %158 = vector.shape_cast %157 : vector<1x128x128xbf16> to vector<128x128xbf16>
    %c4_76 = arith.constant 4 : index
    %c0_77 = arith.constant 0 : index
    %c0_78 = arith.constant 0 : index
    %159 = vector.load %arg8[%c4_76, %c0_77, %c0_78] : memref<8x128x128xbf16, #tpu.memory_space<vmem>>, vector<1x128x128xbf16>
    %160 = vector.shape_cast %159 : vector<1x128x128xbf16> to vector<128x128xbf16>
    %161 = arith.addf %158, %160 : vector<128x128xbf16>
    %cst_79 = arith.constant dense<0.000000e+00> : vector<8x128xf32>
    %162 = tpu.matmul %155, %158, %cst_79 {dimension_numbers = #tpu.dot_dimension_numbers<[1], [1], [0], [0], [0, 0, 1, 0], [], []>} : vector<8x128xbf16>, vector<128x128xbf16>, vector<8x128xf32> -> vector<8x128xf32>
    %cst_80 = arith.constant dense<0.000000e+00> : vector<8x128xf32>
    %163 = tpu.matmul %156, %160, %cst_80 {dimension_numbers = #tpu.dot_dimension_numbers<[1], [1], [0], [0], [0, 0, 1, 0], [], []>} : vector<8x128xbf16>, vector<128x128xbf16>, vector<8x128xf32> -> vector<8x128xf32>
    %cst_81 = arith.constant dense<0.000000e+00> : vector<8x128xf32>
    %164 = tpu.matmul %154, %161, %cst_81 {dimension_numbers = #tpu.dot_dimension_numbers<[1], [1], [0], [0], [0, 0, 1, 0], [], []>} : vector<8x128xbf16>, vector<128x128xbf16>, vector<8x128xf32> -> vector<8x128xf32>
    %c0_82 = arith.constant 0 : index
    %c0_83 = arith.constant 0 : index
    %165 = vector.load %arg11[%c0_82, %c0_83] : memref<8x128xf32, #tpu.memory_space<vmem>>, vector<8x128xf32>
    %166 = arith.subf %162, %163 : vector<8x128xf32>
    %167 = arith.addf %165, %166 : vector<8x128xf32>
    %c0_84 = arith.constant 0 : index
    %c0_85 = arith.constant 0 : index
    %168 = vector.load %arg11[%c0_84, %c0_85] : memref<8x128xf32, #tpu.memory_space<vmem>>, vector<8x128xf32>
    tpu.vector_store %arg11[%c0_84, %c0_85], %167 {strides = array<i32>} : memref<8x128xf32, #tpu.memory_space<vmem>>, vector<8x128xf32>,
    %c0_86 = arith.constant 0 : index
    %c0_87 = arith.constant 0 : index
    %169 = vector.load %arg12[%c0_86, %c0_87] : memref<8x128xf32, #tpu.memory_space<vmem>>, vector<8x128xf32>
    %170 = arith.subf %164, %162 : vector<8x128xf32>
    %171 = arith.subf %170, %163 : vector<8x128xf32>
    %172 = arith.addf %169, %171 : vector<8x128xf32>
    %c0_88 = arith.constant 0 : index
    %c0_89 = arith.constant 0 : index
    %173 = vector.load %arg12[%c0_88, %c0_89] : memref<8x128xf32, #tpu.memory_space<vmem>>, vector<8x128xf32>
    tpu.vector_store %arg12[%c0_88, %c0_89], %172 {strides = array<i32>} : memref<8x128xf32, #tpu.memory_space<vmem>>, vector<8x128xf32>,
    %174 = vector.extract_strided_slice %6 {offsets = [0, 5], sizes = [8, 1], strides = [1, 1]} : vector<8x8xf32> to vector<8x1xf32>
    %175 = vector.extract_strided_slice %8 {offsets = [0, 5], sizes = [8, 1], strides = [1, 1]} : vector<8x8xf32> to vector<8x1xf32>
    %176 = vector.broadcast %174 : vector<8x1xf32> to vector<8x128xf32>
    %177 = arith.mulf %176, %3 : vector<8x128xf32>
    %178 = vector.broadcast %175 : vector<8x1xf32> to vector<8x128xf32>
    %179 = arith.mulf %178, %4 : vector<8x128xf32>
    %180 = arith.subf %177, %179 : vector<8x128xf32>
    %181 = vector.broadcast %174 : vector<8x1xf32> to vector<8x128xf32>
    %182 = arith.mulf %181, %4 : vector<8x128xf32>
    %183 = vector.broadcast %175 : vector<8x1xf32> to vector<8x128xf32>
    %184 = arith.mulf %183, %3 : vector<8x128xf32>
    %185 = arith.addf %182, %184 : vector<8x128xf32>
    %186 = arith.addf %180, %185 : vector<8x128xf32>
    %187 = arith.truncf %186 : vector<8x128xf32> to vector<8x128xbf16>
    %188 = arith.truncf %180 : vector<8x128xf32> to vector<8x128xbf16>
    %189 = arith.truncf %185 : vector<8x128xf32> to vector<8x128xbf16>
    %c5 = arith.constant 5 : index
    %c0_90 = arith.constant 0 : index
    %c0_91 = arith.constant 0 : index
    %190 = vector.load %arg7[%c5, %c0_90, %c0_91] : memref<8x128x128xbf16, #tpu.memory_space<vmem>>, vector<1x128x128xbf16>
    %191 = vector.shape_cast %190 : vector<1x128x128xbf16> to vector<128x128xbf16>
    %c5_92 = arith.constant 5 : index
    %c0_93 = arith.constant 0 : index
    %c0_94 = arith.constant 0 : index
    %192 = vector.load %arg8[%c5_92, %c0_93, %c0_94] : memref<8x128x128xbf16, #tpu.memory_space<vmem>>, vector<1x128x128xbf16>
    %193 = vector.shape_cast %192 : vector<1x128x128xbf16> to vector<128x128xbf16>
    %194 = arith.addf %191, %193 : vector<128x128xbf16>
    %cst_95 = arith.constant dense<0.000000e+00> : vector<8x128xf32>
    %195 = tpu.matmul %188, %191, %cst_95 {dimension_numbers = #tpu.dot_dimension_numbers<[1], [1], [0], [0], [0, 0, 1, 0], [], []>} : vector<8x128xbf16>, vector<128x128xbf16>, vector<8x128xf32> -> vector<8x128xf32>
    %cst_96 = arith.constant dense<0.000000e+00> : vector<8x128xf32>
    %196 = tpu.matmul %189, %193, %cst_96 {dimension_numbers = #tpu.dot_dimension_numbers<[1], [1], [0], [0], [0, 0, 1, 0], [], []>} : vector<8x128xbf16>, vector<128x128xbf16>, vector<8x128xf32> -> vector<8x128xf32>
    %cst_97 = arith.constant dense<0.000000e+00> : vector<8x128xf32>
    %197 = tpu.matmul %187, %194, %cst_97 {dimension_numbers = #tpu.dot_dimension_numbers<[1], [1], [0], [0], [0, 0, 1, 0], [], []>} : vector<8x128xbf16>, vector<128x128xbf16>, vector<8x128xf32> -> vector<8x128xf32>
    %c0_98 = arith.constant 0 : index
    %c0_99 = arith.constant 0 : index
    %198 = vector.load %arg11[%c0_98, %c0_99] : memref<8x128xf32, #tpu.memory_space<vmem>>, vector<8x128xf32>
    %199 = arith.subf %195, %196 : vector<8x128xf32>
    %200 = arith.addf %198, %199 : vector<8x128xf32>
    %c0_100 = arith.constant 0 : index
    %c0_101 = arith.constant 0 : index
    %201 = vector.load %arg11[%c0_100, %c0_101] : memref<8x128xf32, #tpu.memory_space<vmem>>, vector<8x128xf32>
    tpu.vector_store %arg11[%c0_100, %c0_101], %200 {strides = array<i32>} : memref<8x128xf32, #tpu.memory_space<vmem>>, vector<8x128xf32>,
    %c0_102 = arith.constant 0 : index
    %c0_103 = arith.constant 0 : index
    %202 = vector.load %arg12[%c0_102, %c0_103] : memref<8x128xf32, #tpu.memory_space<vmem>>, vector<8x128xf32>
    %203 = arith.subf %197, %195 : vector<8x128xf32>
    %204 = arith.subf %203, %196 : vector<8x128xf32>
    %205 = arith.addf %202, %204 : vector<8x128xf32>
    %c0_104 = arith.constant 0 : index
    %c0_105 = arith.constant 0 : index
    %206 = vector.load %arg12[%c0_104, %c0_105] : memref<8x128xf32, #tpu.memory_space<vmem>>, vector<8x128xf32>
    tpu.vector_store %arg12[%c0_104, %c0_105], %205 {strides = array<i32>} : memref<8x128xf32, #tpu.memory_space<vmem>>, vector<8x128xf32>,
    %207 = vector.extract_strided_slice %6 {offsets = [0, 6], sizes = [8, 1], strides = [1, 1]} : vector<8x8xf32> to vector<8x1xf32>
    %208 = vector.extract_strided_slice %8 {offsets = [0, 6], sizes = [8, 1], strides = [1, 1]} : vector<8x8xf32> to vector<8x1xf32>
    %209 = vector.broadcast %207 : vector<8x1xf32> to vector<8x128xf32>
    %210 = arith.mulf %209, %3 : vector<8x128xf32>
    %211 = vector.broadcast %208 : vector<8x1xf32> to vector<8x128xf32>
    %212 = arith.mulf %211, %4 : vector<8x128xf32>
    %213 = arith.subf %210, %212 : vector<8x128xf32>
    %214 = vector.broadcast %207 : vector<8x1xf32> to vector<8x128xf32>
    %215 = arith.mulf %214, %4 : vector<8x128xf32>
    %216 = vector.broadcast %208 : vector<8x1xf32> to vector<8x128xf32>
    %217 = arith.mulf %216, %3 : vector<8x128xf32>
    %218 = arith.addf %215, %217 : vector<8x128xf32>
    %219 = arith.addf %213, %218 : vector<8x128xf32>
    %220 = arith.truncf %219 : vector<8x128xf32> to vector<8x128xbf16>
    %221 = arith.truncf %213 : vector<8x128xf32> to vector<8x128xbf16>
    %222 = arith.truncf %218 : vector<8x128xf32> to vector<8x128xbf16>
    %c6 = arith.constant 6 : index
    %c0_106 = arith.constant 0 : index
    %c0_107 = arith.constant 0 : index
    %223 = vector.load %arg7[%c6, %c0_106, %c0_107] : memref<8x128x128xbf16, #tpu.memory_space<vmem>>, vector<1x128x128xbf16>
    %224 = vector.shape_cast %223 : vector<1x128x128xbf16> to vector<128x128xbf16>
    %c6_108 = arith.constant 6 : index
    %c0_109 = arith.constant 0 : index
    %c0_110 = arith.constant 0 : index
    %225 = vector.load %arg8[%c6_108, %c0_109, %c0_110] : memref<8x128x128xbf16, #tpu.memory_space<vmem>>, vector<1x128x128xbf16>
    %226 = vector.shape_cast %225 : vector<1x128x128xbf16> to vector<128x128xbf16>
    %227 = arith.addf %224, %226 : vector<128x128xbf16>
    %cst_111 = arith.constant dense<0.000000e+00> : vector<8x128xf32>
    %228 = tpu.matmul %221, %224, %cst_111 {dimension_numbers = #tpu.dot_dimension_numbers<[1], [1], [0], [0], [0, 0, 1, 0], [], []>} : vector<8x128xbf16>, vector<128x128xbf16>, vector<8x128xf32> -> vector<8x128xf32>
    %cst_112 = arith.constant dense<0.000000e+00> : vector<8x128xf32>
    %229 = tpu.matmul %222, %226, %cst_112 {dimension_numbers = #tpu.dot_dimension_numbers<[1], [1], [0], [0], [0, 0, 1, 0], [], []>} : vector<8x128xbf16>, vector<128x128xbf16>, vector<8x128xf32> -> vector<8x128xf32>
    %cst_113 = arith.constant dense<0.000000e+00> : vector<8x128xf32>
    %230 = tpu.matmul %220, %227, %cst_113 {dimension_numbers = #tpu.dot_dimension_numbers<[1], [1], [0], [0], [0, 0, 1, 0], [], []>} : vector<8x128xbf16>, vector<128x128xbf16>, vector<8x128xf32> -> vector<8x128xf32>
    %c0_114 = arith.constant 0 : index
    %c0_115 = arith.constant 0 : index
    %231 = vector.load %arg11[%c0_114, %c0_115] : memref<8x128xf32, #tpu.memory_space<vmem>>, vector<8x128xf32>
    %232 = arith.subf %228, %229 : vector<8x128xf32>
    %233 = arith.addf %231, %232 : vector<8x128xf32>
    %c0_116 = arith.constant 0 : index
    %c0_117 = arith.constant 0 : index
    %234 = vector.load %arg11[%c0_116, %c0_117] : memref<8x128xf32, #tpu.memory_space<vmem>>, vector<8x128xf32>
    tpu.vector_store %arg11[%c0_116, %c0_117], %233 {strides = array<i32>} : memref<8x128xf32, #tpu.memory_space<vmem>>, vector<8x128xf32>,
    %c0_118 = arith.constant 0 : index
    %c0_119 = arith.constant 0 : index
    %235 = vector.load %arg12[%c0_118, %c0_119] : memref<8x128xf32, #tpu.memory_space<vmem>>, vector<8x128xf32>
    %236 = arith.subf %230, %228 : vector<8x128xf32>
    %237 = arith.subf %236, %229 : vector<8x128xf32>
    %238 = arith.addf %235, %237 : vector<8x128xf32>
    %c0_120 = arith.constant 0 : index
    %c0_121 = arith.constant 0 : index
    %239 = vector.load %arg12[%c0_120, %c0_121] : memref<8x128xf32, #tpu.memory_space<vmem>>, vector<8x128xf32>
    tpu.vector_store %arg12[%c0_120, %c0_121], %238 {strides = array<i32>} : memref<8x128xf32, #tpu.memory_space<vmem>>, vector<8x128xf32>,
    %240 = vector.extract_strided_slice %6 {offsets = [0, 7], sizes = [8, 1], strides = [1, 1]} : vector<8x8xf32> to vector<8x1xf32>
    %241 = vector.extract_strided_slice %8 {offsets = [0, 7], sizes = [8, 1], strides = [1, 1]} : vector<8x8xf32> to vector<8x1xf32>
    %242 = vector.broadcast %240 : vector<8x1xf32> to vector<8x128xf32>
    %243 = arith.mulf %242, %3 : vector<8x128xf32>
    %244 = vector.broadcast %241 : vector<8x1xf32> to vector<8x128xf32>
    %245 = arith.mulf %244, %4 : vector<8x128xf32>
    %246 = arith.subf %243, %245 : vector<8x128xf32>
    %247 = vector.broadcast %240 : vector<8x1xf32> to vector<8x128xf32>
    %248 = arith.mulf %247, %4 : vector<8x128xf32>
    %249 = vector.broadcast %241 : vector<8x1xf32> to vector<8x128xf32>
    %250 = arith.mulf %249, %3 : vector<8x128xf32>
    %251 = arith.addf %248, %250 : vector<8x128xf32>
    %252 = arith.addf %246, %251 : vector<8x128xf32>
    %253 = arith.truncf %252 : vector<8x128xf32> to vector<8x128xbf16>
    %254 = arith.truncf %246 : vector<8x128xf32> to vector<8x128xbf16>
    %255 = arith.truncf %251 : vector<8x128xf32> to vector<8x128xbf16>
    %c7 = arith.constant 7 : index
    %c0_122 = arith.constant 0 : index
    %c0_123 = arith.constant 0 : index
    %256 = vector.load %arg7[%c7, %c0_122, %c0_123] : memref<8x128x128xbf16, #tpu.memory_space<vmem>>, vector<1x128x128xbf16>
    %257 = vector.shape_cast %256 : vector<1x128x128xbf16> to vector<128x128xbf16>
    %c7_124 = arith.constant 7 : index
    %c0_125 = arith.constant 0 : index
    %c0_126 = arith.constant 0 : index
    %258 = vector.load %arg8[%c7_124, %c0_125, %c0_126] : memref<8x128x128xbf16, #tpu.memory_space<vmem>>, vector<1x128x128xbf16>
    %259 = vector.shape_cast %258 : vector<1x128x128xbf16> to vector<128x128xbf16>
    %260 = arith.addf %257, %259 : vector<128x128xbf16>
    %cst_127 = arith.constant dense<0.000000e+00> : vector<8x128xf32>
    %261 = tpu.matmul %254, %257, %cst_127 {dimension_numbers = #tpu.dot_dimension_numbers<[1], [1], [0], [0], [0, 0, 1, 0], [], []>} : vector<8x128xbf16>, vector<128x128xbf16>, vector<8x128xf32> -> vector<8x128xf32>
    %cst_128 = arith.constant dense<0.000000e+00> : vector<8x128xf32>
    %262 = tpu.matmul %255, %259, %cst_128 {dimension_numbers = #tpu.dot_dimension_numbers<[1], [1], [0], [0], [0, 0, 1, 0], [], []>} : vector<8x128xbf16>, vector<128x128xbf16>, vector<8x128xf32> -> vector<8x128xf32>
    %cst_129 = arith.constant dense<0.000000e+00> : vector<8x128xf32>
    %263 = tpu.matmul %253, %260, %cst_129 {dimension_numbers = #tpu.dot_dimension_numbers<[1], [1], [0], [0], [0, 0, 1, 0], [], []>} : vector<8x128xbf16>, vector<128x128xbf16>, vector<8x128xf32> -> vector<8x128xf32>
    %c0_130 = arith.constant 0 : index
    %c0_131 = arith.constant 0 : index
    %264 = vector.load %arg11[%c0_130, %c0_131] : memref<8x128xf32, #tpu.memory_space<vmem>>, vector<8x128xf32>
    %265 = arith.subf %261, %262 : vector<8x128xf32>
    %266 = arith.addf %264, %265 : vector<8x128xf32>
    %c0_132 = arith.constant 0 : index
    %c0_133 = arith.constant 0 : index
    %267 = vector.load %arg11[%c0_132, %c0_133] : memref<8x128xf32, #tpu.memory_space<vmem>>, vector<8x128xf32>
    tpu.vector_store %arg11[%c0_132, %c0_133], %266 {strides = array<i32>} : memref<8x128xf32, #tpu.memory_space<vmem>>, vector<8x128xf32>,
    %c0_134 = arith.constant 0 : index
    %c0_135 = arith.constant 0 : index
    %268 = vector.load %arg12[%c0_134, %c0_135] : memref<8x128xf32, #tpu.memory_space<vmem>>, vector<8x128xf32>
    %269 = arith.subf %263, %261 : vector<8x128xf32>
    %270 = arith.subf %269, %262 : vector<8x128xf32>
    %271 = arith.addf %268, %270 : vector<8x128xf32>
    %c0_136 = arith.constant 0 : index
    %c0_137 = arith.constant 0 : index
    %272 = vector.load %arg12[%c0_136, %c0_137] : memref<8x128xf32, #tpu.memory_space<vmem>>, vector<8x128xf32>
    tpu.vector_store %arg12[%c0_136, %c0_137], %271 {strides = array<i32>} : memref<8x128xf32, #tpu.memory_space<vmem>>, vector<8x128xf32>,
    return
  }
  func.func @transform_0(%arg0: i32, %arg1: i32, %arg2: i32) -> (i32, i32, i32) {
    %c0_i32 = arith.constant 0 : i32
    %c0_i32_0 = arith.constant 0 : i32
    return %arg2, %arg0, %c0_i32 : i32, i32, i32
  }
  func.func @transform_1(%arg0: i32, %arg1: i32, %arg2: i32) -> (i32, i32, i32) {
    %c0_i32 = arith.constant 0 : i32
    %c0_i32_0 = arith.constant 0 : i32
    return %arg2, %arg0, %c0_i32 : i32, i32, i32
  }
  func.func @transform_2(%arg0: i32, %arg1: i32, %arg2: i32) -> (i32, i32) {
    %c0_i32 = arith.constant 0 : i32
    %c0_i32_0 = arith.constant 0 : i32
    return %arg0, %c0_i32 : i32, i32
  }
  func.func @transform_3(%arg0: i32, %arg1: i32, %arg2: i32) -> (i32, i32) {
    %c0_i32 = arith.constant 0 : i32
    %c0_i32_0 = arith.constant 0 : i32
    return %arg0, %c0_i32 : i32, i32
  }
  func.func @transform_4(%arg0: i32, %arg1: i32, %arg2: i32) -> (i32, i32, i32) {
    %c0_i32 = arith.constant 0 : i32
    %c0_i32_0 = arith.constant 0 : i32
    return %arg2, %arg1, %c0_i32 : i32, i32, i32
  }
  func.func @transform_5(%arg0: i32, %arg1: i32, %arg2: i32) -> (i32, i32, i32) {
    %c0_i32 = arith.constant 0 : i32
    %c0_i32_0 = arith.constant 0 : i32
    return %arg2, %arg1, %c0_i32 : i32, i32, i32
  }
  func.func @transform_6(%arg0: i32, %arg1: i32, %arg2: i32) -> (i32, i32) {
    %c0_i32 = arith.constant 0 : i32
    %c0_i32_0 = arith.constant 0 : i32
    return %c0_i32, %arg1 : i32, i32
  }
  func.func @transform_7(%arg0: i32, %arg1: i32, %arg2: i32) -> (i32, i32) {
    %c0_i32 = arith.constant 0 : i32
    %c0_i32_0 = arith.constant 0 : i32
    return %c0_i32, %arg1 : i32, i32
  }
  func.func @transform_8(%arg0: i32, %arg1: i32, %arg2: i32) -> (i32, i32) {
    %c0_i32 = arith.constant 0 : i32
    return %arg0, %arg1 : i32, i32
  }
  func.func @transform_9(%arg0: i32, %arg1: i32, %arg2: i32) -> (i32, i32) {
    %c0_i32 = arith.constant 0 : i32
    return %arg0, %arg1 : i32, i32
  }
}

</mosaic_0001>

<bundles_post_ra>
// kernel: tpu_custom_call.1
= control target key start
LH: loop header
LB: loop body
LE: loop exit
PB: predicated region body
PF: predicated region fallthrough
CT: control target
= control target key end

     0   :  { %s7026_s0 = inlined_call_operand.hbm [shape: f32[2,8,8], index: 0, kind: input, shape index: {}]   ;;  %s7027_s1 = inlined_call_operand.hbm [shape: f32[2,8,8], index: 1, kind: input, shape index: {}]   ;;  %s7028_s2 = inlined_call_operand.hbm [shape: f32[8,128], index: 2, kind: input, shape index: {}]   ;;  %s7029_s3 = inlined_call_operand.vmem [shape: f32[8,128], index: 3, kind: input, shape index: {}]   ;;  %s7030_s4 = inlined_call_operand.hbm [shape: bf16[16,128,128], index: 4, kind: input, shape index: {}]   ;;  %s7031_s5 = inlined_call_operand.hbm [shape: bf16[16,128,128], index: 5, kind: input, shape index: {}]   ;;  %s7032_s6 = inlined_call_operand.vmem [shape: f32[1,128], index: 6, kind: input, shape index: {}]   ;;  %s7033_s7 = inlined_call_operand.vmem [shape: f32[1,128], index: 7, kind: input, shape index: {}]   ;;  %s7034_s8 = inlined_call_operand.hbm [shape: f32[8,128], index: 8, kind: output, shape index: {0}]   ;;  %s7035_s9 = inlined_call_operand.hbm [shape: f32[8,128], index: 9, kind: output, shape index: {1}]  }
   0x1   :  { %7051 = sst [smem:[#allocation23_spill]] %s7026_s0 }
   0x2   :  { %7052 = sst [smem:[#allocation24_spill]] %s7028_s2 }
   0x3   :  { %7053 = sst [smem:[#allocation25_spill]] %s7029_s3 }
   0x4   :  { %7054 = sst [smem:[#allocation26_spill]] %s7030_s4 }
   0x5   :  { %7055 = sst [smem:[#allocation27_spill]] %s7033_s7 }
   0x6   :  { %7056 = sst [smem:[#allocation28_spill]] %s7034_s8 }
   0x7   :  { %7057 = sst [smem:[#allocation29_spill]] %s7035_s9 }
   0x8   :  { %15 = vsyncpa [#allocation3], 0 }
   0x9   :  { %17 = vsyncpa [#allocation3 + $0x1], 0 }
   0xa   :  { %18 = vsyncpa [#allocation6], 0 }
   0xb   :  { %20 = vsyncpa [#allocation6 + $0x1], 0 }
   0xc   :  { %21 = vsyncpa [#allocation9], 0 }
   0xd   :  { %23 = vsyncpa [#allocation9 + $0x1], 0 }
   0xe   :  { %24 = vsyncpa [#allocation4], 0 }
   0xf   :  { %25 = vsyncpa [#allocation13], 0  ;;  %s5290_s30 = smov 0   ;;  %s5292_s10 = smov 0  }
  0x10   :  { %s5294_s11 = smov 0   ;;  %s5296_s12 = smov 0  }
  0x11   :  { %s5298_s13 = smov 0   ;;  %s5300_s14 = smov 0  }
  0x12 LB: > { %7058 = sst [smem:[#allocation20_spill]] %s5207_s11  ;;  %s5319_s15 = sadd.s32 4294967295, %s5219_s14   ;;  %s5219_s14 = sphi %s5300_s14, %s31_s14   ;;  %s5215_s13 = sphi %s5298_s13, %s7094_s13   ;;  %s5211_s12 = sphi %s5296_s12, %s7093_s12   ;;  %s5207_s11 = sphi %s5294_s11, %s7089_s11   ;;  %s5203_s10 = sphi %s5292_s10, %s7092_s10   ;;  %s5199_s30 = sphi %s5290_s30, %s7091_s30  }
  0x13   : > { %p66_p0 = scmp.ne.s32.totalorder %s5207_s11, %s5203_s10  ;;  %p67_p1 = scmp.eq.s32.totalorder %s5219_s14, 0 }
  0x14   : > { %p72_p2 = scmp.ne.s32.totalorder %s5203_s10, %s5199_s30  ;;  %p7036_p3 = scmp.eq.s32.totalorder %s5319_s15, 0 }
  0x15   : > { %p68_p4 = por %p67_p1, %p66_p0  ;;  %p3547_p5 = scmp.ge.s32.totalorder %s5219_s14, 1 }
  0x16   : > { %p5330_p6 = por %p7036_p3, %p72_p2  ;;  %p327_p7 = scmp.lt.s32.totalorder %s5219_s14, 3 }
  0x17   : > { %s5221_s19 = smov [#allocation7]   ;;  %p4734_p10 = scmp.lt.s32.totalorder %s5219_s14, 2 }
  0x18   : > { %s7059_s17 = scalar_select %p5330_p6, 1, 0 }
  0x19   : > { %p5335_p8 = pnand %p3547_p5, %p327_p7  ;;  %s342_s20 = sshll.u32 %s5221_s19, 4  ;;  %s343_s20 = int_to_ptr.vmem [resolvable:$true] %s342_s20 }
  0x1a   : > { %s5343_s21 = sand.u32 1, %s5207_s11   ;;  %p5351_p12 = pnand %p4734_p10, %p68_p4 }
  0x1b   : > { %s7060_s18 = scalar_select %p5335_p8, 1, 0 }
  0x1c   : > { %p4716_p9 = pneg %p5335_p8  ;;  %s7063_s2 = sld [smem:[#allocation24_spill]] }
  0x1d   : > { %s7062_s23 = scalar_select %p5351_p12, 1, 0 }
  0x1e   : > { %p5347_p11 = pnand %p4716_p9, %p7036_p3 }
  0x20   : > { %p4951_p0 = pneg %p5347_p11 }
  0x22   : > { %s4949_s27 = scalar_lea.hbm %s7063_s2, 128 }
  0x23   : > { %p4950_p13 = scmp.ne.s32.totalorder %s7063_s2, %s4949_s27  ;;  %p4956_p4 = scmp.lt.u32.totalorder %s4949_s27, %s7063_s2 }
  0x25   : > { %p4952_p1 = pnand %p4951_p0, %p4950_p13 }
  0x27   : > { %p4953_p2 = pneg %p4952_p1 }
  0x29   : > { %p4958_p5 = pnand %p4956_p4, %p4953_p2 }
  0x2b   : > { %4961 = shalt.err (!%p4958_p5)
}
  0x2c   : > { %s4962_s16 = scalar_lea.vmem %s343_s20, 128  ;;  %p4970_p3 = scmp.lt.s32.totalorder %s343_s20, %s343_s20 }
  0x2d   : > { %p4963_p7 = scmp.ne.s32.totalorder %s343_s20, %s4962_s16  ;;  %p4971_p6 = scmp.lt.s32.totalorder %s4962_s16, %s4962_s16 }
  0x2f   : > { %p4965_p9 = pnand %p4963_p7, %p4951_p0  ;;  %p4972_p8 = por %p4971_p6, %p4970_p3 }
  0x31   : > { %p4966_p10 = pneg %p4965_p9 }
  0x33   : > { %p4973_p12 = pnand %p4972_p8, %p4966_p10 }
  0x35   : > { %4976 = shalt.err (!%p4973_p12)
}
  0x36   : > { %4719 = dma.hbm_to_vmem [thread:$0]  (!%p5347_p11), %s7063_s2, 128, %s343_s20, [#allocation6]  }
  0x37   : > { %s43_s16 = sadd.s32 1, %s5215_s13  ;;  %s7041_s27 = sshll.u32 %s5343_s21, 9 }
  0x38   : > { %p44_p3 = scmp.ge.s32.totalorder %s43_s16, 2  ;;  %s7042_s28 = sshll.u32 %s5215_s13, 13 }
  0x39   : > { %s7065_s4 = sld [smem:[#allocation26_spill]]  ;;  %s414_s19 = scalar_lea.vmem [#allocation8], %s7041_s27 }
  0x3a   : > { %s7096_s16 = smov (%p44_p3, %s43_s16), 0  ;;  %s424_s20 = sshll.u32 %s414_s19, 4  ;;  %s5388_s20 = int_to_ptr.vmem [resolvable:$true] %s424_s20 }
  0x3b   : > { %7064 = sst [smem:[#allocation21_spill]] %s7096_s16  ;;  %s54_s25 = ssub.s32 %s5215_s13, %s7096_s16 }
  0x3c   : > { %p57_p6 = scmp.eq.s32.totalorder %s54_s25, 0  ;;  %s7066_s26 = sadd.s32 1, %s5207_s11 }
  0x3d   : > { %s7068_s2 = sand.u32 1, %s5219_s14   ;;  %p7069_p11 = scmp.ne.s32.totalorder %s7062_s23, 0 }
  0x3e   : > { %s5393_s24 = scalar_select %p57_p6, %s5207_s11, %s7066_s26  }
  0x3f   : > { %s5382_s30 = scalar_lea.hbm %s7065_s4, %s7042_s28  ;;  %s5397_s9 = scalar_lea.sflag [#allocation9], %s7068_s2 }
  0x40   : > { %7067 = sst [smem:[#allocation22_spill]] %s5393_s24  ;;  %s4977_s22 = scalar_lea.hbm %s5382_s30, 8192 }
  0x41   : > { %p4978_p8 = scmp.ne.s32.totalorder %s5382_s30, %s4977_s22  ;;  %p5403_p12 = pneg %p7069_p11 }
  0x42   : > { %s4982_s25 = scalar_lea.hbm %s7065_s4, 16384  ;;  %p4983_p1 = scmp.lt.u32.totalorder %s5382_s30, %s7065_s4 }
  0x43   : > { %p4980_p13 = pnand %p5403_p12, %p4978_p8  ;;  %p4984_p2 = scmp.lt.u32.totalorder %s4982_s25, %s4977_s22 }
  0x44   : > { %p4986_p5 = scmp.lt.u32.totalorder %s4977_s22, %s5382_s30 }
  0x45   : > { %p4981_p0 = pneg %p4980_p13  ;;  %p4985_p4 = por %p4984_p2, %p4983_p1 }
  0x47   : > { %p4987_p7 = por %p4986_p5, %p4985_p4 }
  0x49   : > { %p4988_p9 = pnand %p4987_p7, %p4981_p0 }
  0x4b   : > { %4991 = shalt.err (!%p4988_p9)
}
  0x4c   : > { %s4992_s2 = scalar_lea.vmem %s5388_s20, 8192  ;;  %s5222_s27 = smov [#allocation8]  }
  0x4d   : > { %p4993_p10 = scmp.ne.s32.totalorder %s5388_s20, %s4992_s2  ;;  %s4997_s19 = sshll.u32 %s5222_s27, 4  ;;  %s4998_s19 = int_to_ptr.vmem [resolvable:$false] %s4997_s19 }
  0x4e   : > { %s4999_s28 = scalar_lea.vmem %s4998_s19, 16384  ;;  %p5000_p8 = scmp.lt.s32.totalorder %s5388_s20, %s4998_s19 }
  0x4f   : > { %p4995_p3 = pnand %p4993_p10, %p5403_p12  ;;  %p5001_p13 = scmp.lt.s32.totalorder %s4999_s28, %s4992_s2 }
  0x51   : > { %p4996_p6 = pneg %p4995_p3  ;;  %p5002_p1 = por %p5001_p13, %p5000_p8 }
  0x53   : > { %p5003_p2 = pnand %p5002_p1, %p4996_p6 }
  0x55   : > { %5006 = shalt.err (!%p5003_p2)
}
  0x56   : > { %s7047_s22 = smov 64   ;;  %s7048_s25 = smov 4  }
  0x57   : > { %4729 = dma.hbm_to_vmem [thread:$0]  (!%p7069_p11), %s5382_s30, 8192, %s5388_s20, %s5397_s9, %s7047_s22, %s7047_s22, %s7048_s25  }
  0x58   : > { %s7071_s26 = sshll.u32 %s5215_s13, 13  ;;  %s7072_s28 = sshll.u32 %s5343_s21, 9 }
  0x59   : > { %s5435_s19 = scalar_lea.hbm %s7031_s5, %s7071_s26  ;;  %s438_s4 = scalar_lea.vmem [#allocation10], %s7072_s28 }
  0x5a   : > { %s448_s16 = sshll.u32 %s438_s4, 4  ;;  %s7049_s24 = sshll.u32 %s5343_s21, 3  ;;  %s5439_s16 = int_to_ptr.vmem [resolvable:$true] %s448_s16 }
  0x5b   : > { %s3554_s11 = sshll.u32 %s5215_s13, 7  ;;  %s7073_s0 = sld [smem:[#allocation23_spill]] }
  0x5c   : > { %s376_s30 = scalar_lea.vmem [#allocation2], %s7049_s24  ;;  %s5455_s2 = scalar_lea.hbm %s7027_s1, %s3554_s11 }
  0x5d   : > { %s384_s20 = sshll.u32 %s376_s30, 4  ;;  %s373_s27 = scalar_lea.sflag [#allocation3], %s5343_s21  ;;  %s5450_s20 = int_to_ptr.vmem [resolvable:$true] %s384_s20 }
  0x61   : > { %s5446_s7 = scalar_lea.hbm %s7073_s0, %s3554_s11  ;;  %s5012_s22 = scalar_lea.hbm %s7073_s0, 256 }
  0x62   : > { %s5007_s28 = scalar_lea.hbm %s5446_s7, 128  ;;  %p5013_p7 = scmp.lt.u32.totalorder %s5446_s7, %s7073_s0 }
  0x63   : > { %p5008_p0 = scmp.ne.s32.totalorder %s5446_s7, %s5007_s28  ;;  %p5014_p9 = scmp.lt.u32.totalorder %s5012_s22, %s5007_s28 }
  0x64   : > { %p5016_p3 = scmp.lt.u32.totalorder %s5007_s28, %s5446_s7 }
  0x65   : > { %p5010_p4 = pnand %p5008_p0, %p5403_p12  ;;  %p5015_p10 = por %p5014_p9, %p5013_p7 }
  0x67   : > { %p5011_p5 = pneg %p5010_p4  ;;  %p5017_p6 = por %p5016_p3, %p5015_p10 }
  0x69   : > { %p5018_p8 = pnand %p5017_p6, %p5011_p5 }
  0x6b   : > { %5021 = shalt.err (!%p5018_p8)
}
  0x6c   : > { %s5022_s11 = scalar_lea.vmem %s5450_s20, 128  ;;  %s5225_s30 = smov [#allocation2]  }
  0x6d   : > { %p5023_p13 = scmp.ne.s32.totalorder %s5450_s20, %s5022_s11  ;;  %s5027_s26 = sshll.u32 %s5225_s30, 4  ;;  %s5028_s26 = int_to_ptr.vmem [resolvable:$false] %s5027_s26 }
  0x6e   : > { %s5029_s24 = scalar_lea.vmem %s5028_s26, 256  ;;  %p5030_p0 = scmp.lt.s32.totalorder %s5450_s20, %s5028_s26 }
  0x6f   : > { %p5025_p1 = pnand %p5023_p13, %p5403_p12  ;;  %p5031_p4 = scmp.lt.s32.totalorder %s5029_s24, %s5022_s11 }
  0x71   : > { %p5026_p2 = pneg %p5025_p1  ;;  %p5032_p7 = por %p5031_p4, %p5030_p0 }
  0x73   : > { %p5033_p9 = pnand %p5032_p7, %p5026_p2 }
  0x75   : > { %5036 = shalt.err (!%p5033_p9)
}
  0x76   : > { %4723 = dma.hbm_to_vmem [thread:$0]  (!%p7069_p11), %s5446_s7, 128, %s5450_s20, %s373_s27  }
  0x77   : > { %s7074_s22 = sshll.u32 %s5343_s21, 3  ;;  %s7075_s28 = sand.u32 1, %s5219_s14  }
  0x78   : > { %s395_s25 = scalar_lea.vmem [#allocation5], %s7074_s22  ;;  %s392_s3 = scalar_lea.sflag [#allocation6], %s7075_s28 }
  0x79   : > { %s403_s4 = sshll.u32 %s395_s25, 4  ;;  %s5037_s8 = scalar_lea.hbm %s5455_s2, 128  ;;  %s404_s4 = int_to_ptr.vmem [resolvable:$true] %s403_s4 }
  0x7a   : > { %p5038_p5 = scmp.ne.s32.totalorder %s5455_s2, %s5037_s8  ;;  %s5042_s26 = scalar_lea.hbm %s7027_s1, 256 }
  0x7b   : > { %p5043_p6 = scmp.lt.u32.totalorder %s5455_s2, %s7027_s1  ;;  %p5044_p8 = scmp.lt.u32.totalorder %s5042_s26, %s5037_s8 }
  0x7c   : > { %p5040_p10 = pnand %p5038_p5, %p5403_p12  ;;  %p5046_p1 = scmp.lt.u32.totalorder %s5037_s8, %s5455_s2 }
  0x7d   : > { %p5045_p13 = por %p5044_p8, %p5043_p6 }
  0x7e   : > { %p5041_p3 = pneg %p5040_p10 }
  0x7f   : > { %p5047_p2 = por %p5046_p1, %p5045_p13 }
  0x81   : > { %p5048_p0 = pnand %p5047_p2, %p5041_p3 }
  0x83   : > { %5051 = shalt.err (!%p5048_p0)
}
  0x84   : > { %s5052_s7 = scalar_lea.vmem %s404_s4, 128  ;;  %s5226_s21 = smov [#allocation5]  }
  0x85   : > { %p5053_p4 = scmp.ne.s32.totalorder %s404_s4, %s5052_s7  ;;  %s5057_s20 = sshll.u32 %s5226_s21, 4  ;;  %s5058_s20 = int_to_ptr.vmem [resolvable:$false] %s5057_s20 }
  0x86   : > { %s5059_s27 = scalar_lea.vmem %s5058_s20, 256  ;;  %p5060_p5 = scmp.lt.s32.totalorder %s404_s4, %s5058_s20 }
  0x87   : > { %p5055_p7 = pnand %p5053_p4, %p5403_p12  ;;  %p5061_p10 = scmp.lt.s32.totalorder %s5059_s27, %s5052_s7 }
  0x89   : > { %p5056_p9 = pneg %p5055_p7  ;;  %p5062_p11 = por %p5061_p10, %p5060_p5 }
  0x8b   : > { %p5063_p6 = pnand %p5062_p11, %p5056_p9 }
  0x8d   : > { %5066 = shalt.err (!%p5063_p6)
}
  0x8e   : > { %p7076_p8 = scmp.ne.s32.totalorder %s7062_s23, 0  ;;  %s5067_s0 = scalar_lea.hbm %s5435_s19, 8192 }
  0x8f   : > { %p5068_p3 = scmp.ne.s32.totalorder %s5435_s19, %s5067_s0  ;;  %s5072_s28 = scalar_lea.hbm %s7031_s5, 16384 }
  0x90   : > { %4726 = dma.hbm_to_vmem [thread:$0]  (!%p7076_p8), %s5455_s2, 128, %s404_s4, %s392_s3  }
  0x91   : > { %p5070_p13 = pnand %p5068_p3, %p5403_p12  ;;  %p5073_p11 = scmp.lt.u32.totalorder %s5435_s19, %s7031_s5 }
  0x92   : > { %p5074_p2 = scmp.lt.u32.totalorder %s5072_s28, %s5067_s0  ;;  %p5076_p4 = scmp.lt.u32.totalorder %s5067_s0, %s5435_s19 }
  0x93   : > { %p5071_p1 = pneg %p5070_p13 }
  0x94   : > { %p5075_p0 = por %p5074_p2, %p5073_p11 }
  0x96   : > { %p5077_p7 = por %p5076_p4, %p5075_p0 }
  0x98   : > { %p5078_p9 = pnand %p5077_p7, %p5071_p1 }
  0x9a   : > { %5081 = shalt.err (!%p5078_p9)
}
  0x9b   : > { %s5082_s2 = scalar_lea.vmem %s5439_s16, 8192  ;;  %s5227_s4 = smov [#allocation10]  }
  0x9c   : > { %p5083_p5 = scmp.ne.s32.totalorder %s5439_s16, %s5082_s2  ;;  %s5087_s3 = sshll.u32 %s5227_s4, 4  ;;  %s5088_s3 = int_to_ptr.vmem [resolvable:$false] %s5087_s3 }
  0x9d   : > { %s5089_s30 = scalar_lea.vmem %s5088_s3, 16384  ;;  %p5090_p3 = scmp.lt.s32.totalorder %s5439_s16, %s5088_s3 }
  0x9e   : > { %p5085_p10 = pnand %p5083_p5, %p5403_p12  ;;  %p5091_p13 = scmp.lt.s32.totalorder %s5089_s30, %s5082_s2 }
  0xa0   : > { %p5086_p6 = pneg %p5085_p10  ;;  %p5092_p11 = por %p5091_p13, %p5090_p3 }
  0xa2   : > { %p5093_p2 = pnand %p5092_p11, %p5086_p6 }
  0xa4   : > { %5096 = shalt.err (!%p5093_p2)
}
  0xa5   : > { %s7077_s26 = smov 4   ;;  %s7078_s24 = smov 64  }
  0xa6   : > { %4732 = dma.hbm_to_vmem [thread:$0]  (!%p7076_p8), %s5435_s19, 8192, %s5439_s16, %s5397_s9, %s7078_s24, %s7078_s24, %s7077_s26  }
  0xa7   : > { %p7079_p12 = scmp.ne.s32.totalorder %s7060_s18, 0 }
  0xa8   : > { %s462_s29 = sand.u32 (!%p7079_p12), 1, %s5203_s10   ;;  %p7080_p1 = scmp.ne.s32.totalorder (!%p7079_p12), %s7059_s17, 0 }
  0xa9   : > { %460 = sbr.rel (%p7079_p12) target bundleno = 1305 (0x519), region = 52  ;;  %s3566_s7 = sshll.u32 (!%p7079_p12), %s462_s29, 3 }
  0xaa   : > { %s463_s21 = scalar_lea.sflag (!%p7079_p12), [#allocation3], %s462_s29  ;;  %s5528_s20 = scalar_lea.vmem (!%p7079_p12), [#allocation2], %s3566_s7 }
  0xb0   : > { %5174 = dma.done.wait (%p7080_p1), %s463_s21, 128  }
  0xb1   : > { %5176 = vsyncadd (%p7080_p1), %s463_s21, 4294967168  ;;  %s471_s23 = sand.u32 1, %s5319_s15   ;;  %s5535_s9 = scalar_lea.vmem [#allocation5], %s3566_s7 }
  0xb2   : > { %s472_s27 = scalar_lea.sflag [#allocation6], %s471_s23 }
  0xb3   : > { %5178 = dma.done.wait (%p7080_p1), %s472_s27, 128  }
  0xb4   : > { %5180 = vsyncadd (%p7080_p1), %s472_s27, 4294967168  ;;  %p7081_p8 = scmp.eq.s32.totalorder %s5319_s15, 0 }
  0xb6   : > { %5182 = dma.done.wait (%p7081_p8), [#allocation6], 128   ;;  %p7082_p0 = pmov %p7081_p8 }
  0xb7   : > { %s3569_s18 = sshll.u32 %s462_s29, 9  ;;  %s485_s16 = scalar_lea.sflag [#allocation9], %s471_s23 }
  0xb8   : > { %5184 = vsyncadd (%p7082_p0), [#allocation6], 4294967168  ;;  %s5545_s19 = scalar_lea.vmem [#allocation8], %s3569_s18 }
  0xb9   : > { %5186 = dma.done.wait (%p7080_p1), %s485_s16, 16384  }
  0xba   : > { %5188 = vsyncadd (%p7080_p1), %s485_s16, 4294950912  ;;  %s5551_s0 = scalar_lea.vmem [#allocation10], %s3569_s18  ;;  %p3571_p4 = scmp.ne.s32.totalorder %s5211_s12, 0 }
  0xbb   : > { %v3572_v0 = vld [vmem:[%s7032_s6] ss:$0 sm:$0xff] (!%p3571_p4)  ;;  %s7083_s11 = sld [smem:[#allocation27_spill]] (!%p3571_p4) }
  0xbc   : > { %570 = sbr.rel (%p3571_p4) target bundleno = 195 (0xc3), region = 76  ;;  %578 = vst [vmem:[#allocation11] sm:$0xff] (!%p3571_p4), %v3572_v0 }
  0xc1   : > { %v3573_v1 = vld [vmem:[%s7083_s11] ss:$0 sm:$0xff] (!%p3571_p4) }
  0xc2   : > { %586 = vst [vmem:[#allocation12] sm:$0xff] (!%p3571_p4), %v3573_v1 }
  0xc3 PF: > { %v5561_v2 = vld [vmem:[%s5528_s20] sm:$0xff]  ;;  %v5228_v3 = vmov 0   ;;  %v5564_v4 = vld [vmem:[%s5535_s9] sm:$0xff]  ;;  %v5229_v5 = vmov 1   ;;  %v5230_v14 = vmov 0.0   ;;  %vm5231_vm0 = vmmov 0  }
  0xc4   : > { %4803 = vset.pattern.permute.xlu0 %v5228_v3  ;;  %4804 = vset.pattern.permute.xlu1 %v5229_v5  ;;  %v611_v6 = vld [vmem:[%s5545_s19] sm:$0xf]  ;;  %v612_v7 = vld [vmem:[%s5545_s19 + $0x4] sm:$0xf]  ;;  %v5573_v12 = vld [vmem:[%s5545_s19 + $0x8] sm:$0xf] }
  0xc5   : > { %v627_v8 = vld [vmem:[%s5551_s0] sm:$0xf]  ;;  %593 = vperm.xlu0 %4803, %v5561_v2   ;;  %933 = vperm.xlu1 %4804, %v5561_v2   ;;  %v3574_v9 = vcombine.low %v611_v6, %v612_v7  ;;  %v628_v10 = vld [vmem:[%s5551_s0 + $0x4] sm:$0xf]  ;;  %v5576_v13 = vld [vmem:[%s5545_s19 + $0xc] sm:$0xf] }
  0xc6   : > { %v643_v11 = vadd.bf16 %v627_v8, %v611_v6  ;;  %4216 = vmatprep.subr.bf16.mxu0 %v5230_v14  ;;  %4236 = vmatprep.subr.bf16.mxu1 %v5230_v14  ;;  %v644_v15 = vadd.bf16 %v628_v10, %v612_v7  ;;  %v3582_v16 = vcombine.low %v627_v8, %v628_v10  ;;  %v629_v17 = vld [vmem:[%s5551_s0 + $0x8] sm:$0xf]  ;;  %v630_v18 = vld [vmem:[%s5551_s0 + $0xc] sm:$0xf]  ;;  %v615_v19 = vld [vmem:[%s5545_s19 + $0x10] sm:$0xf] }
  0xc7   : > { %4217 = vmatpush3.bf16.xpose.msra.mxu0 %v3574_v9  ;;  %v645_v20 = vadd.bf16 %v629_v17, %v5573_v12  ;;  %v646_v21 = vadd.bf16 %v630_v18, %v5576_v13  ;;  %v616_v22 = vld [vmem:[%s5545_s19 + $0x14] sm:$0xf]  ;;  %v631_v23 = vld [vmem:[%s5551_s0 + $0x10] sm:$0xf]  ;;  %v617_v27 = vld [vmem:[%s5545_s19 + $0x18] sm:$0xf]  ;;  %v3575_v39 = vcombine.low %v5573_v12, %v5576_v13  ;;  %v3583_v45 = vcombine.low %v629_v17, %v630_v18 }
  0xc8   : > { %v632_v24 = vld [vmem:[%s5551_s0 + $0x14] sm:$0xf]  ;;  %4237 = vmatpush3.bf16.xpose.msra.mxu1 %v3582_v16  ;;  %v5588_v25 = vcombine.low %v643_v11, %v644_v15  ;;  %4218 = vmatprep.subr.bf16.mxu0 %v5230_v14  ;;  %v647_v26 = vadd.bf16 %v631_v23, %v615_v19  ;;  %v618_v28 = vld [vmem:[%s5545_s19 + $0x1c] sm:$0xf]  ;;  %v633_v29 = vld [vmem:[%s5551_s0 + $0x18] sm:$0xf]  ;;  %v3576_v61 = vcombine.low %v615_v19, %v616_v22 }
  0xc9   : > { %599 = vperm.xlu0 %4803, %v5564_v4   ;;  %938 = vperm.xlu1 %4804, %v5564_v4   ;;  %v648_v30 = vadd.bf16 %v632_v24, %v616_v22  ;;  %v634_v31 = vld [vmem:[%s5551_s0 + $0x1c] sm:$0xf]  ;;  %v619_v32 = vld [vmem:[%s5545_s19 + $0x20] sm:$0xf]  ;;  %v620_v33 = vld [vmem:[%s5545_s19 + $0x24] sm:$0xf]  ;;  %v649_v34 = vadd.bf16 %v633_v29, %v617_v27  ;;  %v5622_v60 = vcombine.low %v645_v20, %v646_v21 }
  0xca   : > { %4238 = vmatprep.subr.bf16.mxu1 %v5230_v14  ;;  %v650_v35 = vadd.bf16 %v634_v31, %v618_v28  ;;  %v635_v36 = vld [vmem:[%s5551_s0 + $0x20] sm:$0xf]  ;;  %v636_v37 = vld [vmem:[%s5551_s0 + $0x24] sm:$0xf]  ;;  %v621_v38 = vld [vmem:[%s5545_s19 + $0x28] sm:$0xf]  ;;  %4232 = vmatprep.mubr.msk.bf16.mxu0 %vm5231_vm0, %v5230_v14  ;;  %v3584_v62 = vcombine.low %v631_v23, %v632_v24  ;;  %v3577_v0 = vcombine.low %v617_v27, %v618_v28 }
  0xcb   : > { %v651_v40 = vadd.bf16 %v635_v36, %v619_v32  ;;  %v652_v41 = vadd.bf16 %v636_v37, %v620_v33  ;;  %v622_v42 = vld [vmem:[%s5545_s19 + $0x2c] sm:$0xf]  ;;  %v637_v43 = vld [vmem:[%s5551_s0 + $0x28] sm:$0xf]  ;;  %v623_v48 = vld [vmem:[%s5545_s19 + $0x30] sm:$0xf]  ;;  %4252 = vmatprep.mubr.msk.bf16.mxu1 %vm5231_vm0, %v5230_v14  ;;  %v5626_v63 = vcombine.low %v647_v26, %v648_v30  ;;  %v3585_v1 = vcombine.low %v633_v29, %v634_v31 }
  0xcc   : > { %v638_v44 = vld [vmem:[%s5551_s0 + $0x2c] sm:$0xf]  ;;  %v653_v46 = vadd.bf16 %v637_v43, %v621_v38  ;;  %v639_v49 = vld [vmem:[%s5551_s0 + $0x30] sm:$0xf]  ;;  %v624_v50 = vld [vmem:[%s5545_s19 + $0x34] sm:$0xf]  ;;  %v5630_v3 = vcombine.low %v649_v34, %v650_v35  ;;  %v3578_v5 = vcombine.low %v619_v32, %v620_v33  ;;  %v3586_v6 = vcombine.low %v635_v36, %v636_v37 }
  0xcd   : > { %v654_v47 = vadd.bf16 %v638_v44, %v622_v42  ;;  %v640_v51 = vld [vmem:[%s5551_s0 + $0x34] sm:$0xf]  ;;  %v655_v52 = vadd.bf16 %v639_v49, %v623_v48  ;;  %v625_v54 = vld [vmem:[%s5545_s19 + $0x38] sm:$0xf]  ;;  %v626_v56 = vld [vmem:[%s5545_s19 + $0x3c] sm:$0xf]  ;;  %v5634_v7 = vcombine.low %v651_v40, %v652_v41  ;;  %v3579_v8 = vcombine.low %v621_v38, %v622_v42 }
  0xce   : > { %v656_v53 = vadd.bf16 %v640_v51, %v624_v50  ;;  %v641_v55 = vld [vmem:[%s5551_s0 + $0x38] sm:$0xf]  ;;  %v642_v57 = vld [vmem:[%s5551_s0 + $0x3c] sm:$0xf]  ;;  %v3587_v9 = vcombine.low %v637_v43, %v638_v44  ;;  %v3580_v11 = vcombine.low %v623_v48, %v624_v50  ;;  %v3588_v12 = vcombine.low %v639_v49, %v640_v51  ;;  %s7084_s2 = sld [smem:[#allocation25_spill]]  ;;  %s5238_s30 = smov [#allocation11]  }
  0xcf   : > { %4219 = vmatpush3.bf16.xpose.msra.mxu0 %v3575_v39  ;;  %v657_v58 = vadd.bf16 %v641_v55, %v625_v54  ;;  %v658_v59 = vadd.bf16 %v642_v57, %v626_v56  ;;  %v5638_v10 = vcombine.low %v653_v46, %v654_v47  ;;  %v3581_v15 = vcombine.low %v625_v54, %v626_v56  ;;  %v5652_v21 = vld [vmem:[#allocation7] sm:$0xff]  ;;  %v5664_v29 = vld [vmem:[%s5545_s19 + $0x40] sm:$0xf]  ;;  %v5667_v30 = vld [vmem:[%s5545_s19 + $0x44] sm:$0xf]  ;;  %s3329_s26 = sshll.u32 %s5238_s30, 4  ;;  %s3330_s26 = int_to_ptr.vmem [resolvable:$true] %s3329_s26 }
  0xd0   : > { %4239 = vmatpush3.bf16.xpose.msra.mxu1 %v3583_v45  ;;  %4220 = vmatprep.subr.bf16.mxu0 %v5230_v14  ;;  %v5642_v13 = vcombine.low %v655_v52, %v656_v53  ;;  %v3589_v16 = vcombine.low %v641_v55, %v642_v57  ;;  %v5232_v18 = vmov 2   ;;  %v5233_v19 = vmov 3   ;;  %v5683_v36 = vld [vmem:[%s5545_s19 + $0x48] sm:$0xf]  ;;  %v5686_v37 = vld [vmem:[%s5545_s19 + $0x4c] sm:$0xf]  ;;  %p5104_p6 = scmp.lt.s32.totalorder %s3330_s26, %s3330_s26 }
  0xd1   : > { %4240 = vmatprep.subr.bf16.mxu1 %v5230_v14  ;;  %v5646_v17 = vcombine.low %v657_v58, %v658_v59  ;;  %4806 = vset.pattern.permute.xlu1 %v5232_v18  ;;  %v3630_v33 = vcombine.low %v5664_v29, %v5667_v30  ;;  %v5698_v38 = vld [vmem:[%s5545_s19 + $0x50] sm:$0xf]  ;;  %v5701_v39 = vld [vmem:[%s5545_s19 + $0x54] sm:$0xf]  ;;  %v5709_v41 = vld [vmem:[%s5545_s19 + $0x58] sm:$0xf] }
  0xd2   : > { %4805 = vset.pattern.permute.xlu0 %v5232_v18  ;;  %1279 = vperm.xlu1 %4806, %v5564_v4   ;;  %v3632_v40 = vcombine.low %v5698_v38, %v5701_v39  ;;  %v5712_v42 = vld [vmem:[%s5545_s19 + $0x5c] sm:$0xf]  ;;  %v5720_v44 = vld [vmem:[%s5545_s19 + $0x60] sm:$0xf]  ;;  %v5723_v45 = vld [vmem:[%s5545_s19 + $0x64] sm:$0xf] }
  0xd3   : > { %1274 = vperm.xlu0 %4805, %v5561_v2   ;;  %v3633_v43 = vcombine.low %v5709_v41, %v5712_v42  ;;  %v3634_v46 = vcombine.low %v5720_v44, %v5723_v45  ;;  %v5731_v47 = vld [vmem:[%s5545_s19 + $0x68] sm:$0xf]  ;;  %v5734_v48 = vld [vmem:[%s5545_s19 + $0x6c] sm:$0xf]  ;;  %v5742_v50 = vld [vmem:[%s5545_s19 + $0x70] sm:$0xf] }
  0xd4   : > { %v5657_v22 = vld [vmem:[%s7084_s2] sm:$0xff]  ;;  %v3635_v49 = vcombine.low %v5731_v47, %v5734_v48  ;;  %v5745_v51 = vld [vmem:[%s5545_s19 + $0x74] sm:$0xf]  ;;  %p4736_p7 = scmp.eq.s32.totalorder %s5319_s15, 1  ;;  %s5239_s24 = smov [#allocation12]  }
  0xd5   : > { %v3636_v52 = vcombine.low %v5742_v50, %v5745_v51  ;;  %v5755_v54 = vld [vmem:[%s5545_s19 + $0x78] sm:$0xf]  ;;  %v5758_v55 = vld [vmem:[%s5545_s19 + $0x7c] sm:$0xf]  ;;  %s3343_s29 = sshll.u32 %s5239_s24, 4  ;;  %s5097_s7 = scalar_lea.vmem %s3330_s26, 128  ;;  %s6957_s29 = int_to_ptr.vmem [resolvable:$true] %s3343_s29 }
  0xd6   : > { %4807 = vset.pattern.permute.xlu1 %v5233_v19  ;;  %v3637_v57 = vcombine.low %v5755_v54, %v5758_v55  ;;  %p5098_p9 = scmp.ne.s32.totalorder %s3330_s26, %s5097_s7  ;;  %p5105_p3 = scmp.lt.s32.totalorder %s5097_s7, %s5097_s7 }
  0xd7   : > { %4221 = vmatpush3.bf16.xpose.msra.mxu0 %v3576_v61  ;;  %4808 = vset.pattern.permute.xlu0 %v5233_v19  ;;  %v3615_v61 = vld [vmem:[%s5551_s0 + $0x44] sm:$0xf] }
  0xd8   : > { %4241 = vmatpush3.bf16.xpose.msra.mxu1 %v3584_v62  ;;  %4222 = vmatprep.subr.bf16.mxu0 %v5230_v14  ;;  %p5099_p5 = pnand %p5098_p9, %p4736_p7  ;;  %p5106_p13 = por %p5105_p3, %p5104_p6 }
  0xd9   : > { %4242 = vmatprep.subr.bf16.mxu1 %v5230_v14  ;;  %1615 = vperm.xlu1 %4807, %v5561_v2  }
  0xda   : > { %1620 = vperm.xlu0 %4808, %v5564_v4   ;;  %p5100_p10 = pneg %p5099_p5 }
  0xdc   : > { %p5107_p11 = pnand %p5106_p13, %p5100_p10 }
  0xdf   : > { %4223 = vmatpush3.bf16.xpose.msra.mxu0 %v3577_v0 }
  0xe0   : > { %4243 = vmatpush3.bf16.xpose.msra.mxu1 %v3585_v1  ;;  %4224 = vmatprep.subr.bf16.mxu0 %v5230_v14 }
  0xe1   : > { %4244 = vmatprep.subr.bf16.mxu1 %v5230_v14 }
  0xe7   : > { %4225 = vmatpush3.bf16.xpose.msra.mxu0 %v3578_v5 }
  0xe8   : > { %4245 = vmatpush3.bf16.xpose.msra.mxu1 %v3586_v6  ;;  %4226 = vmatprep.subr.bf16.mxu0 %v5230_v14 }
  0xe9   : > { %4246 = vmatprep.subr.bf16.mxu1 %v5230_v14 }
  0xef   : > { %4227 = vmatpush3.bf16.xpose.msra.mxu0 %v3579_v8  ;;  %v3616_v8 = vld [vmem:[%s5551_s0 + $0x48] sm:$0xf] }
  0xf0   : > { %4247 = vmatpush3.bf16.xpose.msra.mxu1 %v3587_v9  ;;  %4228 = vmatprep.subr.bf16.mxu0 %v5230_v14  ;;  %v3617_v9 = vld [vmem:[%s5551_s0 + $0x4c] sm:$0xf] }
  0xf1   : > { %4248 = vmatprep.subr.bf16.mxu1 %v5230_v14 }
  0xf7   : > { %4229 = vmatpush3.bf16.xpose.msra.mxu0 %v3580_v11  ;;  %v987_v11 = vadd.bf16 %v3617_v9, %v5686_v37 }
  0xf8   : > { %4249 = vmatpush3.bf16.xpose.msra.mxu1 %v3588_v12  ;;  %4230 = vmatprep.subr.bf16.mxu0 %v5230_v14  ;;  %v3639_v12 = vcombine.low %v3616_v8, %v3617_v9 }
  0xf9   : > { %4250 = vmatprep.subr.bf16.mxu1 %v5230_v14 }
  0xff   : > { %4231 = vmatpush3.bf16.xpose.msra.mxu0 %v3581_v15  ;;  %v3618_v15 = vld [vmem:[%s5551_s0 + $0x50] sm:$0xf] }
 0x100   : > { %4251 = vmatpush3.bf16.xpose.msra.mxu1 %v3589_v16  ;;  %4256 = vmatprep.subr.bf16.mxu0 %v5230_v14  ;;  %v3619_v16 = vld [vmem:[%s5551_s0 + $0x54] sm:$0xf] }
 0x101   : > { %4276 = vmatprep.subr.bf16.mxu1 %v5230_v14  ;;  %v989_v18 = vadd.bf16 %v3619_v16, %v5701_v39  ;;  %v3640_v19 = vcombine.low %v3618_v15, %v3619_v16 }
 0x144   : > { %v594_v20 = vpop.permute.xlu0 %593  ;;  %v5749_v53 = vpop.permute.xlu1 %933 }
 0x145   : > { %v596_v24 = vmul.f32 %v594_v20, %v5652_v21  ;;  %v604_v26 = vmul.f32 %v594_v20, %v5657_v22  ;;  %v936_v58 = vmul.f32 %v5749_v53, %v5652_v21 }
 0x148   : > { %v600_v23 = vpop.permute.xlu0 %599  ;;  %v5760_v56 = vpop.permute.xlu1 %938 }
 0x149   : > { %v602_v27 = vmul.f32 %v600_v23, %v5657_v22  ;;  %v605_v28 = vmul.f32 %v600_v23, %v5652_v21  ;;  %v941_v59 = vmul.f32 %v5760_v56, %v5657_v22  ;;  %v3620_v23 = vld [vmem:[%s5551_s0 + $0x58] sm:$0xf] }
 0x14b   : > { %v5669_v31 = vsub.f32 %v596_v24, %v602_v27  ;;  %v5671_v32 = vadd.f32 %v605_v28, %v604_v26  ;;  %v5775_v1 = vsub.f32 %v936_v58, %v941_v59  ;;  %v3621_v24 = vld [vmem:[%s5551_s0 + $0x5c] sm:$0xf]  ;;  %v990_v26 = vadd.bf16 %v3620_v23, %v5709_v41  ;;  %v3626_v41 = vld [vmem:[%s5551_s0 + $0x70] sm:$0xf]  ;;  %v5840_v59 = vld [vmem:[%s5545_s19 + $0x84] sm:$0xf] }
 0x14c   : > { %v991_v27 = vadd.bf16 %v3621_v24, %v5712_v42  ;;  %v3641_v28 = vcombine.low %v3620_v23, %v3621_v24  ;;  %v3627_v42 = vld [vmem:[%s5551_s0 + $0x74] sm:$0xf] }
 0x14d   : > { %v609_v34 = vpack.c.bf16 %v5669_v31, %v5669_v31  ;;  %v610_v35 = vpack.c.bf16 %v5671_v32, %v5671_v32  ;;  %v607_v0 = vadd.f32 %v5671_v32, %v5669_v31  ;;  %v3623_v31 = vld [vmem:[%s5551_s0 + $0x64] sm:$0xf] }
 0x14f   : > { %4233 = vmatmul.mubr.bf16.vlgmr.msra.gmra.mrb[0].mxu0 %v609_v34  ;;  %4253 = vmatmul.mubr.bf16.vlgmr.msra.gmra.mrb[0].mxu1 %v610_v35  ;;  %v608_v6 = vpack.c.bf16 %v607_v0, %v607_v0 }
 0x150   : > { %4257 = vmatpush3.bf16.xpose.msra.mxu0 %v5588_v25  ;;  %4277 = vmatpush3.bf16.xpose.msra.mxu1 %v3630_v33  ;;  %v3631_v25 = vcombine.low %v5683_v36, %v5686_v37  ;;  %v993_v33 = vadd.bf16 %v3623_v31, %v5723_v45  ;;  %v3625_v37 = vld [vmem:[%s5551_s0 + $0x6c] sm:$0xf]  ;;  %v3644_v45 = vcombine.low %v3626_v41, %v3627_v42 }
 0x151   : > { %4258 = vmatprep.subr.bf16.mxu0 %v5230_v14  ;;  %4278 = vmatprep.subr.bf16.mxu1 %v5230_v14 }
 0x152   : > { %4272 = vmatprep.mubr.msk.bf16.mxu0 %vm5231_vm0, %v5230_v14  ;;  %4292 = vmatprep.mubr.msk.bf16.mxu1 %vm5231_vm0, %v5230_v14 }
 0x158   : > { %4259 = vmatpush3.bf16.xpose.msra.mxu0 %v5622_v60  ;;  %4279 = vmatpush3.bf16.xpose.msra.mxu1 %v3631_v25  ;;  %v3614_v60 = vld [vmem:[%s5551_s0 + $0x40] sm:$0xf] }
 0x159   : > { %4260 = vmatprep.subr.bf16.mxu0 %v5230_v14  ;;  %4280 = vmatprep.subr.bf16.mxu1 %v5230_v14  ;;  %v984_v62 = vadd.bf16 %v3614_v60, %v5664_v29  ;;  %v3649_v29 = vcombine.low %v990_v26, %v991_v27  ;;  %v5911_v26 = vld [vmem:[%s5545_s19 + $0xa0] sm:$0xf]  ;;  %v5916_v27 = vld [vmem:[%s5545_s19 + $0xa4] sm:$0xf] }
 0x160   : > { %4261 = vmatpush3.bf16.xpose.msra.mxu0 %v5626_v63  ;;  %4281 = vmatpush3.bf16.xpose.msra.mxu1 %v3632_v40  ;;  %v985_v63 = vadd.bf16 %v3615_v61, %v5667_v30  ;;  %v3622_v30 = vld [vmem:[%s5551_s0 + $0x60] sm:$0xf] }
 0x161   : > { %4262 = vmatprep.subr.bf16.mxu0 %v5230_v14  ;;  %4282 = vmatprep.subr.bf16.mxu1 %v5230_v14  ;;  %v992_v32 = vadd.bf16 %v3622_v30, %v5720_v44  ;;  %v3642_v34 = vcombine.low %v3622_v30, %v3623_v31  ;;  %v997_v44 = vadd.bf16 %v3627_v42, %v5745_v51 }
 0x162   : > { %v3646_v5 = vcombine.low %v984_v62, %v985_v63  ;;  %v944_v51 = vmul.f32 %v5760_v56, %v5652_v21  ;;  %v3690_v30 = vcombine.low %v5911_v26, %v5916_v27 }
 0x163   : > { %v3650_v35 = vcombine.low %v992_v32, %v993_v33  ;;  %v5929_v32 = vld [vmem:[%s5545_s19 + $0xa8] sm:$0xf]  ;;  %v5934_v33 = vld [vmem:[%s5545_s19 + $0xac] sm:$0xf] }
 0x168   : > { %4263 = vmatpush3.bf16.xpose.msra.mxu0 %v5630_v3  ;;  %4283 = vmatpush3.bf16.xpose.msra.mxu1 %v3633_v43  ;;  %v3638_v3 = vcombine.low %v3614_v60, %v3615_v61  ;;  %v996_v43 = vadd.bf16 %v3626_v41, %v5742_v50  ;;  %v943_v50 = vmul.f32 %v5749_v53, %v5657_v22  ;;  %v5834_v53 = vld [vmem:[%s5545_s19 + $0x80] sm:$0xf]  ;;  %v5846_v61 = vld [vmem:[%s5551_s0 + $0x84] sm:$0xf] }
 0x169   : > { %4264 = vmatprep.subr.bf16.mxu0 %v5230_v14  ;;  %4284 = vmatprep.subr.bf16.mxu1 %v5230_v14  ;;  %v5843_v60 = vld [vmem:[%s5551_s0 + $0x80] sm:$0xf]  ;;  %v3686_v62 = vcombine.low %v5834_v53, %v5840_v59 }
 0x16a   : > { %v3694_v63 = vcombine.low %v5843_v60, %v5846_v61 }
 0x170   : > { %4265 = vmatpush3.bf16.xpose.msra.mxu0 %v5634_v7  ;;  %4285 = vmatpush3.bf16.xpose.msra.mxu1 %v3634_v46  ;;  %v948_v7 = vpack.c.bf16 %v5775_v1, %v5775_v1  ;;  %v3652_v46 = vcombine.low %v996_v43, %v997_v44  ;;  %v1280_v43 = vpop.permute.xlu1 %1279  ;;  %v1275_v44 = vpop.permute.xlu0 %1274 }
 0x171   : > { %4266 = vmatprep.subr.bf16.mxu0 %v5230_v14  ;;  %4286 = vmatprep.subr.bf16.mxu1 %v5230_v14 }
 0x178   : > { %4267 = vmatpush3.bf16.xpose.msra.mxu0 %v5638_v10  ;;  %4287 = vmatpush3.bf16.xpose.msra.mxu1 %v3635_v49  ;;  %v986_v10 = vadd.bf16 %v3616_v8, %v5683_v36  ;;  %v3624_v36 = vld [vmem:[%s5551_s0 + $0x68] sm:$0xf] }
 0x179   : > { %4268 = vmatprep.subr.bf16.mxu0 %v5230_v14  ;;  %4288 = vmatprep.subr.bf16.mxu1 %v5230_v14  ;;  %v994_v25 = vadd.bf16 %v3624_v36, %v5731_v47  ;;  %v3643_v39 = vcombine.low %v3624_v36, %v3625_v37  ;;  %v3628_v47 = vld [vmem:[%s5551_s0 + $0x78] sm:$0xf]  ;;  %v3691_v36 = vcombine.low %v5929_v32, %v5934_v33 }
 0x17a   : > { %v998_v49 = vadd.bf16 %v3628_v47, %v5755_v54 }
 0x180   : > { %4269 = vmatpush3.bf16.xpose.msra.mxu0 %v5642_v13  ;;  %4289 = vmatpush3.bf16.xpose.msra.mxu1 %v3636_v52  ;;  %v3647_v13 = vcombine.low %v986_v10, %v987_v11  ;;  %v5875_v10 = vld [vmem:[%s5545_s19 + $0x90] sm:$0xf]  ;;  %v5880_v11 = vld [vmem:[%s5545_s19 + $0x94] sm:$0xf] }
 0x181   : > { %4270 = vmatprep.subr.bf16.mxu0 %v5230_v14  ;;  %4290 = vmatprep.subr.bf16.mxu1 %v5230_v14 }
 0x188   : > { %4271 = vmatpush3.bf16.xpose.msra.mxu0 %v5646_v17  ;;  %4291 = vmatpush3.bf16.xpose.msra.mxu1 %v3637_v57  ;;  %v988_v17 = vadd.bf16 %v3618_v15, %v5698_v38  ;;  %v995_v38 = vadd.bf16 %v3625_v37, %v5734_v48  ;;  %v3629_v48 = vld [vmem:[%s5551_s0 + $0x7c] sm:$0xf]  ;;  %v5234_v57 = vmov 4   ;;  %v3688_v15 = vcombine.low %v5875_v10, %v5880_v11 }
 0x189   : > { %4296 = vmatprep.subr.bf16.mxu0 %v5230_v14  ;;  %4316 = vmatprep.subr.bf16.mxu1 %v5230_v14  ;;  %v999_v52 = vadd.bf16 %v3629_v48, %v5758_v55  ;;  %v3645_v54 = vcombine.low %v3628_v47, %v3629_v48  ;;  %v945_v55 = vadd.f32 %v944_v51, %v943_v50  ;;  %v5973_v47 = vld [vmem:[%s5551_s0 + $0xb8] sm:$0xf]  ;;  %v5976_v48 = vld [vmem:[%s5551_s0 + $0xbc] sm:$0xf] }
 0x18a   : > { %v3648_v20 = vcombine.low %v988_v17, %v989_v18  ;;  %v3651_v40 = vcombine.low %v994_v25, %v995_v38  ;;  %4809 = vset.pattern.permute.xlu1 %v5234_v57  ;;  %v5893_v17 = vld [vmem:[%s5545_s19 + $0x98] sm:$0xf]  ;;  %v5898_v18 = vld [vmem:[%s5545_s19 + $0x9c] sm:$0xf]  ;;  %v5947_v25 = vld [vmem:[%s5545_s19 + $0xb0] sm:$0xf]  ;;  %v1285_v50 = vmul.f32 %v1280_v43, %v5652_v21  ;;  %v1277_v51 = vmul.f32 %v1275_v44, %v5652_v21 }
 0x18b   : > { %1956 = vperm.xlu1 %4809, %v5561_v2   ;;  %v3653_v58 = vcombine.low %v998_v49, %v999_v52  ;;  %v946_v56 = vadd.f32 %v945_v55, %v5775_v1  ;;  %v949_v1 = vpack.c.bf16 %v945_v55, %v945_v55  ;;  %v3689_v23 = vcombine.low %v5893_v17, %v5898_v18  ;;  %v5952_v38 = vld [vmem:[%s5545_s19 + $0xb4] sm:$0xf] }
 0x18c   : > { %v3692_v41 = vcombine.low %v5947_v25, %v5952_v38  ;;  %v1282_v49 = vmul.f32 %v1280_v43, %v5657_v22  ;;  %v5235_v52 = vmov 5   ;;  %v1284_v57 = vmul.f32 %v1275_v44, %v5657_v22 }
 0x18d   : > { %v947_v0 = vpack.c.bf16 %v946_v56, %v946_v56  ;;  %4810 = vset.pattern.permute.xlu0 %v5235_v52 }
 0x18e   : > { %2297 = vperm.xlu0 %4810, %v5561_v2   ;;  %v5988_v55 = vsub.f32 %v1277_v51, %v1282_v49  ;;  %v5990_v56 = vadd.f32 %v1285_v50, %v1284_v57  ;;  %v5999_v2 = vld [vmem:[%s5545_s19 + $0xc0] sm:$0xf]  ;;  %v6072_v50 = vld [vmem:[%s5545_s19 + $0xe4] sm:$0xf] }
 0x18f   : > { %4273 = vmatmul.mubr.bf16.vlgmr.msra.gmra.mrb[4].mxu0 %v608_v6  ;;  %4293 = vmatmul.mubr.bf16.vlgmr.msra.gmra.mrb[4].mxu1 %v948_v7  ;;  %v5861_v6 = vld [vmem:[%s5551_s0 + $0x88] sm:$0xf]  ;;  %v5864_v7 = vld [vmem:[%s5551_s0 + $0x8c] sm:$0xf] }
 0x190   : > { %4297 = vmatpush3.bf16.xpose.msra.mxu0 %v3638_v3  ;;  %4317 = vmatpush3.bf16.xpose.msra.mxu1 %v3646_v5  ;;  %v5853_v3 = vld [vmem:[%s5545_s19 + $0x88] sm:$0xf]  ;;  %v5858_v5 = vld [vmem:[%s5545_s19 + $0x8c] sm:$0xf]  ;;  %v3695_v9 = vcombine.low %v5861_v6, %v5864_v7 }
 0x191   : > { %4298 = vmatprep.subr.bf16.mxu0 %v5230_v14  ;;  %4318 = vmatprep.subr.bf16.mxu1 %v5230_v14  ;;  %v3687_v8 = vcombine.low %v5853_v3, %v5858_v5 }
 0x192   : > { %4312 = vmatprep.mubr.msk.bf16.mxu0 %vm5231_vm0, %v5230_v14  ;;  %4332 = vmatprep.mubr.msk.bf16.mxu1 %vm5231_vm0, %v5230_v14 }
 0x193   : > { %1961 = vperm.xlu1 %4809, %v5564_v4  }
 0x197   : > { %4811 = vset.pattern.permute.xlu1 %v5235_v52  ;;  %v6069_v52 = vld [vmem:[%s5545_s19 + $0xe0] sm:$0xf] }
 0x198   : > { %4299 = vmatpush3.bf16.xpose.msra.mxu0 %v3639_v12  ;;  %4319 = vmatpush3.bf16.xpose.msra.mxu1 %v3647_v13  ;;  %v5883_v12 = vld [vmem:[%s5551_s0 + $0x90] sm:$0xf]  ;;  %v5886_v13 = vld [vmem:[%s5551_s0 + $0x94] sm:$0xf]  ;;  %v3746_v57 = vcombine.low %v6069_v52, %v6072_v50 }
 0x199   : > { %4300 = vmatprep.subr.bf16.mxu0 %v5230_v14  ;;  %4320 = vmatprep.subr.bf16.mxu1 %v5230_v14  ;;  %v3696_v16 = vcombine.low %v5883_v12, %v5886_v13 }
 0x19a   : > { %2302 = vperm.xlu1 %4811, %v5564_v4   ;;  %v1326_v4 = vadd.bf16 %v5846_v61, %v5840_v59  ;;  %v1328_v61 = vadd.bf16 %v5864_v7, %v5858_v5  ;;  %v1329_v5 = vadd.bf16 %v5883_v12, %v5875_v10  ;;  %v1330_v7 = vadd.bf16 %v5886_v13, %v5880_v11  ;;  %v6049_v12 = vld [vmem:[%s5545_s19 + $0xd8] sm:$0xf]  ;;  %v6052_v13 = vld [vmem:[%s5545_s19 + $0xdc] sm:$0xf] }
 0x1a0   : > { %4301 = vmatpush3.bf16.xpose.msra.mxu0 %v3640_v19  ;;  %4321 = vmatpush3.bf16.xpose.msra.mxu1 %v3648_v20  ;;  %v5901_v19 = vld [vmem:[%s5551_s0 + $0x98] sm:$0xf]  ;;  %v5904_v20 = vld [vmem:[%s5551_s0 + $0x9c] sm:$0xf] }
 0x1a1   : > { %4302 = vmatprep.subr.bf16.mxu0 %v5230_v14  ;;  %4322 = vmatprep.subr.bf16.mxu1 %v5230_v14  ;;  %v3697_v24 = vcombine.low %v5901_v19, %v5904_v20  ;;  %v1331_v10 = vadd.bf16 %v5901_v19, %v5893_v17  ;;  %v1332_v11 = vadd.bf16 %v5904_v20, %v5898_v18 }
 0x1a8   : > { %4303 = vmatpush3.bf16.xpose.msra.mxu0 %v3641_v28  ;;  %4323 = vmatpush3.bf16.xpose.msra.mxu1 %v3649_v29  ;;  %v5919_v28 = vld [vmem:[%s5551_s0 + $0xa0] sm:$0xf]  ;;  %v5922_v29 = vld [vmem:[%s5551_s0 + $0xa4] sm:$0xf] }
 0x1a9   : > { %4304 = vmatprep.subr.bf16.mxu0 %v5230_v14  ;;  %4324 = vmatprep.subr.bf16.mxu1 %v5230_v14  ;;  %v3698_v31 = vcombine.low %v5919_v28, %v5922_v29  ;;  %v1333_v44 = vadd.bf16 %v5919_v28, %v5911_v26  ;;  %v1334_v49 = vadd.bf16 %v5922_v29, %v5916_v27  ;;  %v6083_v28 = vld [vmem:[%s5545_s19 + $0xe8] sm:$0xf]  ;;  %v6086_v29 = vld [vmem:[%s5545_s19 + $0xec] sm:$0xf] }
 0x1ab   : > { %v3706_v51 = vcombine.low %v1333_v44, %v1334_v49 }
 0x1b0   : > { %4305 = vmatpush3.bf16.xpose.msra.mxu0 %v3642_v34  ;;  %4325 = vmatpush3.bf16.xpose.msra.mxu1 %v3650_v35  ;;  %v5937_v34 = vld [vmem:[%s5551_s0 + $0xa8] sm:$0xf]  ;;  %v5940_v35 = vld [vmem:[%s5551_s0 + $0xac] sm:$0xf] }
 0x1b1   : > { %4306 = vmatprep.subr.bf16.mxu0 %v5230_v14  ;;  %4326 = vmatprep.subr.bf16.mxu1 %v5230_v14  ;;  %v3699_v37 = vcombine.low %v5937_v34, %v5940_v35  ;;  %v1335_v26 = vadd.bf16 %v5937_v34, %v5929_v32  ;;  %v1336_v27 = vadd.bf16 %v5940_v35, %v5934_v33  ;;  %v6097_v34 = vld [vmem:[%s5545_s19 + $0xf0] sm:$0xf]  ;;  %v6100_v35 = vld [vmem:[%s5545_s19 + $0xf4] sm:$0xf] }
 0x1b8   : > { %4307 = vmatpush3.bf16.xpose.msra.mxu0 %v3643_v39  ;;  %4327 = vmatpush3.bf16.xpose.msra.mxu1 %v3651_v40  ;;  %v5955_v39 = vld [vmem:[%s5551_s0 + $0xb0] sm:$0xf]  ;;  %v5958_v40 = vld [vmem:[%s5551_s0 + $0xb4] sm:$0xf] }
 0x1b9   : > { %4308 = vmatprep.subr.bf16.mxu0 %v5230_v14  ;;  %4328 = vmatprep.subr.bf16.mxu1 %v5230_v14  ;;  %v3700_v42 = vcombine.low %v5955_v39, %v5958_v40  ;;  %v1337_v32 = vadd.bf16 %v5955_v39, %v5947_v25  ;;  %v1338_v33 = vadd.bf16 %v5958_v40, %v5952_v38  ;;  %v6104_v25 = vpop.permute.xlu1 %1615  ;;  %v6106_v38 = vpop.permute.xlu0 %1620 }
 0x1c0   : > { %4309 = vmatpush3.bf16.xpose.msra.mxu0 %v3644_v45  ;;  %4329 = vmatpush3.bf16.xpose.msra.mxu1 %v3652_v46  ;;  %v5965_v45 = vld [vmem:[%s5545_s19 + $0xb8] sm:$0xf]  ;;  %v5968_v46 = vld [vmem:[%s5545_s19 + $0xbc] sm:$0xf] }
 0x1c1   : > { %4310 = vmatprep.subr.bf16.mxu0 %v5230_v14  ;;  %4330 = vmatprep.subr.bf16.mxu1 %v5230_v14  ;;  %v1339_v39 = vadd.bf16 %v5973_v47, %v5965_v45  ;;  %v1340_v40 = vadd.bf16 %v5976_v48, %v5968_v46 }
 0x1c8   : > { %4311 = vmatpush3.bf16.xpose.msra.mxu0 %v3645_v54  ;;  %4331 = vmatpush3.bf16.xpose.msra.mxu1 %v3653_v58  ;;  %v3693_v54 = vcombine.low %v5965_v45, %v5968_v46  ;;  %v3701_v58 = vcombine.low %v5973_v47, %v5976_v48  ;;  %v3726_v46 = vld [vmem:[%s5551_s0 + $0xc0] sm:$0xf]  ;;  %v3727_v47 = vld [vmem:[%s5551_s0 + $0xc4] sm:$0xf] }
 0x1c9   : > { %4336 = vmatprep.subr.bf16.mxu0 %v5230_v14  ;;  %4356 = vmatprep.subr.bf16.mxu1 %v5230_v14 }
 0x1cf   : > { %4313 = vmatmul.mubr.bf16.vlgmr.msra.gmra.mrb[8].mxu0 %v949_v1  ;;  %4333 = vmatmul.mubr.bf16.vlgmr.msra.gmra.mrb[8].mxu1 %v947_v0  ;;  %v1289_v0 = vpack.c.bf16 %v5988_v55, %v5988_v55  ;;  %v1290_v1 = vpack.c.bf16 %v5990_v56, %v5990_v56 }
 0x1d0   : > { %4337 = vmatpush3.bf16.xpose.msra.mxu0 %v3686_v62  ;;  %4357 = vmatpush3.bf16.xpose.msra.mxu1 %v3694_v63  ;;  %v1325_v62 = vadd.bf16 %v5843_v60, %v5834_v53  ;;  %v6002_v63 = vld [vmem:[%s5545_s19 + $0xc4] sm:$0xf]  ;;  %v1327_v60 = vadd.bf16 %v5861_v6, %v5853_v3 }
 0x1d1   : > { %4338 = vmatprep.subr.bf16.mxu0 %v5230_v14  ;;  %4358 = vmatprep.subr.bf16.mxu1 %v5230_v14  ;;  %v3742_v59 = vcombine.low %v5999_v2, %v6002_v63 }
 0x1d2   : > { %4352 = vmatprep.mubr.msk.bf16.mxu0 %vm5231_vm0, %v5230_v14  ;;  %4372 = vmatprep.mubr.msk.bf16.mxu1 %vm5231_vm0, %v5230_v14  ;;  %v3702_v53 = vcombine.low %v1325_v62, %v1326_v4  ;;  %v3703_v3 = vcombine.low %v1327_v60, %v1328_v61  ;;  %v3708_v62 = vcombine.low %v1337_v32, %v1338_v33  ;;  %v3734_v32 = vld [vmem:[%s5551_s0 + $0xe0] sm:$0xf]  ;;  %v3735_v33 = vld [vmem:[%s5551_s0 + $0xe4] sm:$0xf] }
 0x1d3   : > { %v3748_v4 = vcombine.low %v6097_v34, %v6100_v35  ;;  %v3709_v60 = vcombine.low %v1339_v39, %v1340_v40  ;;  %v1666_v61 = vadd.bf16 %v3726_v46, %v5999_v2  ;;  %v3754_v39 = vcombine.low %v3734_v32, %v3735_v33 }
 0x1d8   : > { %4339 = vmatpush3.bf16.xpose.msra.mxu0 %v3687_v8  ;;  %4359 = vmatpush3.bf16.xpose.msra.mxu1 %v3695_v9  ;;  %v6017_v8 = vld [vmem:[%s5545_s19 + $0xc8] sm:$0xf]  ;;  %v6020_v9 = vld [vmem:[%s5545_s19 + $0xcc] sm:$0xf] }
 0x1d9   : > { %4340 = vmatprep.subr.bf16.mxu0 %v5230_v14  ;;  %4360 = vmatprep.subr.bf16.mxu1 %v5230_v14  ;;  %v3743_v6 = vcombine.low %v6017_v8, %v6020_v9 }
 0x1e0   : > { %4341 = vmatpush3.bf16.xpose.msra.mxu0 %v3688_v15  ;;  %4361 = vmatpush3.bf16.xpose.msra.mxu1 %v3696_v16  ;;  %v6035_v15 = vld [vmem:[%s5545_s19 + $0xd0] sm:$0xf]  ;;  %v6038_v16 = vld [vmem:[%s5545_s19 + $0xd4] sm:$0xf] }
 0x1e1   : > { %4342 = vmatprep.subr.bf16.mxu0 %v5230_v14  ;;  %4362 = vmatprep.subr.bf16.mxu1 %v5230_v14 }
 0x1e8   : > { %4343 = vmatpush3.bf16.xpose.msra.mxu0 %v3689_v23  ;;  %4363 = vmatpush3.bf16.xpose.msra.mxu1 %v3697_v24  ;;  %v3704_v23 = vcombine.low %v1329_v5, %v1330_v7  ;;  %v3744_v24 = vcombine.low %v6035_v15, %v6038_v16  ;;  %v3750_v7 = vcombine.low %v3726_v46, %v3727_v47  ;;  %v3738_v46 = vld [vmem:[%s5551_s0 + $0xf0] sm:$0xf] }
 0x1e9   : > { %4344 = vmatprep.subr.bf16.mxu0 %v5230_v14  ;;  %4364 = vmatprep.subr.bf16.mxu1 %v5230_v14 }
 0x1f0   : > { %4345 = vmatpush3.bf16.xpose.msra.mxu0 %v3690_v30  ;;  %4365 = vmatpush3.bf16.xpose.msra.mxu1 %v3698_v31 }
 0x1f1   : > { %4346 = vmatprep.subr.bf16.mxu0 %v5230_v14  ;;  %4366 = vmatprep.subr.bf16.mxu1 %v5230_v14 }
 0x1f8   : > { %4347 = vmatpush3.bf16.xpose.msra.mxu0 %v3691_v36  ;;  %4367 = vmatpush3.bf16.xpose.msra.mxu1 %v3699_v37  ;;  %v3705_v37 = vcombine.low %v1331_v10, %v1332_v11  ;;  %v3728_v10 = vld [vmem:[%s5551_s0 + $0xc8] sm:$0xf]  ;;  %v3729_v11 = vld [vmem:[%s5551_s0 + $0xcc] sm:$0xf] }
 0x1f9   : > { %4348 = vmatprep.subr.bf16.mxu0 %v5230_v14  ;;  %4368 = vmatprep.subr.bf16.mxu1 %v5230_v14  ;;  %v3751_v2 = vcombine.low %v3728_v10, %v3729_v11 }
 0x200   : > { %4349 = vmatpush3.bf16.xpose.msra.mxu0 %v3692_v41  ;;  %4369 = vmatpush3.bf16.xpose.msra.mxu1 %v3700_v42  ;;  %v3745_v41 = vcombine.low %v6049_v12, %v6052_v13 }
 0x201   : > { %4350 = vmatprep.subr.bf16.mxu0 %v5230_v14  ;;  %4370 = vmatprep.subr.bf16.mxu1 %v5230_v14 }
 0x208   : > { %4351 = vmatpush3.bf16.xpose.msra.mxu0 %v3693_v54  ;;  %4371 = vmatpush3.bf16.xpose.msra.mxu1 %v3701_v58  ;;  %v3707_v54 = vcombine.low %v1335_v26, %v1336_v27  ;;  %v3747_v58 = vcombine.low %v6083_v28, %v6086_v29 }
 0x209   : > { %4376 = vmatprep.subr.bf16.mxu0 %v5230_v14  ;;  %4396 = vmatprep.subr.bf16.mxu1 %v5230_v14 }
 0x20f   : > { %4353 = vmatmul.mubr.bf16.vlgmr.msra.gmra.mrb[12].mxu0 %v1289_v0  ;;  %4373 = vmatmul.mubr.bf16.vlgmr.msra.gmra.mrb[12].mxu1 %v1290_v1  ;;  %v6115_v0 = vld [vmem:[%s5545_s19 + $0xf8] sm:$0xf]  ;;  %v6118_v1 = vld [vmem:[%s5545_s19 + $0xfc] sm:$0xf] }
 0x210   : > { %4377 = vmatpush3.bf16.xpose.msra.mxu0 %v3702_v53  ;;  %4397 = vmatpush3.bf16.xpose.msra.mxu1 %v3742_v59  ;;  %v1618_v53 = vmul.f32 %v6104_v25, %v5652_v21  ;;  %v1623_v59 = vmul.f32 %v6106_v38, %v5657_v22  ;;  %v3749_v45 = vcombine.low %v6115_v0, %v6118_v1 }
 0x211   : > { %4378 = vmatprep.subr.bf16.mxu0 %v5230_v14  ;;  %4398 = vmatprep.subr.bf16.mxu1 %v5230_v14 }
 0x212   : > { %4392 = vmatprep.mubr.msk.bf16.mxu0 %vm5231_vm0, %v5230_v14  ;;  %4412 = vmatprep.mubr.msk.bf16.mxu1 %vm5231_vm0, %v5230_v14  ;;  %v6128_v48 = vsub.f32 %v1618_v53, %v1623_v59  ;;  %v3736_v53 = vld [vmem:[%s5551_s0 + $0xe8] sm:$0xf]  ;;  %v3737_v59 = vld [vmem:[%s5551_s0 + $0xec] sm:$0xf] }
 0x214   : > { %v1630_v5 = vpack.c.bf16 %v6128_v48, %v6128_v48 }
 0x218   : > { %4379 = vmatpush3.bf16.xpose.msra.mxu0 %v3703_v3  ;;  %4399 = vmatpush3.bf16.xpose.msra.mxu1 %v3743_v6  ;;  %v1667_v3 = vadd.bf16 %v3727_v47, %v6002_v63  ;;  %v1287_v6 = vadd.f32 %v5990_v56, %v5988_v55  ;;  %v1668_v55 = vadd.bf16 %v3728_v10, %v6017_v8  ;;  %v3739_v47 = vld [vmem:[%s5551_s0 + $0xf4] sm:$0xf] }
 0x219   : > { %4380 = vmatprep.subr.bf16.mxu0 %v5230_v14  ;;  %4400 = vmatprep.subr.bf16.mxu1 %v5230_v14  ;;  %v1669_v56 = vadd.bf16 %v3729_v11, %v6020_v9  ;;  %v6209_v11 = vld [vmem:[%s5545_s19 + $0x104] sm:$0xf] }
 0x21b   : > { %v3759_v63 = vcombine.low %v1668_v55, %v1669_v56  ;;  %v6212_v55 = vld [vmem:[%s5551_s0 + $0x100] sm:$0xf]  ;;  %v6215_v56 = vld [vmem:[%s5551_s0 + $0x104] sm:$0xf] }
 0x220   : > { %4381 = vmatpush3.bf16.xpose.msra.mxu0 %v3704_v23  ;;  %4401 = vmatpush3.bf16.xpose.msra.mxu1 %v3744_v24  ;;  %v3758_v23 = vcombine.low %v1666_v61, %v1667_v3  ;;  %v1288_v24 = vpack.c.bf16 %v1287_v6, %v1287_v6  ;;  %v1678_v61 = vadd.bf16 %v3738_v46, %v6097_v34  ;;  %v3740_v6 = vld [vmem:[%s5551_s0 + $0xf8] sm:$0xf] }
 0x221   : > { %4382 = vmatprep.subr.bf16.mxu0 %v5230_v14  ;;  %4402 = vmatprep.subr.bf16.mxu1 %v5230_v14  ;;  %v1679_v3 = vadd.bf16 %v3739_v47, %v6100_v35  ;;  %v1625_v34 = vmul.f32 %v6104_v25, %v5657_v22  ;;  %v1626_v35 = vmul.f32 %v6106_v38, %v5652_v21  ;;  %v6199_v25 = vld [vmem:[%s5535_s9] sm:$0xff]  ;;  %v6203_v38 = vld [vmem:[%s5545_s19 + $0x100] sm:$0xf] }
 0x222   : > { %v6054_v30 = vpop.f32.mrb[0].mxu0  ;;  %v6056_v31 = vpop.f32.mrb[0].mxu1 }
 0x223   : > { %v924_v36 = vsub.f32 %v6054_v30, %v6056_v31  ;;  %v4234_v17 = vpop.f32.mrb[1].mxu0  ;;  %v4254_v19 = vpop.f32.mrb[1].mxu1  ;;  %v1627_v21 = vadd.f32 %v1626_v35, %v1625_v34  ;;  %v6326_v35 = vld [vmem:[%s5545_s19 + $0x130] sm:$0xf] }
 0x224   : > { %v744_v18 = vpop.f32.mrb[2].mxu0  ;;  %v832_v20 = vpop.f32.mrb[2].mxu1  ;;  %v3730_v17 = vld [vmem:[%s5551_s0 + $0xd0] sm:$0xf]  ;;  %v3731_v19 = vld [vmem:[%s5551_s0 + $0xd4] sm:$0xf] }
 0x225   : > { %v4235_v42 = vpop.f32.mrb[3].mxu0  ;;  %v4255_v43 = vpop.f32.mrb[3].mxu1  ;;  %v1670_v8 = vadd.bf16 %v3730_v17, %v6035_v15  ;;  %v1671_v9 = vadd.bf16 %v3731_v19, %v6038_v16  ;;  %v3752_v18 = vcombine.low %v3730_v17, %v3731_v19  ;;  %v1628_v10 = vadd.f32 %v1627_v21, %v6128_v48  ;;  %v6222_v19 = vld [vmem:[%s5545_s19 + $0x108] sm:$0xf] }
 0x226   : > { %v1631_v17 = vpack.c.bf16 %v1627_v21, %v1627_v21 }
 0x227   : > { %v3760_v20 = vcombine.low %v1670_v8, %v1671_v9  ;;  %v1629_v48 = vpack.c.bf16 %v1628_v10, %v1628_v10  ;;  %v6227_v8 = vld [vmem:[%s5545_s19 + $0x10c] sm:$0xf]  ;;  %v6230_v9 = vld [vmem:[%s5551_s0 + $0x108] sm:$0xf] }
 0x228   : > { %4383 = vmatpush3.bf16.xpose.msra.mxu0 %v3705_v37  ;;  %4403 = vmatpush3.bf16.xpose.msra.mxu1 %v3745_v41  ;;  %v3732_v37 = vld [vmem:[%s5551_s0 + $0xd8] sm:$0xf]  ;;  %v3733_v41 = vld [vmem:[%s5551_s0 + $0xdc] sm:$0xf] }
 0x229   : > { %4384 = vmatprep.subr.bf16.mxu0 %v5230_v14  ;;  %4404 = vmatprep.subr.bf16.mxu1 %v5230_v14  ;;  %v1672_v42 = vadd.bf16 %v3732_v37, %v6049_v12  ;;  %v1673_v43 = vadd.bf16 %v3733_v41, %v6052_v13  ;;  %v3753_v27 = vcombine.low %v3732_v37, %v3733_v41  ;;  %v6244_v41 = vld [vmem:[%s5545_s19 + $0x110] sm:$0xf] }
 0x22b   : > { %v3761_v12 = vcombine.low %v1672_v42, %v1673_v43  ;;  %v6249_v42 = vld [vmem:[%s5545_s19 + $0x114] sm:$0xf]  ;;  %v6252_v43 = vld [vmem:[%s5551_s0 + $0x110] sm:$0xf] }
 0x230   : > { %4385 = vmatpush3.bf16.xpose.msra.mxu0 %v3706_v51  ;;  %4405 = vmatpush3.bf16.xpose.msra.mxu1 %v3746_v57 }
 0x231   : > { %4386 = vmatprep.subr.bf16.mxu0 %v5230_v14  ;;  %4406 = vmatprep.subr.bf16.mxu1 %v5230_v14 }
 0x238   : > { %4387 = vmatpush3.bf16.xpose.msra.mxu0 %v3707_v54  ;;  %4407 = vmatpush3.bf16.xpose.msra.mxu1 %v3747_v58 }
 0x239   : > { %4388 = vmatprep.subr.bf16.mxu0 %v5230_v14  ;;  %4408 = vmatprep.subr.bf16.mxu1 %v5230_v14 }
 0x240   : > { %4389 = vmatpush3.bf16.xpose.msra.mxu0 %v3708_v62  ;;  %4409 = vmatpush3.bf16.xpose.msra.mxu1 %v3748_v4  ;;  %v1674_v62 = vadd.bf16 %v3734_v32, %v6069_v52  ;;  %v1675_v4 = vadd.bf16 %v3735_v33, %v6072_v50  ;;  %v3755_v52 = vcombine.low %v3736_v53, %v3737_v59 }
 0x241   : > { %4390 = vmatprep.subr.bf16.mxu0 %v5230_v14  ;;  %4410 = vmatprep.subr.bf16.mxu1 %v5230_v14 }
 0x242   : > { %v3762_v40 = vcombine.low %v1674_v62, %v1675_v4 }
 0x248   : > { %4391 = vmatpush3.bf16.xpose.msra.mxu0 %v3709_v60  ;;  %4411 = vmatpush3.bf16.xpose.msra.mxu1 %v3749_v45  ;;  %v1676_v60 = vadd.bf16 %v3736_v53, %v6083_v28  ;;  %v1677_v45 = vadd.bf16 %v3737_v59, %v6086_v29  ;;  %v3756_v28 = vcombine.low %v3738_v46, %v3739_v47  ;;  %v6290_v46 = vld [vmem:[%s5545_s19 + $0x120] sm:$0xf] }
 0x249   : > { %4416 = vmatprep.subr.bf16.mxu0 %v5230_v14  ;;  %4436 = vmatprep.subr.bf16.mxu1 %v5230_v14  ;;  %v3764_v29 = vcombine.low %v1678_v61, %v1679_v3  ;;  %v6298_v47 = vld [vmem:[%s5551_s0 + $0x120] sm:$0xf]  ;;  %v6301_v61 = vld [vmem:[%s5551_s0 + $0x124] sm:$0xf] }
 0x24a   : > { %v3763_v50 = vcombine.low %v1676_v60, %v1677_v45 }
 0x24f   : > { %4393 = vmatmul.mubr.bf16.vlgmr.msra.gmra.mrb[16].mxu0 %v1288_v24  ;;  %4413 = vmatmul.mubr.bf16.vlgmr.msra.gmra.mrb[16].mxu1 %v1630_v5  ;;  %v3741_v5 = vld [vmem:[%s5551_s0 + $0xfc] sm:$0xf]  ;;  %v5236_v24 = vmov 6  }
 0x250   : > { %4417 = vmatpush3.bf16.xpose.msra.mxu0 %v3750_v7  ;;  %4437 = vmatpush3.bf16.xpose.msra.mxu1 %v3758_v23  ;;  %v1680_v7 = vadd.bf16 %v3740_v6, %v6115_v0  ;;  %v1681_v23 = vadd.bf16 %v3741_v5, %v6118_v1  ;;  %v6195_v0 = vld [vmem:[%s5528_s20] sm:$0xff]  ;;  %v3757_v1 = vcombine.low %v3740_v6, %v3741_v5  ;;  %v6313_v6 = vld [vmem:[%s5545_s19 + $0x12c] sm:$0xf]  ;;  %v6316_v5 = vld [vmem:[%s5551_s0 + $0x128] sm:$0xf] }
 0x251   : > { %4418 = vmatprep.subr.bf16.mxu0 %v5230_v14  ;;  %4438 = vmatprep.subr.bf16.mxu1 %v5230_v14 }
 0x252   : > { %4432 = vmatprep.mubr.msk.bf16.mxu0 %vm5231_vm0, %v5230_v14  ;;  %4452 = vmatprep.mubr.msk.bf16.mxu1 %vm5231_vm0, %v5230_v14  ;;  %v3765_v22 = vcombine.low %v1680_v7, %v1681_v23  ;;  %v6319_v7 = vld [vmem:[%s5551_s0 + $0x12c] sm:$0xf] }
 0x253   : > { %4812 = vset.pattern.permute.xlu1 %v5236_v24  ;;  %4813 = vset.pattern.permute.xlu0 %v5236_v24  ;;  %v3811_v34 = vcombine.low %v6316_v5, %v6319_v7  ;;  %v6331_v24 = vld [vmem:[%s5545_s19 + $0x134] sm:$0xf] }
 0x254   : > { %2638 = vperm.xlu1 %4812, %v6195_v0   ;;  %2643 = vperm.xlu0 %4813, %v6199_v25   ;;  %v3804_v21 = vcombine.low %v6326_v35, %v6331_v24 }
 0x258   : > { %4419 = vmatpush3.bf16.xpose.msra.mxu0 %v3751_v2  ;;  %4439 = vmatpush3.bf16.xpose.msra.mxu1 %v3759_v63  ;;  %v3798_v2 = vcombine.low %v6203_v38, %v6209_v11  ;;  %v3806_v63 = vcombine.low %v6212_v55, %v6215_v56 }
 0x259   : > { %4420 = vmatprep.subr.bf16.mxu0 %v5230_v14  ;;  %4440 = vmatprep.subr.bf16.mxu1 %v5230_v14 }
 0x260   : > { %4421 = vmatpush3.bf16.xpose.msra.mxu0 %v3752_v18  ;;  %4441 = vmatpush3.bf16.xpose.msra.mxu1 %v3760_v20  ;;  %v6233_v18 = vld [vmem:[%s5551_s0 + $0x10c] sm:$0xf]  ;;  %v3799_v20 = vcombine.low %v6222_v19, %v6227_v8 }
 0x261   : > { %4422 = vmatprep.subr.bf16.mxu0 %v5230_v14  ;;  %4442 = vmatprep.subr.bf16.mxu1 %v5230_v14  ;;  %v3807_v37 = vcombine.low %v6230_v9, %v6233_v18 }
 0x262   : > { %v917_v15 = vpop.f32.mrb[4].mxu0  ;;  %v6160_v16 = vpop.f32.mrb[4].mxu1 }
 0x263   : > { %v928_v44 = vsub.f32 %v917_v15, %v6054_v30  ;;  %v4274_v49 = vpop.f32.mrb[5].mxu0  ;;  %v4294_v51 = vpop.f32.mrb[5].mxu1  ;;  %v6255_v15 = vld [vmem:[%s5551_s0 + $0x114] sm:$0xf] }
 0x264   : > { %v920_v57 = vpop.f32.mrb[6].mxu0  ;;  %v1085_v26 = vpop.f32.mrb[6].mxu1  ;;  %v3808_v49 = vcombine.low %v6252_v43, %v6255_v15  ;;  %v923_v51 = vld [vmem:[#allocation11] sm:$0xff] }
 0x265   : > { %v6164_v13 = vsub.f32 %v928_v44, %v6056_v31  ;;  %v4275_v54 = vpop.f32.mrb[7].mxu0  ;;  %v4295_v58 = vpop.f32.mrb[7].mxu1  ;;  %v3800_v44 = vcombine.low %v6244_v41, %v6249_v42  ;;  %v6262_v57 = vld [vmem:[%s5545_s19 + $0x118] sm:$0xf]  ;;  %v6267_v26 = vld [vmem:[%s5545_s19 + $0x11c] sm:$0xf]  ;;  %v925_v33 = vadd.f32 %v924_v36, %v923_v51 }
 0x266   : > { %v927_v54 = vld [vmem:[#allocation12] sm:$0xff]  ;;  %v3801_v60 = vcombine.low %v6262_v57, %v6267_v26 }
 0x267   : > { %v930_v30 = vadd.f32 %v6164_v13, %v927_v54  ;;  %v6295_v13 = vld [vmem:[%s5545_s19 + $0x124] sm:$0xf]  ;;  %v6362_v54 = vld [vmem:[#allocation7] sm:$0xff] }
 0x268   : > { %4423 = vmatpush3.bf16.xpose.msra.mxu0 %v3753_v27  ;;  %4443 = vmatpush3.bf16.xpose.msra.mxu1 %v3761_v12  ;;  %v6270_v27 = vld [vmem:[%s5551_s0 + $0x118] sm:$0xf]  ;;  %v6273_v12 = vld [vmem:[%s5551_s0 + $0x11c] sm:$0xf]  ;;  %v3802_v3 = vcombine.low %v6290_v46, %v6295_v13 }
 0x269   : > { %4424 = vmatprep.subr.bf16.mxu0 %v5230_v14  ;;  %4444 = vmatprep.subr.bf16.mxu1 %v5230_v14  ;;  %v3809_v45 = vcombine.low %v6270_v27, %v6273_v12 }
 0x270   : > { %4425 = vmatpush3.bf16.xpose.msra.mxu0 %v3754_v39  ;;  %4445 = vmatpush3.bf16.xpose.msra.mxu1 %v3762_v40 }
 0x271   : > { %4426 = vmatprep.subr.bf16.mxu0 %v5230_v14  ;;  %4446 = vmatprep.subr.bf16.mxu1 %v5230_v14 }
 0x278   : > { %4427 = vmatpush3.bf16.xpose.msra.mxu0 %v3755_v52  ;;  %4447 = vmatpush3.bf16.xpose.msra.mxu1 %v3763_v50 }
 0x279   : > { %4428 = vmatprep.subr.bf16.mxu0 %v5230_v14  ;;  %4448 = vmatprep.subr.bf16.mxu1 %v5230_v14 }
 0x280   : > { %4429 = vmatpush3.bf16.xpose.msra.mxu0 %v3756_v28  ;;  %4449 = vmatpush3.bf16.xpose.msra.mxu1 %v3764_v29  ;;  %v3810_v28 = vcombine.low %v6298_v47, %v6301_v61  ;;  %v6308_v29 = vld [vmem:[%s5545_s19 + $0x128] sm:$0xf] }
 0x281   : > { %4430 = vmatprep.subr.bf16.mxu0 %v5230_v14  ;;  %4450 = vmatprep.subr.bf16.mxu1 %v5230_v14  ;;  %v3803_v23 = vcombine.low %v6308_v29, %v6313_v6 }
 0x288   : > { %4431 = vmatpush3.bf16.xpose.msra.mxu0 %v3757_v1  ;;  %4451 = vmatpush3.bf16.xpose.msra.mxu1 %v3765_v22  ;;  %v6334_v1 = vld [vmem:[%s5551_s0 + $0x130] sm:$0xf]  ;;  %v6337_v22 = vld [vmem:[%s5551_s0 + $0x134] sm:$0xf] }
 0x289   : > { %4456 = vmatprep.subr.bf16.mxu0 %v5230_v14  ;;  %4476 = vmatprep.subr.bf16.mxu1 %v5230_v14  ;;  %v3812_v10 = vcombine.low %v6334_v1, %v6337_v22 }
 0x28f   : > { %4433 = vmatmul.mubr.bf16.vlgmr.msra.gmra.mrb[20].mxu0 %v1631_v17  ;;  %4453 = vmatmul.mubr.bf16.vlgmr.msra.gmra.mrb[20].mxu1 %v1629_v48  ;;  %v6349_v48 = vld [vmem:[%s5545_s19 + $0x13c] sm:$0xf]  ;;  %v6352_v17 = vld [vmem:[%s5551_s0 + $0x138] sm:$0xf] }
 0x290   : > { %4457 = vmatpush3.bf16.xpose.msra.mxu0 %v3798_v2  ;;  %4477 = vmatpush3.bf16.xpose.msra.mxu1 %v3806_v63  ;;  %v1957_v2 = vpop.permute.xlu1 %1956  ;;  %v6344_v63 = vld [vmem:[%s5545_s19 + $0x138] sm:$0xf] }
 0x291   : > { %4458 = vmatprep.subr.bf16.mxu0 %v5230_v14  ;;  %4478 = vmatprep.subr.bf16.mxu1 %v5230_v14 }
 0x292   : > { %4472 = vmatprep.mubr.msk.bf16.mxu0 %vm5231_vm0, %v5230_v14  ;;  %4492 = vmatprep.mubr.msk.bf16.mxu1 %vm5231_vm0, %v5230_v14 }
 0x298   : > { %4459 = vmatpush3.bf16.xpose.msra.mxu0 %v3799_v20  ;;  %4479 = vmatpush3.bf16.xpose.msra.mxu1 %v3807_v37  ;;  %v6355_v20 = vld [vmem:[%s5551_s0 + $0x13c] sm:$0xf]  ;;  %v1962_v37 = vpop.permute.xlu1 %1961 }
 0x299   : > { %4460 = vmatprep.subr.bf16.mxu0 %v5230_v14  ;;  %4480 = vmatprep.subr.bf16.mxu1 %v5230_v14  ;;  %v3813_v51 = vcombine.low %v6352_v17, %v6355_v20 }
 0x2a0   : > { %4461 = vmatpush3.bf16.xpose.msra.mxu0 %v3800_v44  ;;  %4481 = vmatpush3.bf16.xpose.msra.mxu1 %v3808_v49  ;;  %v5237_v44 = vmov 7   ;;  %v3805_v49 = vcombine.low %v6344_v63, %v6349_v48 }
 0x2a1   : > { %4462 = vmatprep.subr.bf16.mxu0 %v5230_v14  ;;  %4482 = vmatprep.subr.bf16.mxu1 %v5230_v14 }
 0x2a2   : > { %v1170_v58 = vpop.f32.mrb[8].mxu0  ;;  %v1258_v32 = vpop.f32.mrb[8].mxu1  ;;  %4814 = vset.pattern.permute.xlu1 %v5237_v44  ;;  %4815 = vset.pattern.permute.xlu0 %v5237_v44 }
 0x2a3   : > { %v1265_v62 = vsub.f32 %v6160_v16, %v1170_v58  ;;  %v1269_v4 = vsub.f32 %v1258_v32, %v6160_v16  ;;  %v4314_v39 = vpop.f32.mrb[9].mxu0  ;;  %v4334_v40 = vpop.f32.mrb[9].mxu1  ;;  %2979 = vperm.xlu1 %4814, %v6195_v0   ;;  %v6368_v32 = vld [vmem:[%s7084_s2] sm:$0xff] }
 0x2a4   : > { %v1173_v53 = vpop.f32.mrb[10].mxu0  ;;  %v1261_v59 = vpop.f32.mrb[10].mxu1  ;;  %v1964_v0 = vmul.f32 %v6368_v32, %v1962_v37  ;;  %v2008_v39 = vadd.bf16 %v6215_v56, %v6209_v11  ;;  %v2009_v56 = vadd.bf16 %v6230_v9, %v6222_v19 }
 0x2a5   : > { %v6285_v31 = vadd.f32 %v1265_v62, %v925_v33  ;;  %v1270_v36 = vsub.f32 %v1269_v4, %v1170_v58  ;;  %v4315_v16 = vpop.f32.mrb[11].mxu0  ;;  %v4335_v52 = vpop.f32.mrb[11].mxu1  ;;  %v1959_v58 = vmul.f32 %v6362_v54, %v1957_v2  ;;  %v1966_v33 = vmul.f32 %v6368_v32, %v1957_v2  ;;  %v6385_v59 = vld [vmem:[%s5545_s19 + $0x140] sm:$0xf] }
 0x2a6   : > { %v1967_v62 = vmul.f32 %v6362_v54, %v1962_v37  ;;  %v2007_v4 = vadd.bf16 %v6212_v55, %v6203_v38  ;;  %v6421_v16 = vld [vmem:[%s5545_s19 + $0x150] sm:$0xf]  ;;  %v6424_v52 = vld [vmem:[%s5545_s19 + $0x154] sm:$0xf] }
 0x2a7   : > { %v6287_v50 = vadd.f32 %v1270_v36, %v930_v30  ;;  %2984 = vperm.xlu1 %4814, %v6199_v25   ;;  %v6378_v40 = vsub.f32 %v1959_v58, %v1964_v0  ;;  %v6388_v25 = vld [vmem:[%s5545_s19 + $0x144] sm:$0xf]  ;;  %v6403_v30 = vld [vmem:[%s5545_s19 + $0x148] sm:$0xf]  ;;  %v6406_v36 = vld [vmem:[%s5545_s19 + $0x14c] sm:$0xf]  ;;  %v2016_v58 = vadd.bf16 %v6301_v61, %v6295_v13  ;;  %v2018_v13 = vadd.bf16 %v6319_v7, %v6313_v6 }
 0x2a8   : > { %4463 = vmatpush3.bf16.xpose.msra.mxu0 %v3801_v60  ;;  %4483 = vmatpush3.bf16.xpose.msra.mxu1 %v3809_v45  ;;  %v6380_v53 = vadd.f32 %v1967_v62, %v1966_v33  ;;  %v3814_v60 = vcombine.low %v2007_v4, %v2008_v39  ;;  %v3854_v38 = vcombine.low %v6385_v59, %v6388_v25  ;;  %v6458_v33 = vld [vmem:[%s5545_s19 + $0x160] sm:$0xf]  ;;  %v6475_v61 = vld [vmem:[%s5545_s19 + $0x16c] sm:$0xf]  ;;  %v6489_v7 = vld [vmem:[%s5545_s19 + $0x174] sm:$0xf] }
 0x2a9   : > { %4464 = vmatprep.subr.bf16.mxu0 %v5230_v14  ;;  %4484 = vmatprep.subr.bf16.mxu1 %v5230_v14  ;;  %v1971_v11 = vpack.c.bf16 %v6378_v40, %v6378_v40  ;;  %v2010_v45 = vadd.bf16 %v6233_v18, %v6227_v8  ;;  %v3855_v9 = vcombine.low %v6403_v30, %v6406_v36 }
 0x2aa   : > { %v1972_v55 = vpack.c.bf16 %v6380_v53, %v6380_v53  ;;  %v2011_v8 = vadd.bf16 %v6252_v43, %v6244_v41  ;;  %v2012_v18 = vadd.bf16 %v6255_v15, %v6249_v42  ;;  %v2013_v41 = vadd.bf16 %v6270_v27, %v6262_v57  ;;  %v6435_v43 = vld [vmem:[%s5545_s19 + $0x158] sm:$0xf]  ;;  %v6438_v15 = vld [vmem:[%s5545_s19 + $0x15c] sm:$0xf] }
 0x2ab   : > { %v3815_v19 = vcombine.low %v2009_v56, %v2010_v45  ;;  %v2014_v42 = vadd.bf16 %v6273_v12, %v6267_v26  ;;  %v3857_v2 = vcombine.low %v6435_v43, %v6438_v15  ;;  %v2020_v6 = vadd.bf16 %v6337_v22, %v6331_v24  ;;  %v6495_v24 = vpop.permute.xlu0 %2297 }
 0x2ac   : > { %v2022_v22 = vadd.bf16 %v6355_v20, %v6349_v48  ;;  %v2300_v45 = vmul.f32 %v6362_v54, %v6495_v24  ;;  %v3838_v48 = vld [vmem:[%s5551_s0 + $0x140] sm:$0xf] }
 0x2b0   : > { %4465 = vmatpush3.bf16.xpose.msra.mxu0 %v3802_v3  ;;  %4485 = vmatpush3.bf16.xpose.msra.mxu1 %v3810_v28  ;;  %v3816_v3 = vcombine.low %v2011_v8, %v2012_v18  ;;  %v3856_v28 = vcombine.low %v6421_v16, %v6424_v52  ;;  %v1969_v18 = vadd.f32 %v6380_v53, %v6378_v40 }
 0x2b1   : > { %4466 = vmatprep.subr.bf16.mxu0 %v5230_v14  ;;  %4486 = vmatprep.subr.bf16.mxu1 %v5230_v14 }
 0x2b8   : > { %4467 = vmatpush3.bf16.xpose.msra.mxu0 %v3803_v23  ;;  %4487 = vmatpush3.bf16.xpose.msra.mxu1 %v3811_v34 }
 0x2b9   : > { %4468 = vmatprep.subr.bf16.mxu0 %v5230_v14  ;;  %4488 = vmatprep.subr.bf16.mxu1 %v5230_v14 }
 0x2c0   : > { %4469 = vmatpush3.bf16.xpose.msra.mxu0 %v3804_v21  ;;  %4489 = vmatpush3.bf16.xpose.msra.mxu1 %v3812_v10  ;;  %v3817_v10 = vcombine.low %v2013_v41, %v2014_v42  ;;  %v1970_v42 = vpack.c.bf16 %v1969_v18, %v1969_v18  ;;  %v3853_v18 = vld [vmem:[%s5551_s0 + $0x17c] sm:$0xf] }
 0x2c1   : > { %4470 = vmatprep.subr.bf16.mxu0 %v5230_v14  ;;  %4490 = vmatprep.subr.bf16.mxu1 %v5230_v14 }
 0x2c8   : > { %4471 = vmatpush3.bf16.xpose.msra.mxu0 %v3805_v49  ;;  %4491 = vmatpush3.bf16.xpose.msra.mxu1 %v3813_v51  ;;  %v2015_v51 = vadd.bf16 %v6298_v47, %v6290_v46  ;;  %v2017_v46 = vadd.bf16 %v6316_v5, %v6308_v29  ;;  %v6472_v47 = vld [vmem:[%s5545_s19 + $0x168] sm:$0xf]  ;;  %v2019_v29 = vadd.bf16 %v6334_v1, %v6326_v35  ;;  %v6486_v5 = vld [vmem:[%s5545_s19 + $0x170] sm:$0xf]  ;;  %v6493_v35 = vpop.permute.xlu1 %2302 }
 0x2c9   : > { %4496 = vmatprep.subr.bf16.mxu0 %v5230_v14  ;;  %4516 = vmatprep.subr.bf16.mxu1 %v5230_v14  ;;  %v3859_v39 = vcombine.low %v6472_v47, %v6475_v61  ;;  %v2021_v1 = vadd.bf16 %v6352_v17, %v6344_v63  ;;  %v2305_v56 = vmul.f32 %v6368_v32, %v6493_v35  ;;  %v3839_v17 = vld [vmem:[%s5551_s0 + $0x144] sm:$0xf] }
 0x2ca   : > { %v3818_v0 = vcombine.low %v2015_v51, %v2016_v58  ;;  %v3819_v4 = vcombine.low %v2017_v46, %v2018_v13  ;;  %v2349_v8 = vadd.bf16 %v3839_v17, %v6388_v25 }
 0x2cb   : > { %v6517_v20 = vsub.f32 %v2300_v45, %v2305_v56  ;;  %v3848_v56 = vld [vmem:[%s5551_s0 + $0x168] sm:$0xf]  ;;  %v3849_v45 = vld [vmem:[%s5551_s0 + $0x16c] sm:$0xf] }
 0x2cf   : > { %4473 = vmatmul.mubr.bf16.vlgmr.msra.gmra.mrb[24].mxu0 %v1971_v11  ;;  %4493 = vmatmul.mubr.bf16.vlgmr.msra.gmra.mrb[24].mxu1 %v1972_v55  ;;  %v6504_v11 = vld [vmem:[%s5545_s19 + $0x178] sm:$0xf]  ;;  %v6507_v55 = vld [vmem:[%s5545_s19 + $0x17c] sm:$0xf] }
 0x2d0   : > { %4497 = vmatpush3.bf16.xpose.msra.mxu0 %v3814_v60  ;;  %4517 = vmatpush3.bf16.xpose.msra.mxu1 %v3854_v38  ;;  %v3820_v60 = vcombine.low %v2019_v29, %v2020_v6  ;;  %v3860_v38 = vcombine.low %v6486_v5, %v6489_v7  ;;  %v3861_v63 = vcombine.low %v6504_v11, %v6507_v55  ;;  %v3846_v6 = vld [vmem:[%s5551_s0 + $0x160] sm:$0xf] }
 0x2d1   : > { %4498 = vmatprep.subr.bf16.mxu0 %v5230_v14  ;;  %4518 = vmatprep.subr.bf16.mxu1 %v5230_v14 }
 0x2d2   : > { %4512 = vmatprep.mubr.msk.bf16.mxu0 %vm5231_vm0, %v5230_v14  ;;  %4532 = vmatprep.mubr.msk.bf16.mxu1 %vm5231_vm0, %v5230_v14 }
 0x2d8   : > { %4499 = vmatpush3.bf16.xpose.msra.mxu0 %v3815_v19  ;;  %4519 = vmatpush3.bf16.xpose.msra.mxu1 %v3855_v9  ;;  %v3821_v19 = vcombine.low %v2021_v1, %v2022_v22  ;;  %v2348_v9 = vadd.bf16 %v3838_v48, %v6385_v59 }
 0x2d9   : > { %4500 = vmatprep.subr.bf16.mxu0 %v5230_v14  ;;  %4520 = vmatprep.subr.bf16.mxu1 %v5230_v14 }
 0x2da   : > { %v3870_v41 = vcombine.low %v2348_v9, %v2349_v8  ;;  %v3852_v8 = vld [vmem:[%s5551_s0 + $0x178] sm:$0xf] }
 0x2e0   : > { %4501 = vmatpush3.bf16.xpose.msra.mxu0 %v3816_v3  ;;  %4521 = vmatpush3.bf16.xpose.msra.mxu1 %v3856_v28  ;;  %v2312_v3 = vpack.c.bf16 %v6517_v20, %v6517_v20  ;;  %v3862_v28 = vcombine.low %v3838_v48, %v3839_v17  ;;  %v3851_v48 = vld [vmem:[%s5551_s0 + $0x174] sm:$0xf] }
 0x2e1   : > { %4502 = vmatprep.subr.bf16.mxu0 %v5230_v14  ;;  %4522 = vmatprep.subr.bf16.mxu1 %v5230_v14  ;;  %v2361_v9 = vadd.bf16 %v3851_v48, %v6489_v7  ;;  %v2307_v7 = vmul.f32 %v6368_v32, %v6495_v24  ;;  %v6594_v24 = vld [vmem:[%s5551_s0 + $0x180] sm:$0xf] }
 0x2e2   : > { %v6440_v23 = vpop.f32.mrb[12].mxu0  ;;  %v6442_v34 = vpop.f32.mrb[12].mxu1 }
 0x2e3   : > { %v1606_v21 = vsub.f32 %v6440_v23, %v6442_v34  ;;  %v4354_v57 = vpop.f32.mrb[13].mxu0  ;;  %v4374_v27 = vpop.f32.mrb[13].mxu1 }
 0x2e4   : > { %v1426_v26 = vpop.f32.mrb[14].mxu0  ;;  %v1514_v12 = vpop.f32.mrb[14].mxu1  ;;  %v3841_v57 = vld [vmem:[%s5551_s0 + $0x14c] sm:$0xf]  ;;  %v3842_v27 = vld [vmem:[%s5551_s0 + $0x150] sm:$0xf] }
 0x2e5   : > { %v6449_v37 = vadd.f32 %v1606_v21, %v6285_v31  ;;  %v4355_v44 = vpop.f32.mrb[15].mxu0  ;;  %v4375_v49 = vpop.f32.mrb[15].mxu1  ;;  %v6461_v31 = vld [vmem:[%s5545_s19 + $0x164] sm:$0xf]  ;;  %v3840_v21 = vld [vmem:[%s5551_s0 + $0x148] sm:$0xf]  ;;  %v2351_v53 = vadd.bf16 %v3841_v57, %v6406_v36 }
 0x2e6   : > { %v3858_v62 = vcombine.low %v6458_v33, %v6461_v31  ;;  %v2350_v40 = vadd.bf16 %v3840_v21, %v6403_v30  ;;  %v3863_v59 = vcombine.low %v3840_v21, %v3841_v57  ;;  %v3843_v26 = vld [vmem:[%s5551_s0 + $0x154] sm:$0xf]  ;;  %v2352_v30 = vadd.bf16 %v3842_v27, %v6421_v16  ;;  %v3845_v44 = vld [vmem:[%s5551_s0 + $0x15c] sm:$0xf]  ;;  %v6597_v57 = vld [vmem:[%s5551_s0 + $0x184] sm:$0xf] }
 0x2e7   : > { %v2353_v36 = vadd.bf16 %v3843_v26, %v6424_v52  ;;  %v3864_v12 = vcombine.low %v3842_v27, %v3843_v26  ;;  %v2355_v51 = vadd.bf16 %v3845_v44, %v6438_v15  ;;  %v6609_v27 = vld [vmem:[%s5545_s19 + $0x18c] sm:$0xf]  ;;  %v6612_v26 = vld [vmem:[%s5551_s0 + $0x188] sm:$0xf] }
 0x2e8   : > { %4503 = vmatpush3.bf16.xpose.msra.mxu0 %v3817_v10  ;;  %4523 = vmatpush3.bf16.xpose.msra.mxu1 %v3857_v2  ;;  %v3871_v25 = vcombine.low %v2350_v40, %v2351_v53  ;;  %v3844_v2 = vld [vmem:[%s5551_s0 + $0x158] sm:$0xf]  ;;  %v3918_v53 = vcombine.low %v6594_v24, %v6597_v57 }
 0x2e9   : > { %4504 = vmatprep.subr.bf16.mxu0 %v5230_v14  ;;  %4524 = vmatprep.subr.bf16.mxu1 %v5230_v14  ;;  %v3872_v10 = vcombine.low %v2352_v30, %v2353_v36  ;;  %v2354_v49 = vadd.bf16 %v3844_v2, %v6435_v43  ;;  %v6615_v30 = vld [vmem:[%s5551_s0 + $0x18c] sm:$0xf] }
 0x2eb   : > { %v3873_v43 = vcombine.low %v2354_v49, %v2355_v51  ;;  %v6637_v49 = vld [vmem:[%s5551_s0 + $0x194] sm:$0xf] }
 0x2f0   : > { %4505 = vmatpush3.bf16.xpose.msra.mxu0 %v3818_v0  ;;  %4525 = vmatpush3.bf16.xpose.msra.mxu1 %v3858_v62 }
 0x2f1   : > { %4506 = vmatprep.subr.bf16.mxu0 %v5230_v14  ;;  %4526 = vmatprep.subr.bf16.mxu1 %v5230_v14 }
 0x2f8   : > { %4507 = vmatpush3.bf16.xpose.msra.mxu0 %v3819_v4  ;;  %4527 = vmatpush3.bf16.xpose.msra.mxu1 %v3859_v39  ;;  %v3865_v4 = vcombine.low %v3844_v2, %v3845_v44  ;;  %v6631_v2 = vld [vmem:[%s5545_s19 + $0x194] sm:$0xf]  ;;  %v6634_v44 = vld [vmem:[%s5551_s0 + $0x190] sm:$0xf] }
 0x2f9   : > { %4508 = vmatprep.subr.bf16.mxu0 %v5230_v14  ;;  %4528 = vmatprep.subr.bf16.mxu1 %v5230_v14 }
 0x300   : > { %4509 = vmatpush3.bf16.xpose.msra.mxu0 %v3820_v60  ;;  %4529 = vmatpush3.bf16.xpose.msra.mxu1 %v3860_v38  ;;  %v3847_v60 = vld [vmem:[%s5551_s0 + $0x164] sm:$0xf] }
 0x301   : > { %4510 = vmatprep.subr.bf16.mxu0 %v5230_v14  ;;  %4530 = vmatprep.subr.bf16.mxu1 %v5230_v14  ;;  %v2357_v1 = vadd.bf16 %v3847_v60, %v6461_v31 }
 0x308   : > { %4511 = vmatpush3.bf16.xpose.msra.mxu0 %v3821_v19  ;;  %4531 = vmatpush3.bf16.xpose.msra.mxu1 %v3861_v63  ;;  %v2359_v19 = vadd.bf16 %v3849_v45, %v6475_v61  ;;  %v3850_v63 = vld [vmem:[%s5551_s0 + $0x170] sm:$0xf] }
 0x309   : > { %4536 = vmatprep.subr.bf16.mxu0 %v5230_v14  ;;  %4556 = vmatprep.subr.bf16.mxu1 %v5230_v14  ;;  %v2360_v17 = vadd.bf16 %v3850_v63, %v6486_v5  ;;  %v2308_v5 = vmul.f32 %v6362_v54, %v6493_v35  ;;  %v6591_v35 = vld [vmem:[%s5545_s19 + $0x184] sm:$0xf] }
 0x30b   : > { %v3876_v61 = vcombine.low %v2360_v17, %v2361_v9  ;;  %v2309_v21 = vadd.f32 %v2308_v5, %v2307_v7  ;;  %v6696_v17 = vld [vmem:[%s5551_s0 + $0x1a8] sm:$0xf]  ;;  %v6699_v9 = vld [vmem:[%s5551_s0 + $0x1ac] sm:$0xf] }
 0x30f   : > { %4513 = vmatmul.mubr.bf16.vlgmr.msra.gmra.mrb[28].mxu0 %v1970_v42  ;;  %4533 = vmatmul.mubr.bf16.vlgmr.msra.gmra.mrb[28].mxu1 %v2312_v3  ;;  %v2362_v3 = vadd.bf16 %v3852_v8, %v6504_v11  ;;  %v6585_v11 = vld [vmem:[%s5545_s19 + $0x180] sm:$0xf] }
 0x310   : > { %4537 = vmatpush3.bf16.xpose.msra.mxu0 %v3862_v28  ;;  %4557 = vmatpush3.bf16.xpose.msra.mxu1 %v3870_v41  ;;  %v2363_v28 = vadd.bf16 %v3853_v18, %v6507_v55  ;;  %v3869_v41 = vcombine.low %v3852_v8, %v3853_v18  ;;  %v2310_v55 = vadd.f32 %v2309_v21, %v6517_v20  ;;  %v6706_v8 = vld [vmem:[%s5545_s19 + $0x1b0] sm:$0xf]  ;;  %v6711_v18 = vld [vmem:[%s5545_s19 + $0x1b4] sm:$0xf] }
 0x311   : > { %4538 = vmatprep.subr.bf16.mxu0 %v5230_v14  ;;  %4558 = vmatprep.subr.bf16.mxu1 %v5230_v14  ;;  %v3910_v40 = vcombine.low %v6585_v11, %v6591_v35  ;;  %v3916_v5 = vcombine.low %v6706_v8, %v6711_v18 }
 0x312   : > { %4552 = vmatprep.mubr.msk.bf16.mxu0 %vm5231_vm0, %v5230_v14  ;;  %4572 = vmatprep.mubr.msk.bf16.mxu1 %vm5231_vm0, %v5230_v14  ;;  %v3877_v42 = vcombine.low %v2362_v3, %v2363_v28  ;;  %v2311_v20 = vpack.c.bf16 %v2310_v55, %v2310_v55  ;;  %v6714_v3 = vld [vmem:[%s5551_s0 + $0x1b0] sm:$0xf]  ;;  %v6717_v28 = vld [vmem:[%s5551_s0 + $0x1b4] sm:$0xf]  ;;  %v6729_v55 = vld [vmem:[%s5545_s19 + $0x1bc] sm:$0xf] }
 0x313   : > { %v3924_v7 = vcombine.low %v6714_v3, %v6717_v28 }
 0x318   : > { %4539 = vmatpush3.bf16.xpose.msra.mxu0 %v3863_v59  ;;  %4559 = vmatpush3.bf16.xpose.msra.mxu1 %v3871_v25  ;;  %v2313_v59 = vpack.c.bf16 %v2309_v21, %v2309_v21  ;;  %v6604_v25 = vld [vmem:[%s5545_s19 + $0x188] sm:$0xf]  ;;  %v6724_v21 = vld [vmem:[%s5545_s19 + $0x1b8] sm:$0xf] }
 0x319   : > { %4540 = vmatprep.subr.bf16.mxu0 %v5230_v14  ;;  %4560 = vmatprep.subr.bf16.mxu1 %v5230_v14  ;;  %v3911_v36 = vcombine.low %v6604_v25, %v6609_v27 }
 0x320   : > { %4541 = vmatpush3.bf16.xpose.msra.mxu0 %v3864_v12  ;;  %4561 = vmatpush3.bf16.xpose.msra.mxu1 %v3872_v10  ;;  %v3919_v12 = vcombine.low %v6612_v26, %v6615_v30  ;;  %v6626_v10 = vld [vmem:[%s5545_s19 + $0x190] sm:$0xf] }
 0x321   : > { %4542 = vmatprep.subr.bf16.mxu0 %v5230_v14  ;;  %4562 = vmatprep.subr.bf16.mxu1 %v5230_v14  ;;  %v3912_v51 = vcombine.low %v6626_v10, %v6631_v2 }
 0x322   : > { %v1599_v16 = vpop.f32.mrb[16].mxu0  ;;  %v6549_v52 = vpop.f32.mrb[16].mxu1 }
 0x323   : > { %v1610_v58 = vsub.f32 %v1599_v16, %v6440_v23  ;;  %v4394_v0 = vpop.f32.mrb[17].mxu0  ;;  %v4414_v62 = vpop.f32.mrb[17].mxu1  ;;  %v2356_v23 = vadd.bf16 %v3846_v6, %v6458_v33  ;;  %v3867_v33 = vcombine.low %v3848_v56, %v3849_v45  ;;  %v3920_v16 = vcombine.low %v6634_v44, %v6637_v49 }
 0x324   : > { %v1602_v46 = vpop.f32.mrb[18].mxu0  ;;  %v1767_v13 = vpop.f32.mrb[18].mxu1  ;;  %v6649_v0 = vld [vmem:[%s5545_s19 + $0x19c] sm:$0xf]  ;;  %v6652_v62 = vld [vmem:[%s5551_s0 + $0x198] sm:$0xf] }
 0x325   : > { %v1611_v15 = vsub.f32 %v1610_v58, %v6442_v34  ;;  %v4395_v39 = vpop.f32.mrb[19].mxu0  ;;  %v4415_v29 = vpop.f32.mrb[19].mxu1  ;;  %v3866_v34 = vcombine.low %v3846_v6, %v3847_v60  ;;  %v3874_v22 = vcombine.low %v2356_v23, %v2357_v1  ;;  %v6644_v58 = vld [vmem:[%s5545_s19 + $0x198] sm:$0xf]  ;;  %v6655_v46 = vld [vmem:[%s5551_s0 + $0x19c] sm:$0xf] }
 0x326   : > { %v3913_v23 = vcombine.low %v6644_v58, %v6649_v0  ;;  %v3921_v1 = vcombine.low %v6652_v62, %v6655_v46 }
 0x327   : > { %v6556_v38 = vadd.f32 %v1611_v15, %v6287_v50  ;;  %v2358_v50 = vadd.bf16 %v3848_v56, %v6472_v47  ;;  %v3868_v47 = vcombine.low %v3850_v63, %v3851_v48  ;;  %v6688_v63 = vld [vmem:[%s5545_s19 + $0x1a8] sm:$0xf]  ;;  %v6693_v48 = vld [vmem:[%s5545_s19 + $0x1ac] sm:$0xf] }
 0x328   : > { %4543 = vmatpush3.bf16.xpose.msra.mxu0 %v3865_v4  ;;  %4563 = vmatpush3.bf16.xpose.msra.mxu1 %v3873_v43 }
 0x329   : > { %4544 = vmatprep.subr.bf16.mxu0 %v5230_v14  ;;  %4564 = vmatprep.subr.bf16.mxu1 %v5230_v14  ;;  %v3875_v31 = vcombine.low %v2358_v50, %v2359_v19  ;;  %v6670_v50 = vld [vmem:[%s5545_s19 + $0x1a0] sm:$0xf] }
 0x32a   : > { %v6678_v19 = vld [vmem:[%s5551_s0 + $0x1a0] sm:$0xf] }
 0x330   : > { %4545 = vmatpush3.bf16.xpose.msra.mxu0 %v3866_v34  ;;  %4565 = vmatpush3.bf16.xpose.msra.mxu1 %v3874_v22 }
 0x331   : > { %4546 = vmatprep.subr.bf16.mxu0 %v5230_v14  ;;  %4566 = vmatprep.subr.bf16.mxu1 %v5230_v14 }
 0x338   : > { %4547 = vmatpush3.bf16.xpose.msra.mxu0 %v3867_v33  ;;  %4567 = vmatpush3.bf16.xpose.msra.mxu1 %v3875_v31  ;;  %v6681_v33 = vld [vmem:[%s5551_s0 + $0x1a4] sm:$0xf] }
 0x339   : > { %4548 = vmatprep.subr.bf16.mxu0 %v5230_v14  ;;  %4568 = vmatprep.subr.bf16.mxu1 %v5230_v14  ;;  %v3922_v31 = vcombine.low %v6678_v19, %v6681_v33 }
 0x340   : > { %4549 = vmatpush3.bf16.xpose.msra.mxu0 %v3868_v47  ;;  %4569 = vmatpush3.bf16.xpose.msra.mxu1 %v3876_v61  ;;  %v3915_v47 = vcombine.low %v6688_v63, %v6693_v48  ;;  %v3923_v61 = vcombine.low %v6696_v17, %v6699_v9 }
 0x341   : > { %4550 = vmatprep.subr.bf16.mxu0 %v5230_v14  ;;  %4570 = vmatprep.subr.bf16.mxu1 %v5230_v14 }
 0x348   : > { %4551 = vmatpush3.bf16.xpose.msra.mxu0 %v3869_v41  ;;  %4571 = vmatpush3.bf16.xpose.msra.mxu1 %v3877_v42  ;;  %v2639_v41 = vpop.permute.xlu1 %2638  ;;  %v2644_v42 = vpop.permute.xlu0 %2643 }
 0x349   : > { %4576 = vmatprep.subr.bf16.mxu0 %v5230_v14  ;;  %4596 = vmatprep.subr.bf16.mxu1 %v5230_v14 }
 0x34f   : > { %4553 = vmatmul.mubr.bf16.vlgmr.msra.gmra.mrb[32].mxu0 %v2313_v59  ;;  %4573 = vmatmul.mubr.bf16.vlgmr.msra.gmra.mrb[32].mxu1 %v2311_v20  ;;  %v2641_v20 = vmul.f32 %v6362_v54, %v2639_v41  ;;  %v2648_v59 = vmul.f32 %v6368_v32, %v2639_v41 }
 0x350   : > { %4577 = vmatpush3.bf16.xpose.msra.mxu0 %v3910_v40  ;;  %4597 = vmatpush3.bf16.xpose.msra.mxu1 %v3918_v53  ;;  %v6732_v40 = vld [vmem:[%s5551_s0 + $0x1b8] sm:$0xf]  ;;  %v6735_v53 = vld [vmem:[%s5551_s0 + $0x1bc] sm:$0xf] }
 0x351   : > { %4578 = vmatprep.subr.bf16.mxu0 %v5230_v14  ;;  %4598 = vmatprep.subr.bf16.mxu1 %v5230_v14 }
 0x352   : > { %4592 = vmatprep.mubr.msk.bf16.mxu0 %vm5231_vm0, %v5230_v14  ;;  %4612 = vmatprep.mubr.msk.bf16.mxu1 %vm5231_vm0, %v5230_v14 }
 0x358   : > { %4579 = vmatpush3.bf16.xpose.msra.mxu0 %v3911_v36  ;;  %4599 = vmatpush3.bf16.xpose.msra.mxu1 %v3919_v12  ;;  %v2646_v36 = vmul.f32 %v6368_v32, %v2644_v42  ;;  %v2649_v12 = vmul.f32 %v6362_v54, %v2644_v42 }
 0x359   : > { %4580 = vmatprep.subr.bf16.mxu0 %v5230_v14  ;;  %4600 = vmatprep.subr.bf16.mxu1 %v5230_v14 }
 0x360   : > { %4581 = vmatpush3.bf16.xpose.msra.mxu0 %v3912_v51  ;;  %4601 = vmatpush3.bf16.xpose.msra.mxu1 %v3920_v16  ;;  %v3917_v51 = vcombine.low %v6724_v21, %v6729_v55  ;;  %v3925_v16 = vcombine.low %v6732_v40, %v6735_v53 }
 0x361   : > { %4582 = vmatprep.subr.bf16.mxu0 %v5230_v14  ;;  %4602 = vmatprep.subr.bf16.mxu1 %v5230_v14 }
 0x362   : > { %v1852_v13 = vpop.f32.mrb[20].mxu0  ;;  %v1940_v4 = vpop.f32.mrb[20].mxu1 }
 0x363   : > { %v1947_v43 = vsub.f32 %v6549_v52, %v1852_v13  ;;  %v1951_v15 = vsub.f32 %v1940_v4, %v6549_v52  ;;  %v4434_v39 = vpop.f32.mrb[21].mxu0  ;;  %v4454_v29 = vpop.f32.mrb[21].mxu1  ;;  %v6747_v4 = vadd.f32 %v2649_v12, %v2648_v59  ;;  %v2697_v59 = vadd.bf16 %v6678_v19, %v6670_v50  ;;  %v6829_v12 = vld [vmem:[%s5545_s19 + $0x1e0] sm:$0xf]  ;;  %v6843_v19 = vld [vmem:[%s5545_s19 + $0x1e8] sm:$0xf] }
 0x364   : > { %v1855_v6 = vpop.f32.mrb[22].mxu0  ;;  %v1943_v60 = vpop.f32.mrb[22].mxu1  ;;  %v6756_v39 = vld [vmem:[%s5545_s19 + $0x1c0] sm:$0xf]  ;;  %v6759_v29 = vld [vmem:[%s5545_s19 + $0x1c4] sm:$0xf] }
 0x365   : > { %v6664_v34 = vadd.f32 %v1947_v43, %v6449_v37  ;;  %v1952_v22 = vsub.f32 %v1951_v15, %v1852_v13  ;;  %v4435_v56 = vpop.f32.mrb[23].mxu0  ;;  %v4455_v52 = vpop.f32.mrb[23].mxu1  ;;  %v6675_v37 = vld [vmem:[%s5545_s19 + $0x1a4] sm:$0xf]  ;;  %v6745_v13 = vsub.f32 %v2641_v20, %v2646_v36  ;;  %v2689_v43 = vadd.bf16 %v6594_v24, %v6585_v11 }
 0x366   : > { %v2690_v15 = vadd.bf16 %v6597_v57, %v6591_v35  ;;  %v2654_v60 = vpack.c.bf16 %v6747_v4, %v6747_v4  ;;  %v3966_v35 = vcombine.low %v6756_v39, %v6759_v29  ;;  %v2691_v24 = vadd.bf16 %v6612_v26, %v6604_v25  ;;  %v6795_v56 = vld [vmem:[%s5545_s19 + $0x1d4] sm:$0xf] }
 0x367   : > { %v6667_v45 = vadd.f32 %v1952_v22, %v6556_v38  ;;  %v3914_v38 = vcombine.low %v6670_v50, %v6675_v37  ;;  %v2653_v6 = vpack.c.bf16 %v6745_v13, %v6745_v13  ;;  %v2692_v57 = vadd.bf16 %v6615_v30, %v6609_v27  ;;  %v6792_v22 = vld [vmem:[%s5545_s19 + $0x1d0] sm:$0xf] }
 0x368   : > { %4583 = vmatpush3.bf16.xpose.msra.mxu0 %v3913_v23  ;;  %4603 = vmatpush3.bf16.xpose.msra.mxu1 %v3921_v1  ;;  %v3926_v11 = vcombine.low %v2689_v43, %v2690_v15  ;;  %v6774_v23 = vld [vmem:[%s5545_s19 + $0x1c8] sm:$0xf]  ;;  %v6777_v1 = vld [vmem:[%s5545_s19 + $0x1cc] sm:$0xf]  ;;  %v2693_v27 = vadd.bf16 %v6634_v44, %v6626_v10  ;;  %v2694_v30 = vadd.bf16 %v6637_v49, %v6631_v2  ;;  %v6806_v44 = vld [vmem:[%s5545_s19 + $0x1d8] sm:$0xf] }
 0x369   : > { %4584 = vmatprep.subr.bf16.mxu0 %v5230_v14  ;;  %4604 = vmatprep.subr.bf16.mxu1 %v5230_v14  ;;  %v3927_v25 = vcombine.low %v2691_v24, %v2692_v57  ;;  %v3967_v26 = vcombine.low %v6774_v23, %v6777_v1  ;;  %v2695_v10 = vadd.bf16 %v6652_v62, %v6644_v58  ;;  %v6809_v49 = vld [vmem:[%s5545_s19 + $0x1dc] sm:$0xf] }
 0x36a   : > { %v3928_v52 = vcombine.low %v2693_v27, %v2694_v30  ;;  %v2696_v2 = vadd.bf16 %v6655_v46, %v6649_v0  ;;  %v2698_v36 = vadd.bf16 %v6681_v33, %v6675_v37  ;;  %v2699_v50 = vadd.bf16 %v6696_v17, %v6688_v63  ;;  %v6846_v33 = vld [vmem:[%s5545_s19 + $0x1ec] sm:$0xf]  ;;  %v6857_v17 = vld [vmem:[%s5545_s19 + $0x1f0] sm:$0xf] }
 0x36b   : > { %v2700_v37 = vadd.bf16 %v6699_v9, %v6693_v48  ;;  %v3971_v15 = vcombine.low %v6843_v19, %v6846_v33  ;;  %v2701_v63 = vadd.bf16 %v6714_v3, %v6706_v8  ;;  %v2702_v48 = vadd.bf16 %v6717_v28, %v6711_v18  ;;  %v6860_v9 = vld [vmem:[%s5545_s19 + $0x1f4] sm:$0xf]  ;;  %v6873_v3 = vld [vmem:[%s5545_s19 + $0x1f8] sm:$0xf]  ;;  %v6876_v28 = vld [vmem:[%s5545_s19 + $0x1fc] sm:$0xf] }
 0x36c   : > { %v2703_v8 = vadd.bf16 %v6732_v40, %v6724_v21  ;;  %v2704_v18 = vadd.bf16 %v6735_v53, %v6729_v55  ;;  %v3973_v57 = vcombine.low %v6873_v3, %v6876_v28  ;;  %v3950_v40 = vld [vmem:[%s5551_s0 + $0x1c0] sm:$0xf]  ;;  %v3951_v53 = vld [vmem:[%s5551_s0 + $0x1c4] sm:$0xf]  ;;  %v2651_v27 = vadd.f32 %v6747_v4, %v6745_v13 }
 0x36d   : > { %v3931_v43 = vcombine.low %v2699_v50, %v2700_v37 }
 0x36e   : > { %v3933_v24 = vcombine.low %v2703_v8, %v2704_v18  ;;  %v3960_v18 = vld [vmem:[%s5551_s0 + $0x1e8] sm:$0xf] }
 0x370   : > { %4585 = vmatpush3.bf16.xpose.msra.mxu0 %v3914_v38  ;;  %4605 = vmatpush3.bf16.xpose.msra.mxu1 %v3922_v31  ;;  %v3968_v38 = vcombine.low %v6792_v22, %v6795_v56 }
 0x371   : > { %4586 = vmatprep.subr.bf16.mxu0 %v5230_v14  ;;  %4606 = vmatprep.subr.bf16.mxu1 %v5230_v14 }
 0x378   : > { %4587 = vmatpush3.bf16.xpose.msra.mxu0 %v3915_v47  ;;  %4607 = vmatpush3.bf16.xpose.msra.mxu1 %v3923_v61 }
 0x379   : > { %4588 = vmatprep.subr.bf16.mxu0 %v5230_v14  ;;  %4608 = vmatprep.subr.bf16.mxu1 %v5230_v14 }
 0x380   : > { %4589 = vmatpush3.bf16.xpose.msra.mxu0 %v3916_v5  ;;  %4609 = vmatpush3.bf16.xpose.msra.mxu1 %v3924_v7  ;;  %v3929_v5 = vcombine.low %v2695_v10, %v2696_v2  ;;  %v3969_v7 = vcombine.low %v6806_v44, %v6809_v49  ;;  %v3953_v2 = vld [vmem:[%s5551_s0 + $0x1cc] sm:$0xf] }
 0x381   : > { %4590 = vmatprep.subr.bf16.mxu0 %v5230_v14  ;;  %4610 = vmatprep.subr.bf16.mxu1 %v5230_v14  ;;  %v3033_v4 = vadd.bf16 %v3953_v2, %v6777_v1 }
 0x388   : > { %4591 = vmatpush3.bf16.xpose.msra.mxu0 %v3917_v51  ;;  %4611 = vmatpush3.bf16.xpose.msra.mxu1 %v3925_v16  ;;  %v3930_v51 = vcombine.low %v2697_v59, %v2698_v36 }
 0x389   : > { %4616 = vmatprep.subr.bf16.mxu0 %v5230_v14  ;;  %4636 = vmatprep.subr.bf16.mxu1 %v5230_v14 }
 0x38f   : > { %4593 = vmatmul.mubr.bf16.vlgmr.msra.gmra.mrb[36].mxu0 %v2653_v6  ;;  %4613 = vmatmul.mubr.bf16.vlgmr.msra.gmra.mrb[36].mxu1 %v2654_v60  ;;  %v3932_v6 = vcombine.low %v2701_v63, %v2702_v48  ;;  %v3972_v60 = vcombine.low %v6857_v17, %v6860_v9  ;;  %v3958_v63 = vld [vmem:[%s5551_s0 + $0x1e0] sm:$0xf]  ;;  %v3959_v48 = vld [vmem:[%s5551_s0 + $0x1e4] sm:$0xf] }
 0x390   : > { %4617 = vmatpush3.bf16.xpose.msra.mxu0 %v3926_v11  ;;  %4637 = vmatpush3.bf16.xpose.msra.mxu1 %v3966_v35  ;;  %v6864_v11 = vpop.permute.xlu1 %2979  ;;  %v3978_v8 = vcombine.low %v3958_v63, %v3959_v48 }
 0x391   : > { %4618 = vmatprep.subr.bf16.mxu0 %v5230_v14  ;;  %4638 = vmatprep.subr.bf16.mxu1 %v5230_v14  ;;  %v2982_v21 = vmul.f32 %v6362_v54, %v6864_v11  ;;  %v3974_v54 = vcombine.low %v3950_v40, %v3951_v53 }
 0x392   : > { %4632 = vmatprep.mubr.msk.bf16.mxu0 %vm5231_vm0, %v5230_v14  ;;  %4652 = vmatprep.mubr.msk.bf16.mxu1 %vm5231_vm0, %v5230_v14 }
 0x394   : > { %v6878_v35 = vpop.permute.xlu1 %2984 }
 0x395   : > { %v2987_v55 = vmul.f32 %v6368_v32, %v6878_v35 }
 0x397   : > { %v6892_v30 = vsub.f32 %v2982_v21, %v2987_v55  ;;  %v3962_v21 = vld [vmem:[%s5551_s0 + $0x1f0] sm:$0xf]  ;;  %v3963_v55 = vld [vmem:[%s5551_s0 + $0x1f4] sm:$0xf] }
 0x398   : > { %4619 = vmatpush3.bf16.xpose.msra.mxu0 %v3927_v25  ;;  %4639 = vmatpush3.bf16.xpose.msra.mxu1 %v3967_v26  ;;  %v3030_v25 = vadd.bf16 %v3950_v40, %v6756_v39  ;;  %v3031_v26 = vadd.bf16 %v3951_v53, %v6759_v29  ;;  %v3952_v39 = vld [vmem:[%s5551_s0 + $0x1c8] sm:$0xf]  ;;  %v3042_v40 = vadd.bf16 %v3962_v21, %v6857_v17  ;;  %v4948_v17 = vld [vmem:[#allocation7] sm:$0xff] }
 0x399   : > { %4620 = vmatprep.subr.bf16.mxu0 %v5230_v14  ;;  %4640 = vmatprep.subr.bf16.mxu1 %v5230_v14  ;;  %v2994_v10 = vpack.c.bf16 %v6892_v30, %v6892_v30  ;;  %v3032_v13 = vadd.bf16 %v3952_v39, %v6774_v23  ;;  %v3975_v29 = vcombine.low %v3952_v39, %v3953_v2 }
 0x39a   : > { %v3043_v53 = vadd.bf16 %v3963_v55, %v6860_v9  ;;  %v2990_v9 = vmul.f32 %v4948_v17, %v6878_v35 }
 0x3a0   : > { %4621 = vmatpush3.bf16.xpose.msra.mxu0 %v3928_v52  ;;  %4641 = vmatpush3.bf16.xpose.msra.mxu1 %v3968_v38  ;;  %v3982_v52 = vcombine.low %v3030_v25, %v3031_v26  ;;  %v2652_v38 = vpack.c.bf16 %v2651_v27, %v2651_v27  ;;  %v3964_v25 = vld [vmem:[%s5551_s0 + $0x1f8] sm:$0xf]  ;;  %v3965_v26 = vld [vmem:[%s5551_s0 + $0x1fc] sm:$0xf] }
 0x3a1   : > { %4622 = vmatprep.subr.bf16.mxu0 %v5230_v14  ;;  %4642 = vmatprep.subr.bf16.mxu1 %v5230_v14  ;;  %v3044_v27 = vadd.bf16 %v3964_v25, %v6873_v3 }
 0x3a2   : > { %v6811_v31 = vpop.f32.mrb[24].mxu0  ;;  %v6813_v47 = vpop.f32.mrb[24].mxu1 }
 0x3a3   : > { %v2288_v61 = vsub.f32 %v6811_v31, %v6813_v47  ;;  %v4474_v58 = vpop.f32.mrb[25].mxu0  ;;  %v4494_v62 = vpop.f32.mrb[25].mxu1 }
 0x3a4   : > { %v2108_v0 = vpop.f32.mrb[26].mxu0  ;;  %v2196_v46 = vpop.f32.mrb[26].mxu1  ;;  %v3954_v58 = vld [vmem:[%s5551_s0 + $0x1d0] sm:$0xf]  ;;  %v3955_v62 = vld [vmem:[%s5551_s0 + $0x1d4] sm:$0xf] }
 0x3a5   : > { %v6820_v41 = vadd.f32 %v2288_v61, %v6664_v34  ;;  %v4475_v42 = vpop.f32.mrb[27].mxu0  ;;  %v4495_v20 = vpop.f32.mrb[27].mxu1  ;;  %v6832_v34 = vld [vmem:[%s5545_s19 + $0x1e4] sm:$0xf]  ;;  %v3983_v61 = vcombine.low %v3032_v13, %v3033_v4  ;;  %v3034_v23 = vadd.bf16 %v3954_v58, %v6792_v22  ;;  %v3035_v1 = vadd.bf16 %v3955_v62, %v6795_v56 }
 0x3a6   : > { %v3970_v16 = vcombine.low %v6829_v12, %v6832_v34  ;;  %v3976_v0 = vcombine.low %v3954_v58, %v3955_v62 }
 0x3a7   : > { %v3984_v46 = vcombine.low %v3034_v23, %v3035_v1 }
 0x3a8   : > { %4623 = vmatpush3.bf16.xpose.msra.mxu0 %v3929_v5  ;;  %4643 = vmatpush3.bf16.xpose.msra.mxu1 %v3969_v7  ;;  %v3956_v5 = vld [vmem:[%s5551_s0 + $0x1d8] sm:$0xf]  ;;  %v3957_v7 = vld [vmem:[%s5551_s0 + $0x1dc] sm:$0xf] }
 0x3a9   : > { %4624 = vmatprep.subr.bf16.mxu0 %v5230_v14  ;;  %4644 = vmatprep.subr.bf16.mxu1 %v5230_v14  ;;  %v3036_v42 = vadd.bf16 %v3956_v5, %v6806_v44  ;;  %v3037_v20 = vadd.bf16 %v3957_v7, %v6809_v49  ;;  %v3977_v37 = vcombine.low %v3956_v5, %v3957_v7 }
 0x3ab   : > { %v3985_v44 = vcombine.low %v3036_v42, %v3037_v20 }
 0x3b0   : > { %4625 = vmatpush3.bf16.xpose.msra.mxu0 %v3930_v51  ;;  %4645 = vmatpush3.bf16.xpose.msra.mxu1 %v3970_v16 }
 0x3b1   : > { %4626 = vmatprep.subr.bf16.mxu0 %v5230_v14  ;;  %4646 = vmatprep.subr.bf16.mxu1 %v5230_v14 }
 0x3b8   : > { %4627 = vmatpush3.bf16.xpose.msra.mxu0 %v3931_v43  ;;  %4647 = vmatpush3.bf16.xpose.msra.mxu1 %v3971_v15 }
 0x3b9   : > { %4628 = vmatprep.subr.bf16.mxu0 %v5230_v14  ;;  %4648 = vmatprep.subr.bf16.mxu1 %v5230_v14 }
 0x3c0   : > { %4629 = vmatpush3.bf16.xpose.msra.mxu0 %v3932_v6  ;;  %4649 = vmatpush3.bf16.xpose.msra.mxu1 %v3972_v60  ;;  %v3039_v60 = vadd.bf16 %v3959_v48, %v6832_v34 }
 0x3c1   : > { %4630 = vmatprep.subr.bf16.mxu0 %v5230_v14  ;;  %4650 = vmatprep.subr.bf16.mxu1 %v5230_v14 }
 0x3c8   : > { %4631 = vmatpush3.bf16.xpose.msra.mxu0 %v3933_v24  ;;  %4651 = vmatpush3.bf16.xpose.msra.mxu1 %v3973_v57  ;;  %v3961_v24 = vld [vmem:[%s5551_s0 + $0x1ec] sm:$0xf] }
 0x3c9   : > { %4656 = vmatprep.subr.bf16.mxu0 %v5230_v14  ;;  %4676 = vmatprep.subr.bf16.mxu1 %v5230_v14  ;;  %v3041_v57 = vadd.bf16 %v3961_v24, %v6846_v33  ;;  %v3988_v33 = vcombine.low %v3042_v40, %v3043_v53 }
 0x3cf   : > { %4633 = vmatmul.mubr.bf16.vlgmr.msra.gmra.mrb[40].mxu0 %v2652_v38  ;;  %4653 = vmatmul.mubr.bf16.vlgmr.msra.gmra.mrb[40].mxu1 %v2994_v10  ;;  %v3981_v38 = vcombine.low %v3964_v25, %v3965_v26 }
 0x3d0   : > { %4657 = vmatpush3.bf16.xpose.msra.mxu0 %v3974_v54  ;;  %4677 = vmatpush3.bf16.xpose.msra.mxu1 %v3982_v52  ;;  %v3045_v54 = vadd.bf16 %v3965_v26, %v6876_v28  ;;  %v2989_v52 = vmul.f32 %v6368_v32, %v6864_v11 }
 0x3d1   : > { %4658 = vmatprep.subr.bf16.mxu0 %v5230_v14  ;;  %4678 = vmatprep.subr.bf16.mxu1 %v5230_v14 }
 0x3d2   : > { %4672 = vmatprep.mubr.msk.bf16.mxu0 %vm5231_vm0, %v5230_v14  ;;  %4692 = vmatprep.mubr.msk.bf16.mxu1 %vm5231_vm0, %v5230_v14  ;;  %v3989_v10 = vcombine.low %v3044_v27, %v3045_v54  ;;  %v2991_v39 = vadd.f32 %v2990_v9, %v2989_v52 }
 0x3d4   : > { %v2992_v2 = vadd.f32 %v2991_v39, %v6892_v30  ;;  %v2995_v13 = vpack.c.bf16 %v2991_v39, %v2991_v39 }
 0x3d6   : > { %v2993_v3 = vpack.c.bf16 %v2992_v2, %v2992_v2 }
 0x3d8   : > { %4659 = vmatpush3.bf16.xpose.msra.mxu0 %v3975_v29  ;;  %4679 = vmatpush3.bf16.xpose.msra.mxu1 %v3983_v61 }
 0x3d9   : > { %4660 = vmatprep.subr.bf16.mxu0 %v5230_v14  ;;  %4680 = vmatprep.subr.bf16.mxu1 %v5230_v14 }
 0x3e0   : > { %4661 = vmatpush3.bf16.xpose.msra.mxu0 %v3976_v0  ;;  %4681 = vmatpush3.bf16.xpose.msra.mxu1 %v3984_v46 }
 0x3e1   : > { %4662 = vmatprep.subr.bf16.mxu0 %v5230_v14  ;;  %4682 = vmatprep.subr.bf16.mxu1 %v5230_v14 }
 0x3e2   : > { %v2281_v22 = vpop.f32.mrb[28].mxu0  ;;  %v6920_v56 = vpop.f32.mrb[28].mxu1 }
 0x3e3   : > { %v2292_v59 = vsub.f32 %v2281_v22, %v6811_v31  ;;  %v4514_v36 = vpop.f32.mrb[29].mxu0  ;;  %v4534_v51 = vpop.f32.mrb[29].mxu1  ;;  %v3038_v31 = vadd.bf16 %v3958_v63, %v6829_v12  ;;  %v3979_v12 = vcombine.low %v3960_v18, %v3961_v24 }
 0x3e4   : > { %v2284_v16 = vpop.f32.mrb[30].mxu0  ;;  %v2449_v50 = vpop.f32.mrb[30].mxu1 }
 0x3e5   : > { %v2293_v49 = vsub.f32 %v2292_v59, %v6813_v47  ;;  %v4515_v43 = vpop.f32.mrb[31].mxu0  ;;  %v4535_v15 = vpop.f32.mrb[31].mxu1  ;;  %v3986_v47 = vcombine.low %v3038_v31, %v3039_v60 }
 0x3e7   : > { %v2294_v6 = vadd.f32 %v2293_v49, %v6667_v45  ;;  %v3040_v45 = vadd.bf16 %v3960_v18, %v6843_v19  ;;  %v3980_v19 = vcombine.low %v3962_v21, %v3963_v55 }
 0x3e8   : > { %4663 = vmatpush3.bf16.xpose.msra.mxu0 %v3977_v37  ;;  %4683 = vmatpush3.bf16.xpose.msra.mxu1 %v3985_v44 }
 0x3e9   : > { %4664 = vmatprep.subr.bf16.mxu0 %v5230_v14  ;;  %4684 = vmatprep.subr.bf16.mxu1 %v5230_v14  ;;  %v3987_v34 = vcombine.low %v3040_v45, %v3041_v57 }
 0x3f0   : > { %4665 = vmatpush3.bf16.xpose.msra.mxu0 %v3978_v8  ;;  %4685 = vmatpush3.bf16.xpose.msra.mxu1 %v3986_v47 }
 0x3f1   : > { %4666 = vmatprep.subr.bf16.mxu0 %v5230_v14  ;;  %4686 = vmatprep.subr.bf16.mxu1 %v5230_v14 }
 0x3f8   : > { %4667 = vmatpush3.bf16.xpose.msra.mxu0 %v3979_v12  ;;  %4687 = vmatpush3.bf16.xpose.msra.mxu1 %v3987_v34 }
 0x3f9   : > { %4668 = vmatprep.subr.bf16.mxu0 %v5230_v14  ;;  %4688 = vmatprep.subr.bf16.mxu1 %v5230_v14 }
 0x400   : > { %4669 = vmatpush3.bf16.xpose.msra.mxu0 %v3980_v19  ;;  %4689 = vmatpush3.bf16.xpose.msra.mxu1 %v3988_v33 }
 0x401   : > { %4670 = vmatprep.subr.bf16.mxu0 %v5230_v14  ;;  %4690 = vmatprep.subr.bf16.mxu1 %v5230_v14 }
 0x408   : > { %4671 = vmatpush3.bf16.xpose.msra.mxu0 %v3981_v38  ;;  %4691 = vmatpush3.bf16.xpose.msra.mxu1 %v3989_v10 }
 0x40f   : > { %4673 = vmatmul.mubr.bf16.vlgmr.msra.gmra.mrb[44].mxu0 %v2995_v13  ;;  %4693 = vmatmul.mubr.bf16.vlgmr.msra.gmra.mrb[44].mxu1 %v2993_v3 }
 0x422   : > { %v2534_v28 = vpop.f32.mrb[32].mxu0  ;;  %v2622_v32 = vpop.f32.mrb[32].mxu1 }
 0x423   : > { %v2629_v11 = vsub.f32 %v6920_v56, %v2534_v28  ;;  %v2633_v35 = vsub.f32 %v2622_v32, %v6920_v56  ;;  %v4554_v4 = vpop.f32.mrb[33].mxu0  ;;  %v4574_v29 = vpop.f32.mrb[33].mxu1 }
 0x424   : > { %v2537_v14 = vpop.f32.mrb[34].mxu0  ;;  %v2625_v61 = vpop.f32.mrb[34].mxu1 }
 0x425   : > { %v2630_v58 = vadd.f32 %v2629_v11, %v6820_v41  ;;  %v2634_v62 = vsub.f32 %v2633_v35, %v2534_v28  ;;  %v4555_v23 = vpop.f32.mrb[35].mxu0  ;;  %v4575_v1 = vpop.f32.mrb[35].mxu1 }
 0x427   : > { %v2635_v30 = vadd.f32 %v2634_v62, %v2294_v6 }
 0x462   : > { %v2787_v0 = vpop.f32.mrb[36].mxu0  ;;  %v2875_v46 = vpop.f32.mrb[36].mxu1 }
 0x463   : > { %v2970_v5 = vsub.f32 %v2787_v0, %v2875_v46  ;;  %v4594_v7 = vpop.f32.mrb[37].mxu0  ;;  %v4614_v42 = vpop.f32.mrb[37].mxu1 }
 0x464   : > { %v2790_v20 = vpop.f32.mrb[38].mxu0  ;;  %v2878_v22 = vpop.f32.mrb[38].mxu1 }
 0x465   : > { %v2971_v59 = vadd.f32 %v2970_v5, %v2630_v58  ;;  %v4595_v36 = vpop.f32.mrb[39].mxu0  ;;  %v4615_v56 = vpop.f32.mrb[39].mxu1 }
 0x4a2   : > { %v2963_v51 = vpop.f32.mrb[40].mxu0  ;;  %v3128_v16 = vpop.f32.mrb[40].mxu1 }
 0x4a3   : > { %v2974_v50 = vsub.f32 %v2963_v51, %v2787_v0  ;;  %v4634_v37 = vpop.f32.mrb[41].mxu0  ;;  %v4654_v44 = vpop.f32.mrb[41].mxu1 }
 0x4a4   : > { %v2966_v41 = vpop.f32.mrb[42].mxu0  ;;  %v3131_v49 = vpop.f32.mrb[42].mxu1 }
 0x4a5   : > { %v2975_v43 = vsub.f32 %v2974_v50, %v2875_v46  ;;  %v4635_v15 = vpop.f32.mrb[43].mxu0  ;;  %v4655_v63 = vpop.f32.mrb[43].mxu1 }
 0x4a7   : > { %v2976_v48 = vadd.f32 %v2975_v43, %v2635_v30 }
 0x4e2   : > { %v3216_v6 = vpop.f32.mrb[44].mxu0  ;;  %v3304_v31 = vpop.f32.mrb[44].mxu1 }
 0x4e3   : > { %v3311_v60 = vsub.f32 %v3128_v16, %v3216_v6  ;;  %v3315_v8 = vsub.f32 %v3304_v31, %v3128_v16  ;;  %v4674_v47 = vpop.f32.mrb[45].mxu0  ;;  %v4694_v18 = vpop.f32.mrb[45].mxu1 }
 0x4e4   : > { %v3219_v24 = vpop.f32.mrb[46].mxu0  ;;  %v3307_v45 = vpop.f32.mrb[46].mxu1 }
 0x4e5   : > { %v3312_v57 = vadd.f32 %v3311_v60, %v2971_v59  ;;  %v3316_v12 = vsub.f32 %v3315_v8, %v3216_v6  ;;  %v4675_v34 = vpop.f32.mrb[47].mxu0  ;;  %v4695_v21 = vpop.f32.mrb[47].mxu1 }
 0x4e7   : > { %3313 = vst [vmem:[#allocation11] sm:$0xff] %v3312_v57  ;;  %v3317_v55 = vadd.f32 %v3316_v12, %v2976_v48 }
 0x4e8   : > { %5110 = shalt.err (!%p5107_p11)
}
 0x4e9   : > { %s7085_s23 = sld [smem:[#allocation28_spill]] }
 0x4ef   : > { %s5111_s27 = scalar_lea.hbm %s7085_s23, 128 }
 0x4f0   : > { %p5112_p2 = scmp.ne.s32.totalorder %s7085_s23, %s5111_s27  ;;  %p5117_p8 = scmp.lt.u32.totalorder %s5111_s27, %s7085_s23 }
 0x4f2   : > { %p5113_p12 = pnand %p5112_p2, %p4736_p7 }
 0x4f4   : > { %p5114_p1 = pneg %p5113_p12 }
 0x4f6   : > { %p5119_p0 = pnand %p5117_p8, %p5114_p1 }
 0x4f8   : > { %5122 = shalt.err (!%p5119_p0)
}
 0x4f9   : > { %4709 = dma.vmem_to_hbm [thread:$0]  (%p4736_p7), %s3330_s26, 128, %s7085_s23, [#allocation4]   ;;  %3318 = vst [vmem:[#allocation12] sm:$0xff] %v3317_v55 }
 0x4fa   : > { %s5123_s25 = scalar_lea.vmem %s6957_s29, 128  ;;  %p5130_p10 = scmp.lt.s32.totalorder %s6957_s29, %s6957_s29 }
 0x4fb   : > { %p5124_p4 = scmp.ne.s32.totalorder %s6957_s29, %s5123_s25  ;;  %p5131_p6 = scmp.lt.s32.totalorder %s5123_s25, %s5123_s25 }
 0x4fd   : > { %p5125_p9 = pnand %p5124_p4, %p4736_p7  ;;  %p5132_p3 = por %p5131_p6, %p5130_p10 }
 0x4ff   : > { %p5126_p5 = pneg %p5125_p9 }
 0x501   : > { %p5133_p13 = pnand %p5132_p3, %p5126_p5 }
 0x503   : > { %5136 = shalt.err (!%p5133_p13)
}
 0x504   : > { %s7086_s11 = sld [smem:[#allocation29_spill]] }
 0x50a   : > { %s7087_s17 = smov %s7086_s11  ;;  %s5137_s12 = scalar_lea.hbm %s7086_s11, 128 }
 0x50b   : > { %p5138_p11 = scmp.ne.s32.totalorder %s7087_s17, %s5137_s12  ;;  %p5143_p1 = scmp.lt.u32.totalorder %s5137_s12, %s7087_s17 }
 0x50d   : > { %p5139_p2 = pnand %p5138_p11, %p4736_p7 }
 0x50f   : > { %p5140_p12 = pneg %p5139_p2 }
 0x511   : > { %p5145_p8 = pnand %p5143_p1, %p5140_p12 }
 0x513   : > { %5148 = shalt.err (!%p5145_p8)
}
 0x514   : > { %4711 = dma.vmem_to_hbm [thread:$0]  (%p4736_p7), %s6957_s29, 128, %s7087_s17, [#allocation13]  }
 0x515   : > { %5190 = dma.done.wait (%p4736_p7), [#allocation4], 128  }
 0x516   : > { %5192 = vsyncadd (%p4736_p7), [#allocation4], 4294967168 }
 0x517   : > { %5194 = dma.done.wait (%p4736_p7), [#allocation13], 128  }
 0x518   : > { %5196 = vsyncadd (%p4736_p7), [#allocation13], 4294967168 }
 0x519 PF: > { %s31_s14 = sadd.s32 1, %s5219_s14   ;;  %s7088_s21 = sld [smem:[#allocation20_spill]] }
 0x51a   : > { %p28_p0 = scmp.ge.s32.totalorder %s31_s14, 4   ;;  %s7089_s11 = sld [smem:[#allocation22_spill]] }
 0x51b   : > { %s7090_s29 = sld [smem:[#allocation21_spill]]  ;;  %s7091_s30 = smov %s5203_s10 }
 0x51c   : > { %s7093_s12 = smov %s5215_s13  ;;  %30 = sbr.rel (!%p28_p0) target bundleno = 18 (0x12), region = 168 }
 0x51f   : > { %s7092_s10 = smov %s7088_s21 }
 0x521   : > { %s7094_s13 = smov %s7090_s29 }
 0x523   :  { %3360 = vsyncpa [#allocation3], 1 }
 0x524   :  { %3362 = vsyncpa [#allocation3 + $0x1], 1 }
 0x525   :  { %3363 = vsyncpa [#allocation6], 1 }
 0x526   :  { %3365 = vsyncpa [#allocation6 + $0x1], 1 }
 0x527   :  { %3366 = vsyncpa [#allocation9], 1 }
 0x528   :  { %3368 = vsyncpa [#allocation9 + $0x1], 1 }
 0x529   :  { %3369 = vsyncpa [#allocation4], 1 }
 0x52a   :  { %3371 = vsyncpa [#allocation4 + $0x1], 1 }
 0x52b   :  { %3372 = vsyncpa [#allocation13], 1 }

</bundles_post_ra>
